<compile_context>
chip_gen: v7x
topology: tpu7x:2x2x1
jax: 0.10.0
libtpu: 0.0.40
codegen_flags: <defaults>
</compile_context>

<pallas_src>
import functools

import jax
import jax.numpy as jnp
from jax.experimental import pallas as pl
from jax.experimental.pallas import tpu as pltpu

NEG_SLOPE = 0.2
BN_EPS = 1e-5


def _leaky(v):
    return jnp.where(v > 0, v, NEG_SLOPE * v)


def _round_up(v, m):
    return (v + m - 1) // m * m


# ---------------------------------------------------------------------------
# Kernel 1: fused convs + residual, plus BN partial statistics.
# ---------------------------------------------------------------------------
def _fused_conv_kernel(x_ref, x_hbm, w1_ref, b1_ref, w2_ref, b2_ref,
                       w3_ref, b3_ref, y_ref, stats_ref,
                       halo_top, halo_bot, h1ext, dma_sems,
                       *, n, h, w, tr):
    i = pl.program_id(0)
    c4 = w1_ref.shape[1]
    tp = tr * w                        # pixels in this tile
    nh = n * h                         # total scanlines in the batch
    off = _round_up(w + 1, 8)          # core offset inside the halo buffer

    # Kick off the two halo-scanline DMAs first so they overlap with conv1.
    row0 = i * tr
    top_row = jnp.maximum(row0 - 1, 0)
    bot_row = jnp.minimum(row0 + tr, nh - 1)
    top_cp = pltpu.make_async_copy(x_hbm.at[pl.ds(top_row * w, w), :],
                                   halo_top, dma_sems.at[0])
    bot_cp = pltpu.make_async_copy(x_hbm.at[pl.ds(bot_row * w, w), :],
                                   halo_bot, dma_sems.at[1])
    top_cp.start()
    bot_cp.start()

    x = x_ref[...].astype(jnp.float32)

    # ---- conv1: 1x1 conv == channel matmul ----
    w1 = w1_ref[...]
    b1 = b1_ref[...]
    h1 = _leaky(jnp.dot(x, w1, preferred_element_type=jnp.float32) + b1)

    # ---- conv1 on the halo scanlines (zeroed outside the image: conv2 pad=1) ----
    top_cp.wait()
    bot_cp.wait()
    top_valid = (jax.lax.rem(row0, h) != 0).astype(jnp.float32)
    bot_valid = (jax.lax.rem(row0 + tr, h) != 0).astype(jnp.float32)
    h1_top = _leaky(jnp.dot(halo_top[...].astype(jnp.float32), w1,
                            preferred_element_type=jnp.float32) + b1) * top_valid
    h1_bot = _leaky(jnp.dot(halo_bot[...].astype(jnp.float32), w1,
                            preferred_element_type=jnp.float32) + b1) * bot_valid

    # ---- assemble halo-extended h1 in VMEM scratch ----
    h1ext[pl.ds(0, off - w), :] = jnp.zeros((off - w, c4), jnp.float32)
    h1ext[pl.ds(off - w, w), :] = h1_top
    h1ext[pl.ds(off, tp), :] = h1
    h1ext[pl.ds(off + tp, w), :] = h1_bot
    tail = h1ext.shape[0] - (off + tp + w)
    h1ext[pl.ds(off + tp + w, tail), :] = jnp.zeros((tail, c4), jnp.float32)

    # ---- conv2: 3x3 / pad=1 as a single fused im2col matmul ----
    pix = jax.lax.broadcasted_iota(jnp.int32, (tp, 1), 0)
    col = jax.lax.rem(pix, w)
    not_left = col != 0
    not_right = col != (w - 1)

    taps = []
    for k in range(9):
        dy, dx = k // 3 - 1, k % 3 - 1
        tap = h1ext[pl.ds(off + dy * w + dx, tp), :]    # static slice, no roll
        if dx == -1:
            tap = jnp.where(not_left, tap, 0.0)
        elif dx == 1:
            tap = jnp.where(not_right, tap, 0.0)
        taps.append(tap)
    im2col = jnp.concatenate(taps, axis=1)              # (tp, 9*c4)
    h2 = _leaky(jnp.dot(im2col, w2_ref[...],
                        preferred_element_type=jnp.float32) + b2_ref[...])

    # ---- conv3 (1x1) + residual add ----
    y = x + jnp.dot(h2, w3_ref[...], preferred_element_type=jnp.float32) + b3_ref[...]
    y_ref[...] = y.astype(y_ref.dtype)

    # ---- BatchNorm partial statistics (accumulator resident across the grid) ----
    # TODO(synk): for extremely large N*H*W use a Welford-style combination; plain
    # f32 sum/sumsq accumulation is fine at these scales.
    @pl.when(i == 0)
    def _():
        stats_ref[...] = jnp.zeros_like(stats_ref)
    psum = jnp.concatenate([jnp.sum(y, axis=0, keepdims=True),
                            jnp.sum(y * y, axis=0, keepdims=True)], axis=0)
    stats_ref[...] += psum


# ---------------------------------------------------------------------------
# Kernel 2: BN normalize (training-mode batch stats) + lrelu, lane-dense view.
# ---------------------------------------------------------------------------
def _bn_lrelu_kernel(y_ref, stats_ref, gamma_ref, beta_ref, o_ref,
                     *, total_pixels, rep):
    inv_p = 1.0 / float(total_pixels)
    mean = stats_ref[0:1, :] * inv_p
    var = stats_ref[1:2, :] * inv_p - mean * mean
    rstd = jax.lax.rsqrt(var + BN_EPS)
    scale = gamma_ref[...] * rstd
    shift = beta_ref[...] - mean * scale
    if rep > 1:
        # Lane-dense view packs `rep` pixels per 128-lane row; the per-channel
        # pattern repeats every C lanes.
        scale = jnp.tile(scale, (1, rep))
        shift = jnp.tile(shift, (1, rep))
    o_ref[...] = _leaky(y_ref[...] * scale + shift).astype(o_ref.dtype)


def _choose_rows_per_tile(h, w, target_pixels):
    """Largest divisor of h with (rows*w) % 8 == 0 and rows*w <= target_pixels."""
    best = None
    for d in range(1, h + 1):
        if h % d or (d * w) % 8:
            continue
        if d * w <= target_pixels:
            best = d
        elif best is None:
            best = d
            break
        else:
            break
    return best if best is not None else h


def res_block_forward(x_nchw, params, *, target_tile_pixels=1024):
    """PyTorch-equivalent Res_block forward. x_nchw: (N, C, H, W) float32."""
    n, c, h, w = x_nchw.shape
    c4 = c // 4
    p = n * h * w

    tr = _choose_rows_per_tile(h, w, target_tile_pixels)
    tp = tr * w
    num_tiles = p // tp
    assert num_tiles * tp == p
    assert tp % 8 == 0 or num_tiles == 1, "tile pixel count must be a multiple of 8"

    # NCHW -> flattened NHWC (glue, plain JAX)
    x_flat = jnp.transpose(x_nchw, (0, 2, 3, 1)).reshape(p, c)

    # Re-pack PyTorch-convention weights into matmul-friendly layouts.
    w1k = jnp.transpose(params["w1"][:, :, 0, 0], (1, 0))                  # (C, C4)
    b1k = params["b1"].reshape(1, c4)
    w2k = jnp.transpose(params["w2"], (2, 3, 1, 0)).reshape(9 * c4, c4)    # (9*C4_in, C4_out)
    b2k = params["b2"].reshape(1, c4)
    w3k = jnp.transpose(params["w3"][:, :, 0, 0], (1, 0))                  # (C4, C)
    b3k = params["b3"].reshape(1, c)
    gk = params["gamma"].reshape(1, c)
    bk = params["beta"].reshape(1, c)

    off = _round_up(w + 1, 8)
    h1ext_rows = _round_up(off + tp + w + 1, 8)
    const = lambda i: (0, 0)

    # ---------------- Pass 1: fused convs + residual + BN partial sums ----------------
    kernel1 = functools.partial(_fused_conv_kernel, n=n, h=h, w=w, tr=tr)
    y_flat, stats = pl.pallas_call(
        kernel1,
        out_shape=(jax.ShapeDtypeStruct((p, c), jnp.float32),
                   jax.ShapeDtypeStruct((2, c), jnp.float32)),
        grid=(num_tiles,),
        in_specs=[
            pl.BlockSpec((tp, c), lambda i: (i, 0)),      # x tile (auto-pipelined)
            pl.BlockSpec(memory_space=pl.ANY),            # x again, for halo DMAs
            pl.BlockSpec((c, c4), const),                 # params: DMA'd once,
            pl.BlockSpec((1, c4), const),                 # resident across the grid
            pl.BlockSpec((9 * c4, c4), const),
            pl.BlockSpec((1, c4), const),
            pl.BlockSpec((c4, c), const),
            pl.BlockSpec((1, c), const),
        ],
        out_specs=(
            pl.BlockSpec((tp, c), lambda i: (i, 0)),      # y tile
            pl.BlockSpec((2, c), const),                  # BN sum / sumsq accumulator
        ),
        scratch_shapes=[
            pltpu.VMEM((w, c), x_flat.dtype),             # top halo scanline
            pltpu.VMEM((w, c), x_flat.dtype),             # bottom halo scanline
            pltpu.VMEM((h1ext_rows, c4), jnp.float32),    # halo-extended h1
            pltpu.SemaphoreType.DMA((2,)),
        ],
        compiler_params=pltpu.CompilerParams(
            dimension_semantics=("arbitrary",),           # BN accumulator carries
            vmem_limit_bytes=32 * 1024 * 1024,
        ),
    )(x_flat, x_flat, w1k, b1k, w2k, b2k, w3k, b3k)

    # ---------------- Pass 2: BN normalize + lrelu (lane-dense view) ----------------
    lanes = 128
    br2 = (tp * c) // lanes
    lane_dense = (lanes % c == 0) and ((tp * c) % lanes == 0) and \
                 (br2 % 8 == 0 or num_tiles == 1)
    if lane_dense:
        rep = lanes // c
        rows2 = (p * c) // lanes
        y_view = y_flat.reshape(rows2, lanes)             # free row-major regroup
        blk = (br2, lanes)
        out_shape2 = jax.ShapeDtypeStruct((rows2, lanes), jnp.float32)
    else:
        rep = 1
        y_view = y_flat
        blk = (tp, c)
        out_shape2 = jax.ShapeDtypeStruct((p, c), jnp.float32)

    kernel2 = functools.partial(_bn_lrelu_kernel, total_pixels=p, rep=rep)
    out_view = pl.pallas_call(
        kernel2,
        out_shape=out_shape2,
        grid=(num_tiles,),
        in_specs=[
            pl.BlockSpec(blk, lambda i: (i, 0)),
            pl.BlockSpec((2, c), const),
            pl.BlockSpec((1, c), const),
            pl.BlockSpec((1, c), const),
        ],
        out_specs=pl.BlockSpec(blk, lambda i: (i, 0)),
        compiler_params=pltpu.CompilerParams(
            dimension_semantics=("parallel",),            # independent tiles (2 TCs on v7x)
            vmem_limit_bytes=32 * 1024 * 1024,
        ),
    )(y_view, stats, gk, bk)

    out_flat = out_view.reshape(p, c)
    return jnp.transpose(out_flat.reshape(n, h, w, c), (0, 3, 1, 2))


def res_block_reference(x, params):
    """Pure-JAX reference (mirrors the PyTorch forward, training-mode BN)."""
    def conv(v, wgt, b, pad):
        y = jax.lax.conv_general_dilated(
            v, wgt, (1, 1), [(pad, pad), (pad, pad)],
            dimension_numbers=("NCHW", "OIHW", "NCHW"))
        return y + b.reshape(1, -1, 1, 1)

    h1 = _leaky(conv(x, params["w1"], params["b1"], 0))
    h2 = _leaky(conv(h1, params["w2"], params["b2"], 1))
    h3 = conv(h2, params["w3"], params["b3"], 0)
    y = x + h3
    mean = jnp.mean(y, axis=(0, 2, 3), keepdims=True)
    var = jnp.mean((y - mean) ** 2, axis=(0, 2, 3), keepdims=True)
    yn = (y - mean) / jnp.sqrt(var + BN_EPS)
    return _leaky(yn * params["gamma"].reshape(1, -1, 1, 1)
                  + params["beta"].reshape(1, -1, 1, 1))


if __name__ == "__main__":
    key = jax.random.PRNGKey(0)
    N, C, H, W = 2, 16, 16, 16
    c4 = C // 4
    ks = jax.random.split(key, 9)

    x = jax.random.normal(ks[0], (N, C, H, W), jnp.float32)
    params = {
        "w1": 0.1 * jax.random.normal(ks[1], (c4, C, 1, 1), jnp.float32),
        "b1": 0.1 * jax.random.normal(ks[2], (c4,), jnp.float32),
        "w2": 0.1 * jax.random.normal(ks[3], (c4, c4, 3, 3), jnp.float32),
        "b2": 0.1 * jax.random.normal(ks[4], (c4,), jnp.float32),
        "w3": 0.1 * jax.random.normal(ks[5], (C, c4, 1, 1), jnp.float32),
        "b3": 0.1 * jax.random.normal(ks[6], (C,), jnp.float32),
        "gamma": 1.0 + 0.1 * jax.random.normal(ks[7], (C,), jnp.float32),
        "beta": 0.1 * jax.random.normal(ks[8], (C,), jnp.float32),
    }

    ref = res_block_reference(x, params)

    # Default tiling (whole-image tiles at this size).
    out = res_block_forward(x, params)
    jax.block_until_ready(out)
    assert out.shape == ref.shape == (N, C, H, W)
    assert jnp.allclose(out, ref, rtol=2e-3, atol=2e-3), (
        float(jnp.max(jnp.abs(out - ref))))

    # Smaller tiles to exercise the inter-tile halo path.
    out_small = res_block_forward(x, params, target_tile_pixels=128)
    jax.block_until_ready(out_small)
    assert jnp.allclose(out_small, ref, rtol=2e-3, atol=2e-3), (
        float(jnp.max(jnp.abs(out_small - ref))))

    print("KERNEL_OK")
</pallas_src>

<mosaic_0001>
module attributes {stable_mosaic.version = 11 : i64} {
  func.func @_fused_conv_kernel(%arg0: i32, %arg1: memref<256x16xf32, #tpu.memory_space<vmem>>, %arg2: memref<512x16xf32, #tpu.memory_space<any>>, %arg3: memref<16x4xf32, #tpu.memory_space<vmem>>, %arg4: memref<1x4xf32, #tpu.memory_space<vmem>>, %arg5: memref<36x4xf32, #tpu.memory_space<vmem>>, %arg6: memref<1x4xf32, #tpu.memory_space<vmem>>, %arg7: memref<4x16xf32, #tpu.memory_space<vmem>>, %arg8: memref<1x16xf32, #tpu.memory_space<vmem>>, %arg9: memref<256x16xf32, #tpu.memory_space<vmem>>, %arg10: memref<2x16xf32, #tpu.memory_space<vmem>>, %arg11: memref<16x16xf32, #tpu.memory_space<vmem>>, %arg12: memref<16x16xf32, #tpu.memory_space<vmem>>, %arg13: memref<304x4xf32, #tpu.memory_space<vmem>>, %arg14: memref<2x!tpu.dma_semaphore, #tpu.memory_space<semaphore_mem>>) attributes {dimension_semantics = [#tpu.dimension_semantics<arbitrary>], iteration_bounds = array<i64: 2>, scalar_prefetch = 0 : i64, scratch_operands = 4 : i64, tpu.core_type = #tpu.core_type<tc>, window_params = [{transform_indices = @transform_0, window_bounds = array<i64: 256, 16>}, {}, {pipeline_mode = #tpu.pipeline_mode<synchronous>, transform_indices = @transform_2, window_bounds = array<i64: 16, 4>}, {pipeline_mode = #tpu.pipeline_mode<synchronous>, transform_indices = @transform_3, window_bounds = array<i64: 1, 4>}, {pipeline_mode = #tpu.pipeline_mode<synchronous>, transform_indices = @transform_4, window_bounds = array<i64: 36, 4>}, {pipeline_mode = #tpu.pipeline_mode<synchronous>, transform_indices = @transform_5, window_bounds = array<i64: 1, 4>}, {pipeline_mode = #tpu.pipeline_mode<synchronous>, transform_indices = @transform_6, window_bounds = array<i64: 4, 16>}, {pipeline_mode = #tpu.pipeline_mode<synchronous>, transform_indices = @transform_7, window_bounds = array<i64: 1, 16>}, {transform_indices = @transform_8, window_bounds = array<i64: 256, 16>}, {pipeline_mode = #tpu.pipeline_mode<synchronous>, transform_indices = @transform_9, window_bounds = array<i64: 2, 16>}]} {
    %c16_i32 = arith.constant 16 : i32
    %0 = arith.muli %arg0, %c16_i32 : i32
    %c1_i32 = arith.constant 1 : i32
    %1 = arith.subi %0, %c1_i32 : i32
    %c0_i32 = arith.constant 0 : i32
    %2 = arith.maxsi %1, %c0_i32 : i32
    %c16_i32_0 = arith.constant 16 : i32
    %3 = arith.addi %0, %c16_i32_0 : i32
    %c31_i32 = arith.constant 31 : i32
    %4 = arith.minsi %3, %c31_i32 : i32
    %c16_i32_1 = arith.constant 16 : i32
    %5 = arith.muli %2, %c16_i32_1 : i32
    %c16_i32_2 = arith.constant 16 : i32
    %6 = arith.muli %4, %c16_i32_2 : i32
    %c0_i32_3 = arith.constant 0 : i32
    %c0_i32_4 = arith.constant 0 : i32
    %7 = tpu.memref_slice %arg2[%5, %c0_i32_4] : memref<512x16xf32, #tpu.memory_space<any>> -> memref<16x16xf32, #tpu.memory_space<any>>
    %8 = tpu.memref_slice %arg14[%c0_i32_3] : memref<2x!tpu.dma_semaphore, #tpu.memory_space<semaphore_mem>> -> memref<1x!tpu.dma_semaphore, #tpu.memory_space<semaphore_mem>>
    %9 = tpu.memref_squeeze %8 : memref<1x!tpu.dma_semaphore, #tpu.memory_space<semaphore_mem>> -> memref<!tpu.dma_semaphore, #tpu.memory_space<semaphore_mem>>
    tpu.enqueue_dma source(%7 : memref<16x16xf32, #tpu.memory_space<any>>) target(%arg11 : memref<16x16xf32, #tpu.memory_space<vmem>>) target_semaphore(%9 : memref<!tpu.dma_semaphore, #tpu.memory_space<semaphore_mem>>)
    %c1_i32_5 = arith.constant 1 : i32
    %c0_i32_6 = arith.constant 0 : i32
    %10 = tpu.memref_slice %arg2[%6, %c0_i32_6] : memref<512x16xf32, #tpu.memory_space<any>> -> memref<16x16xf32, #tpu.memory_space<any>>
    %11 = tpu.memref_slice %arg14[%c1_i32_5] : memref<2x!tpu.dma_semaphore, #tpu.memory_space<semaphore_mem>> -> memref<1x!tpu.dma_semaphore, #tpu.memory_space<semaphore_mem>>
    %12 = tpu.memref_squeeze %11 : memref<1x!tpu.dma_semaphore, #tpu.memory_space<semaphore_mem>> -> memref<!tpu.dma_semaphore, #tpu.memory_space<semaphore_mem>>
    tpu.enqueue_dma source(%10 : memref<16x16xf32, #tpu.memory_space<any>>) target(%arg12 : memref<16x16xf32, #tpu.memory_space<vmem>>) target_semaphore(%12 : memref<!tpu.dma_semaphore, #tpu.memory_space<semaphore_mem>>)
    %c0 = arith.constant 0 : index
    %c0_7 = arith.constant 0 : index
    %13 = vector.load %arg1[%c0, %c0_7] : memref<256x16xf32, #tpu.memory_space<vmem>>, vector<256x16xf32>
    %c0_8 = arith.constant 0 : index
    %c0_9 = arith.constant 0 : index
    %14 = vector.load %arg3[%c0_8, %c0_9] : memref<16x4xf32, #tpu.memory_space<vmem>>, vector<16x4xf32>
    %c0_10 = arith.constant 0 : index
    %c0_11 = arith.constant 0 : index
    %15 = vector.load %arg4[%c0_10, %c0_11] : memref<1x4xf32, #tpu.memory_space<vmem>>, vector<1x4xf32>
    %cst = arith.constant dense<0.000000e+00> : vector<256x4xf32>
    %16 = tpu.matmul %13, %14, %cst {dimension_numbers = #tpu.dot_dimension_numbers<[1], [0], [0], [1], [0, 0, 1, 1], [], []>} : vector<256x16xf32>, vector<16x4xf32>, vector<256x4xf32> -> vector<256x4xf32>
    %17 = vector.broadcast %15 : vector<1x4xf32> to vector<256x4xf32>
    %18 = arith.addf %16, %17 : vector<256x4xf32>
    %cst_12 = arith.constant 0.000000e+00 : f32
    %19 = vector.broadcast %cst_12 : f32 to vector<256x4xf32>
    %20 = arith.cmpf ogt, %18, %19 : vector<256x4xf32>
    %cst_13 = arith.constant 2.000000e-01 : f32
    %21 = vector.broadcast %cst_13 : f32 to vector<256x4xf32>
    %22 = arith.mulf %21, %18 : vector<256x4xf32>
    %23 = arith.select %20, %18, %22 : vector<256x4xi1>, vector<256x4xf32>
    %c0_i32_14 = arith.constant 0 : i32
    %c0_i32_15 = arith.constant 0 : i32
    %24 = tpu.memref_slice %arg2[%5, %c0_i32_15] : memref<512x16xf32, #tpu.memory_space<any>> -> memref<16x16xf32, #tpu.memory_space<any>>
    %25 = tpu.memref_slice %arg14[%c0_i32_14] : memref<2x!tpu.dma_semaphore, #tpu.memory_space<semaphore_mem>> -> memref<1x!tpu.dma_semaphore, #tpu.memory_space<semaphore_mem>>
    %26 = tpu.memref_squeeze %25 : memref<1x!tpu.dma_semaphore, #tpu.memory_space<semaphore_mem>> -> memref<!tpu.dma_semaphore, #tpu.memory_space<semaphore_mem>>
    tpu.wait_dma2 semaphore(%26 : memref<!tpu.dma_semaphore, #tpu.memory_space<semaphore_mem>>) src(%24 : memref<16x16xf32, #tpu.memory_space<any>>) dst(%arg11 : memref<16x16xf32, #tpu.memory_space<vmem>>)
    %c1_i32_16 = arith.constant 1 : i32
    %c0_i32_17 = arith.constant 0 : i32
    %27 = tpu.memref_slice %arg2[%6, %c0_i32_17] : memref<512x16xf32, #tpu.memory_space<any>> -> memref<16x16xf32, #tpu.memory_space<any>>
    %28 = tpu.memref_slice %arg14[%c1_i32_16] : memref<2x!tpu.dma_semaphore, #tpu.memory_space<semaphore_mem>> -> memref<1x!tpu.dma_semaphore, #tpu.memory_space<semaphore_mem>>
    %29 = tpu.memref_squeeze %28 : memref<1x!tpu.dma_semaphore, #tpu.memory_space<semaphore_mem>> -> memref<!tpu.dma_semaphore, #tpu.memory_space<semaphore_mem>>
    tpu.wait_dma2 semaphore(%29 : memref<!tpu.dma_semaphore, #tpu.memory_space<semaphore_mem>>) src(%27 : memref<16x16xf32, #tpu.memory_space<any>>) dst(%arg12 : memref<16x16xf32, #tpu.memory_space<vmem>>)
    %c16_i32_18 = arith.constant 16 : i32
    %30 = arith.remsi %0, %c16_i32_18 : i32
    %c0_i32_19 = arith.constant 0 : i32
    %31 = arith.cmpi ne, %30, %c0_i32_19 : i32
    %32 = arith.extui %31 : i1 to i32
    %33 = arith.sitofp %32 : i32 to f32
    %c16_i32_20 = arith.constant 16 : i32
    %34 = arith.addi %0, %c16_i32_20 : i32
    %c16_i32_21 = arith.constant 16 : i32
    %35 = arith.remsi %34, %c16_i32_21 : i32
    %c0_i32_22 = arith.constant 0 : i32
    %36 = arith.cmpi ne, %35, %c0_i32_22 : i32
    %37 = arith.extui %36 : i1 to i32
    %38 = arith.sitofp %37 : i32 to f32
    %c0_23 = arith.constant 0 : index
    %c0_24 = arith.constant 0 : index
    %39 = vector.load %arg11[%c0_23, %c0_24] : memref<16x16xf32, #tpu.memory_space<vmem>>, vector<16x16xf32>
    %cst_25 = arith.constant dense<0.000000e+00> : vector<16x4xf32>
    %40 = tpu.matmul %39, %14, %cst_25 {dimension_numbers = #tpu.dot_dimension_numbers<[1], [0], [0], [1], [0, 0, 1, 1], [], []>} : vector<16x16xf32>, vector<16x4xf32>, vector<16x4xf32> -> vector<16x4xf32>
    %41 = vector.broadcast %15 : vector<1x4xf32> to vector<16x4xf32>
    %42 = arith.addf %40, %41 : vector<16x4xf32>
    %cst_26 = arith.constant 0.000000e+00 : f32
    %43 = vector.broadcast %cst_26 : f32 to vector<16x4xf32>
    %44 = arith.cmpf ogt, %42, %43 : vector<16x4xf32>
    %cst_27 = arith.constant 2.000000e-01 : f32
    %45 = vector.broadcast %cst_27 : f32 to vector<16x4xf32>
    %46 = arith.mulf %45, %42 : vector<16x4xf32>
    %47 = arith.select %44, %42, %46 : vector<16x4xi1>, vector<16x4xf32>
    %48 = vector.broadcast %33 : f32 to vector<16x4xf32>
    %49 = arith.mulf %47, %48 : vector<16x4xf32>
    %c0_28 = arith.constant 0 : index
    %c0_29 = arith.constant 0 : index
    %50 = vector.load %arg12[%c0_28, %c0_29] : memref<16x16xf32, #tpu.memory_space<vmem>>, vector<16x16xf32>
    %cst_30 = arith.constant dense<0.000000e+00> : vector<16x4xf32>
    %51 = tpu.matmul %50, %14, %cst_30 {dimension_numbers = #tpu.dot_dimension_numbers<[1], [0], [0], [1], [0, 0, 1, 1], [], []>} : vector<16x16xf32>, vector<16x4xf32>, vector<16x4xf32> -> vector<16x4xf32>
    %52 = vector.broadcast %15 : vector<1x4xf32> to vector<16x4xf32>
    %53 = arith.addf %51, %52 : vector<16x4xf32>
    %cst_31 = arith.constant 0.000000e+00 : f32
    %54 = vector.broadcast %cst_31 : f32 to vector<16x4xf32>
    %55 = arith.cmpf ogt, %53, %54 : vector<16x4xf32>
    %cst_32 = arith.constant 2.000000e-01 : f32
    %56 = vector.broadcast %cst_32 : f32 to vector<16x4xf32>
    %57 = arith.mulf %56, %53 : vector<16x4xf32>
    %58 = arith.select %55, %53, %57 : vector<16x4xi1>, vector<16x4xf32>
    %59 = vector.broadcast %38 : f32 to vector<16x4xf32>
    %60 = arith.mulf %58, %59 : vector<16x4xf32>
    %cst_33 = arith.constant 0.000000e+00 : f32
    %61 = vector.broadcast %cst_33 : f32 to vector<8x4xf32>
    %c0_34 = arith.constant 0 : index
    %c0_35 = arith.constant 0 : index
    %62 = vector.load %arg13[%c0_34, %c0_35] : memref<304x4xf32, #tpu.memory_space<vmem>>, vector<8x4xf32>
    tpu.vector_store %arg13[%c0_34, %c0_35], %61 {strides = array<i32>} : memref<304x4xf32, #tpu.memory_space<vmem>>, vector<8x4xf32>,
    %c8 = arith.constant 8 : index
    %c0_36 = arith.constant 0 : index
    %63 = vector.load %arg13[%c8, %c0_36] : memref<304x4xf32, #tpu.memory_space<vmem>>, vector<16x4xf32>
    tpu.vector_store %arg13[%c8, %c0_36], %49 {strides = array<i32>} : memref<304x4xf32, #tpu.memory_space<vmem>>, vector<16x4xf32>,
    %c24 = arith.constant 24 : index
    %c0_37 = arith.constant 0 : index
    %64 = vector.load %arg13[%c24, %c0_37] : memref<304x4xf32, #tpu.memory_space<vmem>>, vector<256x4xf32>
    tpu.vector_store %arg13[%c24, %c0_37], %23 {strides = array<i32>} : memref<304x4xf32, #tpu.memory_space<vmem>>, vector<256x4xf32>,
    %c280 = arith.constant 280 : index
    %c0_38 = arith.constant 0 : index
    %65 = vector.load %arg13[%c280, %c0_38] : memref<304x4xf32, #tpu.memory_space<vmem>>, vector<16x4xf32>
    tpu.vector_store %arg13[%c280, %c0_38], %60 {strides = array<i32>} : memref<304x4xf32, #tpu.memory_space<vmem>>, vector<16x4xf32>,
    %cst_39 = arith.constant 0.000000e+00 : f32
    %66 = vector.broadcast %cst_39 : f32 to vector<8x4xf32>
    %c296 = arith.constant 296 : index
    %c0_40 = arith.constant 0 : index
    %67 = vector.load %arg13[%c296, %c0_40] : memref<304x4xf32, #tpu.memory_space<vmem>>, vector<8x4xf32>
    tpu.vector_store %arg13[%c296, %c0_40], %66 {strides = array<i32>} : memref<304x4xf32, #tpu.memory_space<vmem>>, vector<8x4xf32>,
    %68 = tpu.iota {dimensions = array<i32: 0>} : vector<256x1xi32>
    %c16_i32_41 = arith.constant 16 : i32
    %69 = vector.broadcast %c16_i32_41 : i32 to vector<256x1xi32>
    %70 = arith.remsi %68, %69 : vector<256x1xi32>
    %c0_i32_42 = arith.constant 0 : i32
    %71 = vector.broadcast %c0_i32_42 : i32 to vector<256x1xi32>
    %72 = arith.cmpi ne, %70, %71 : vector<256x1xi32>
    %c15_i32 = arith.constant 15 : i32
    %73 = vector.broadcast %c15_i32 : i32 to vector<256x1xi32>
    %74 = arith.cmpi ne, %70, %73 : vector<256x1xi32>
    %c7 = arith.constant 7 : index
    %c0_43 = arith.constant 0 : index
    %75 = vector.load %arg13[%c7, %c0_43] : memref<304x4xf32, #tpu.memory_space<vmem>>, vector<256x4xf32>
    %cst_44 = arith.constant 0.000000e+00 : f32
    %76 = vector.shape_cast %72 : vector<256x1xi1> to vector<256x1xi1>
    %77 = vector.broadcast %76 : vector<256x1xi1> to vector<256x4xi1>
    %78 = vector.broadcast %cst_44 : f32 to vector<256x4xf32>
    %79 = arith.select %77, %75, %78 : vector<256x4xi1>, vector<256x4xf32>
    %c8_45 = arith.constant 8 : index
    %c0_46 = arith.constant 0 : index
    %80 = vector.load %arg13[%c8_45, %c0_46] : memref<304x4xf32, #tpu.memory_space<vmem>>, vector<256x4xf32>
    %c9 = arith.constant 9 : index
    %c0_47 = arith.constant 0 : index
    %81 = vector.load %arg13[%c9, %c0_47] : memref<304x4xf32, #tpu.memory_space<vmem>>, vector<256x4xf32>
    %cst_48 = arith.constant 0.000000e+00 : f32
    %82 = vector.shape_cast %74 : vector<256x1xi1> to vector<256x1xi1>
    %83 = vector.broadcast %82 : vector<256x1xi1> to vector<256x4xi1>
    %84 = vector.broadcast %cst_48 : f32 to vector<256x4xf32>
    %85 = arith.select %83, %81, %84 : vector<256x4xi1>, vector<256x4xf32>
    %c23 = arith.constant 23 : index
    %c0_49 = arith.constant 0 : index
    %86 = vector.load %arg13[%c23, %c0_49] : memref<304x4xf32, #tpu.memory_space<vmem>>, vector<256x4xf32>
    %cst_50 = arith.constant 0.000000e+00 : f32
    %87 = vector.shape_cast %72 : vector<256x1xi1> to vector<256x1xi1>
    %88 = vector.broadcast %87 : vector<256x1xi1> to vector<256x4xi1>
    %89 = vector.broadcast %cst_50 : f32 to vector<256x4xf32>
    %90 = arith.select %88, %86, %89 : vector<256x4xi1>, vector<256x4xf32>
    %c24_51 = arith.constant 24 : index
    %c0_52 = arith.constant 0 : index
    %91 = vector.load %arg13[%c24_51, %c0_52] : memref<304x4xf32, #tpu.memory_space<vmem>>, vector<256x4xf32>
    %c25 = arith.constant 25 : index
    %c0_53 = arith.constant 0 : index
    %92 = vector.load %arg13[%c25, %c0_53] : memref<304x4xf32, #tpu.memory_space<vmem>>, vector<256x4xf32>
    %cst_54 = arith.constant 0.000000e+00 : f32
    %93 = vector.shape_cast %74 : vector<256x1xi1> to vector<256x1xi1>
    %94 = vector.broadcast %93 : vector<256x1xi1> to vector<256x4xi1>
    %95 = vector.broadcast %cst_54 : f32 to vector<256x4xf32>
    %96 = arith.select %94, %92, %95 : vector<256x4xi1>, vector<256x4xf32>
    %c39 = arith.constant 39 : index
    %c0_55 = arith.constant 0 : index
    %97 = vector.load %arg13[%c39, %c0_55] : memref<304x4xf32, #tpu.memory_space<vmem>>, vector<256x4xf32>
    %cst_56 = arith.constant 0.000000e+00 : f32
    %98 = vector.shape_cast %72 : vector<256x1xi1> to vector<256x1xi1>
    %99 = vector.broadcast %98 : vector<256x1xi1> to vector<256x4xi1>
    %100 = vector.broadcast %cst_56 : f32 to vector<256x4xf32>
    %101 = arith.select %99, %97, %100 : vector<256x4xi1>, vector<256x4xf32>
    %c40 = arith.constant 40 : index
    %c0_57 = arith.constant 0 : index
    %102 = vector.load %arg13[%c40, %c0_57] : memref<304x4xf32, #tpu.memory_space<vmem>>, vector<256x4xf32>
    %c41 = arith.constant 41 : index
    %c0_58 = arith.constant 0 : index
    %103 = vector.load %arg13[%c41, %c0_58] : memref<304x4xf32, #tpu.memory_space<vmem>>, vector<256x4xf32>
    %cst_59 = arith.constant 0.000000e+00 : f32
    %104 = vector.shape_cast %74 : vector<256x1xi1> to vector<256x1xi1>
    %105 = vector.broadcast %104 : vector<256x1xi1> to vector<256x4xi1>
    %106 = vector.broadcast %cst_59 : f32 to vector<256x4xf32>
    %107 = arith.select %105, %103, %106 : vector<256x4xi1>, vector<256x4xf32>
    %108 = tpu.concatenate %79, %80, %85, %90, %91, %96, %101, %102, %107 in 1 : vector<256x4xf32>, vector<256x4xf32>, vector<256x4xf32>, vector<256x4xf32>, vector<256x4xf32>, vector<256x4xf32>, vector<256x4xf32>, vector<256x4xf32>, vector<256x4xf32> -> vector<256x36xf32>
    %c0_60 = arith.constant 0 : index
    %c0_61 = arith.constant 0 : index
    %109 = vector.load %arg5[%c0_60, %c0_61] : memref<36x4xf32, #tpu.memory_space<vmem>>, vector<36x4xf32>
    %cst_62 = arith.constant dense<0.000000e+00> : vector<256x4xf32>
    %110 = tpu.matmul %108, %109, %cst_62 {dimension_numbers = #tpu.dot_dimension_numbers<[1], [0], [0], [1], [0, 0, 1, 1], [], []>} : vector<256x36xf32>, vector<36x4xf32>, vector<256x4xf32> -> vector<256x4xf32>
    %c0_63 = arith.constant 0 : index
    %c0_64 = arith.constant 0 : index
    %111 = vector.load %arg6[%c0_63, %c0_64] : memref<1x4xf32, #tpu.memory_space<vmem>>, vector<1x4xf32>
    %112 = vector.broadcast %111 : vector<1x4xf32> to vector<256x4xf32>
    %113 = arith.addf %110, %112 : vector<256x4xf32>
    %cst_65 = arith.constant 0.000000e+00 : f32
    %114 = vector.broadcast %cst_65 : f32 to vector<256x4xf32>
    %115 = arith.cmpf ogt, %113, %114 : vector<256x4xf32>
    %cst_66 = arith.constant 2.000000e-01 : f32
    %116 = vector.broadcast %cst_66 : f32 to vector<256x4xf32>
    %117 = arith.mulf %116, %113 : vector<256x4xf32>
    %118 = arith.select %115, %113, %117 : vector<256x4xi1>, vector<256x4xf32>
    %c0_67 = arith.constant 0 : index
    %c0_68 = arith.constant 0 : index
    %119 = vector.load %arg7[%c0_67, %c0_68] : memref<4x16xf32, #tpu.memory_space<vmem>>, vector<4x16xf32>
    %cst_69 = arith.constant dense<0.000000e+00> : vector<256x16xf32>
    %120 = tpu.matmul %118, %119, %cst_69 {dimension_numbers = #tpu.dot_dimension_numbers<[1], [0], [0], [1], [0, 0, 1, 1], [], []>} : vector<256x4xf32>, vector<4x16xf32>, vector<256x16xf32> -> vector<256x16xf32>
    %121 = arith.addf %13, %120 : vector<256x16xf32>
    %c0_70 = arith.constant 0 : index
    %c0_71 = arith.constant 0 : index
    %122 = vector.load %arg8[%c0_70, %c0_71] : memref<1x16xf32, #tpu.memory_space<vmem>>, vector<1x16xf32>
    %123 = vector.broadcast %122 : vector<1x16xf32> to vector<256x16xf32>
    %124 = arith.addf %121, %123 : vector<256x16xf32>
    %c0_72 = arith.constant 0 : index
    %c0_73 = arith.constant 0 : index
    %125 = vector.load %arg9[%c0_72, %c0_73] : memref<256x16xf32, #tpu.memory_space<vmem>>, vector<256x16xf32>
    tpu.vector_store %arg9[%c0_72, %c0_73], %124 {strides = array<i32>} : memref<256x16xf32, #tpu.memory_space<vmem>>, vector<256x16xf32>,
    %c0_i32_74 = arith.constant 0 : i32
    %126 = arith.cmpi eq, %arg0, %c0_i32_74 : i32
    %127 = arith.extui %126 : i1 to i32
    %c0_i32_75 = arith.constant 0 : i32
    %128 = arith.cmpi ne, %127, %c0_i32_75 : i32
    scf.if %128 {
      %cst_82 = arith.constant 0.000000e+00 : f32
      %138 = vector.broadcast %cst_82 : f32 to vector<2x16xf32>
      %c0_83 = arith.constant 0 : index
      %c0_84 = arith.constant 0 : index
      %139 = vector.load %arg10[%c0_83, %c0_84] : memref<2x16xf32, #tpu.memory_space<vmem>>, vector<2x16xf32>
      tpu.vector_store %arg10[%c0_83, %c0_84], %138 {strides = array<i32>} : memref<2x16xf32, #tpu.memory_space<vmem>>, vector<2x16xf32>,
    } else {
    }
    %cst_76 = arith.constant dense<0.000000e+00> : vector<16xf32>
    %129 = vector.multi_reduction <add>, %124, %cst_76 [0] : vector<256x16xf32> to vector<16xf32>
    %130 = vector.shape_cast %129 : vector<16xf32> to vector<1x16xf32>
    %131 = arith.mulf %124, %124 : vector<256x16xf32>
    %cst_77 = arith.constant dense<0.000000e+00> : vector<16xf32>
    %132 = vector.multi_reduction <add>, %131, %cst_77 [0] : vector<256x16xf32> to vector<16xf32>
    %133 = vector.shape_cast %132 : vector<16xf32> to vector<1x16xf32>
    %134 = tpu.concatenate %130, %133 in 0 : vector<1x16xf32>, vector<1x16xf32> -> vector<2x16xf32>
    %c0_78 = arith.constant 0 : index
    %c0_79 = arith.constant 0 : index
    %135 = vector.load %arg10[%c0_78, %c0_79] : memref<2x16xf32, #tpu.memory_space<vmem>>, vector<2x16xf32>
    %136 = arith.addf %135, %134 : vector<2x16xf32>
    %c0_80 = arith.constant 0 : index
    %c0_81 = arith.constant 0 : index
    %137 = vector.load %arg10[%c0_80, %c0_81] : memref<2x16xf32, #tpu.memory_space<vmem>>, vector<2x16xf32>
    tpu.vector_store %arg10[%c0_80, %c0_81], %136 {strides = array<i32>} : memref<2x16xf32, #tpu.memory_space<vmem>>, vector<2x16xf32>,
    return
  }
  func.func @transform_0(%arg0: i32) -> (i32, i32) {
    %c0_i32 = arith.constant 0 : i32
    %c0_i32_0 = arith.constant 0 : i32
    return %arg0, %c0_i32 : i32, i32
  }
  func.func @transform_2(%arg0: i32) -> (i32, i32) {
    %c0_i32 = arith.constant 0 : i32
    %c0_i32_0 = arith.constant 0 : i32
    %c0_i32_1 = arith.constant 0 : i32
    return %c0_i32, %c0_i32_0 : i32, i32
  }
  func.func @transform_3(%arg0: i32) -> (i32, i32) {
    %c0_i32 = arith.constant 0 : i32
    %c0_i32_0 = arith.constant 0 : i32
    %c0_i32_1 = arith.constant 0 : i32
    return %c0_i32, %c0_i32_0 : i32, i32
  }
  func.func @transform_4(%arg0: i32) -> (i32, i32) {
    %c0_i32 = arith.constant 0 : i32
    %c0_i32_0 = arith.constant 0 : i32
    %c0_i32_1 = arith.constant 0 : i32
    return %c0_i32, %c0_i32_0 : i32, i32
  }
  func.func @transform_5(%arg0: i32) -> (i32, i32) {
    %c0_i32 = arith.constant 0 : i32
    %c0_i32_0 = arith.constant 0 : i32
    %c0_i32_1 = arith.constant 0 : i32
    return %c0_i32, %c0_i32_0 : i32, i32
  }
  func.func @transform_6(%arg0: i32) -> (i32, i32) {
    %c0_i32 = arith.constant 0 : i32
    %c0_i32_0 = arith.constant 0 : i32
    %c0_i32_1 = arith.constant 0 : i32
    return %c0_i32, %c0_i32_0 : i32, i32
  }
  func.func @transform_7(%arg0: i32) -> (i32, i32) {
    %c0_i32 = arith.constant 0 : i32
    %c0_i32_0 = arith.constant 0 : i32
    %c0_i32_1 = arith.constant 0 : i32
    return %c0_i32, %c0_i32_0 : i32, i32
  }
  func.func @transform_8(%arg0: i32) -> (i32, i32) {
    %c0_i32 = arith.constant 0 : i32
    %c0_i32_0 = arith.constant 0 : i32
    return %arg0, %c0_i32 : i32, i32
  }
  func.func @transform_9(%arg0: i32) -> (i32, i32) {
    %c0_i32 = arith.constant 0 : i32
    %c0_i32_0 = arith.constant 0 : i32
    %c0_i32_1 = arith.constant 0 : i32
    return %c0_i32, %c0_i32_0 : i32, i32
  }
}

</mosaic_0001>

<bundles_post_ra>
// kernel: tpu_custom_call.1
= control target key start
LH: loop header
LB: loop body
LE: loop exit
PB: predicated region body
PF: predicated region fallthrough
CT: control target
= control target key end

     0   :  { %15 = vsyncpa [#allocation7], 0  ;;  %s4822_s30 = smov 0   ;;  %s7269_s0 = inlined_call_operand.vmem [shape: f32[512,16], index: 0, kind: input, shape index: {}]   ;;  %s7270_s1 = inlined_call_operand.vmem [shape: f32[512,16], index: 1, kind: input, shape index: {}]   ;;  %s7271_s2 = inlined_call_operand.vmem [shape: f32[16,4], index: 2, kind: input, shape index: {}]   ;;  %s7272_s3 = inlined_call_operand.vmem [shape: f32[1,4], index: 3, kind: input, shape index: {}]   ;;  %s7273_s4 = inlined_call_operand.vmem [shape: f32[36,4], index: 4, kind: input, shape index: {}]   ;;  %s7274_s5 = inlined_call_operand.vmem [shape: f32[1,4], index: 5, kind: input, shape index: {}]   ;;  %s7275_s6 = inlined_call_operand.vmem [shape: f32[4,16], index: 6, kind: input, shape index: {}]   ;;  %s7276_s7 = inlined_call_operand.vmem [shape: f32[1,16], index: 7, kind: input, shape index: {}]   ;;  %s7277_s8 = inlined_call_operand.vmem [shape: f32[512,16], index: 8, kind: output, shape index: {0}]   ;;  %s7278_s9 = inlined_call_operand.hbm [shape: f32[2,16], index: 9, kind: output, shape index: {1}]  }
   0x1 LB: > { %s4828_s10 = sadd.s32 4294967295, %s4759_s30   ;;  %p4250_p0 = scmp.ge.s32.totalorder %s4759_s30, 1  ;;  %s4759_s30 = sphi %s4822_s30, %s21_s30  }
   0x2   : > { %p263_p1 = scmp.lt.s32.totalorder %s4759_s30, 3 }
   0x4   : > { %p264_p2 = pnand %p4250_p0, %p263_p1 }
   0x6   : > { %267 = sbr.rel (%p264_p2) target bundleno = 1491 (0x5d3), region = 48 }
   0xd   : > { %s4251_s11 = sshll.u32 %s4828_s10, 5  ;;  %s4834_s12 = sshll.u32 %s4828_s10, 4 }
   0xe   : > { %p298_p3 = scmp.lt.s32.totalorder %s4251_s11, 63  ;;  %s4256_s13 = sadd.s32 4294967295, %s4834_s12 }
   0xf   : > { %p311_p4 = scmp.gt.s32.totalorder %s4256_s13, 0  ;;  %s4838_s14 = sadd.s32 16, %s4834_s12 }
  0x10   : > { %s7959_s11 = smov (!%p298_p3, %s4251_s11), 63  ;;  %p314_p5 = scmp.lt.s32.totalorder %s4838_s14, 31 }
  0x11   : > { %s7961_s13 = smov (!%p311_p4, %s4256_s13), 0  ;;  %s4252_s15 = sshll.u32 %s7959_s11, 3 }
  0x12   : > { %s4844_s18 = scalar_lea.vmem %s7269_s0, %s4252_s15  ;;  %s4849_s21 = scalar_lea.vmem %s7277_s8, %s4252_s15 }
  0x13   : > { %s315_s22 = scalar_select %p314_p5, %s4838_s14, 31 }
  0x14   : > { %s4257_s23 = sshll.u32 %s7961_s13, 4 }
  0x15   : > { %s4258_s24 = sshll.u32 %s315_s22, 4  ;;  %s318_s27 = scalar_lea.vmem %s7270_s1, %s4257_s23 }
  0x16   : > { %v4855_v0 = vld [vmem:[%s318_s27] sm:$0xff]  ;;  %v4857_v1 = vld [vmem:[%s318_s27 + $0x8] sm:$0xff] }
  0x17   : > { %362 = vsyncadd [#allocation5], 256  ;;  %s363_s11 = scalar_lea.vmem %s7270_s1, %s4258_s24 }
  0x18   : > { %v4862_v2 = vld [vmem:[%s363_s11] sm:$0xff]  ;;  %v4864_v3 = vld [vmem:[%s363_s11 + $0x8] sm:$0xff] }
  0x19   : > { %408 = vsyncadd [#allocation5 + $0x1], 256  ;;  %v441_v4 = vld [vmem:[%s7271_s2] sm:$0xff]  ;;  %v442_v5 = vld [vmem:[%s7271_s2 + $0x8] sm:$0xff]  ;;  %vm7324_vm0 = vcmask 130048  }
  0x1a   : > { %v4872_v6 = vpack.c.bf16 %v442_v5, %v441_v4  ;;  %v4875_v7 = vld [vmem:[%s4844_s18] sm:$0xff]  ;;  %v4886_v9 = vld [vmem:[%s4844_s18 + $0x8] sm:$0xff]  ;;  %v4893_v11 = vld [vmem:[%s4844_s18 + $0x10] sm:$0xff] }
  0x1b   : > { %7330 = vst [vmem:[#allocation13_spill] sm:$0xff] %v4875_v7  ;;  %4489 = vmatprep.mubr.msk.f32.mxu0 %vm7324_vm0, %v4875_v7  ;;  %v4882_v8 = vld [vmem:[%s4844_s18 + $0xa0] sm:$0xff]  ;;  %7332 = vst [vmem:[#allocation15_spill] sm:$0xff] %v4886_v9  ;;  %v4890_v10 = vld [vmem:[%s4844_s18 + $0xa8] sm:$0xff] }
  0x1c   : > { %4660 = vmatprep.subr.bf16.mxu0 %v4872_v6  ;;  %4679 = vmatprep.subr.bf16.mxu1 %v4872_v6  ;;  %7331 = vst [vmem:[#allocation14_spill] sm:$0xff] %v4882_v8  ;;  %7333 = vst [vmem:[#allocation16_spill] sm:$0xff] %v4890_v10  ;;  %v4898_v12 = vld [vmem:[%s4844_s18 + $0xb0] sm:$0xff]  ;;  %v4907_v13 = vld [vmem:[%s4844_s18 + $0x18] sm:$0xff] }
  0x1d   : > { %4662 = vmatpush3.bf16.msra.mxu0 %v4872_v6  ;;  %4680 = vmatpush3.bf16.msra.mxu1 %v4872_v6  ;;  %7334 = vst [vmem:[#allocation17_spill] sm:$0xff] %v4893_v11  ;;  %7335 = vst [vmem:[#allocation18_spill] sm:$0xff] %v4898_v12  ;;  %v4912_v14 = vld [vmem:[%s4844_s18 + $0xb8] sm:$0xff]  ;;  %v4915_v15 = vld [vmem:[%s4844_s18 + $0x20] sm:$0xff] }
  0x1e   : > { %4519 = vmatprep.mubr.msk.f32.mxu1 %vm7324_vm0, %v4882_v8  ;;  %7336 = vst [vmem:[#allocation19_spill] sm:$0xff] %v4907_v13  ;;  %7337 = vst [vmem:[#allocation20_spill] sm:$0xff] %v4912_v14  ;;  %v4918_v16 = vld [vmem:[%s4844_s18 + $0xc0] sm:$0xff]  ;;  %v4927_v17 = vld [vmem:[%s4844_s18 + $0x28] sm:$0xff] }
  0x1f   : > { %7338 = vst [vmem:[#allocation21_spill] sm:$0xff] %v4915_v15  ;;  %7339 = vst [vmem:[#allocation22_spill] sm:$0xff] %v4918_v16  ;;  %v4932_v18 = vld [vmem:[%s4844_s18 + $0xc8] sm:$0xff]  ;;  %v4935_v19 = vld [vmem:[%s4844_s18 + $0x30] sm:$0xff] }
  0x20   : > { %4490 = vmatmul.mubr.msk.f32.vlgmr.msra.gmra.mrb[0].mxu0 %vm7324_vm0, %v4886_v9  ;;  %4520 = vmatmul.mubr.msk.f32.vlgmr.msra.gmra.mrb[0].mxu1 %vm7324_vm0, %v4890_v10  ;;  %7340 = vst [vmem:[#allocation23_spill] sm:$0xff] %v4927_v17  ;;  %7341 = vst [vmem:[#allocation24_spill] sm:$0xff] %v4932_v18  ;;  %v4938_v20 = vld [vmem:[%s4844_s18 + $0xd0] sm:$0xff]  ;;  %v4947_v21 = vld [vmem:[%s4844_s18 + $0x38] sm:$0xff] }
  0x21   : > { %4492 = vmatprep.mubr.msk.f32.mxu0 %vm7324_vm0, %v4893_v11  ;;  %4522 = vmatprep.mubr.msk.f32.mxu1 %vm7324_vm0, %v4898_v12  ;;  %7342 = vst [vmem:[#allocation25_spill] sm:$0xff] %v4935_v19  ;;  %7343 = vst [vmem:[#allocation26_spill] sm:$0xff] %v4938_v20  ;;  %v4952_v22 = vld [vmem:[%s4844_s18 + $0xd8] sm:$0xff]  ;;  %v4955_v23 = vld [vmem:[%s4844_s18 + $0x40] sm:$0xff] }
  0x22   : > { %7344 = vst [vmem:[#allocation27_spill] sm:$0xff] %v4947_v21  ;;  %7345 = vst [vmem:[#allocation28_spill] sm:$0xff] %v4952_v22  ;;  %v4958_v24 = vld [vmem:[%s4844_s18 + $0xe0] sm:$0xff]  ;;  %v4967_v25 = vld [vmem:[%s4844_s18 + $0x48] sm:$0xff] }
  0x23   : > { %7346 = vst [vmem:[#allocation29_spill] sm:$0xff] %v4955_v23  ;;  %7347 = vst [vmem:[#allocation30_spill] sm:$0xff] %v4958_v24  ;;  %v4972_v26 = vld [vmem:[%s4844_s18 + $0xe8] sm:$0xff]  ;;  %v4975_v27 = vld [vmem:[%s4844_s18 + $0x50] sm:$0xff] }
  0x24   : > { %4493 = vmatmul.mubr.msk.f32.gmra.mrb[2].mxu0 %vm7324_vm0, %v4907_v13  ;;  %4523 = vmatmul.mubr.msk.f32.gmra.mrb[2].mxu1 %vm7324_vm0, %v4912_v14  ;;  %7348 = vst [vmem:[#allocation31_spill] sm:$0xff] %v4967_v25  ;;  %7349 = vst [vmem:[#allocation32_spill] sm:$0xff] %v4972_v26  ;;  %v4978_v28 = vld [vmem:[%s4844_s18 + $0xf0] sm:$0xff]  ;;  %v4987_v29 = vld [vmem:[%s4844_s18 + $0x58] sm:$0xff] }
  0x25   : > { %4495 = vmatprep.mubr.msk.f32.mxu0 %vm7324_vm0, %v4915_v15  ;;  %4525 = vmatprep.mubr.msk.f32.mxu1 %vm7324_vm0, %v4918_v16  ;;  %7350 = vst [vmem:[#allocation33_spill] sm:$0xff] %v4975_v27  ;;  %7351 = vst [vmem:[#allocation34_spill] sm:$0xff] %v4978_v28  ;;  %v4992_v30 = vld [vmem:[%s4844_s18 + $0xf8] sm:$0xff]  ;;  %v4995_v31 = vld [vmem:[%s4844_s18 + $0x60] sm:$0xff] }
  0x26   : > { %7352 = vst [vmem:[#allocation35_spill] sm:$0xff] %v4987_v29  ;;  %7353 = vst [vmem:[#allocation36_spill] sm:$0xff] %v4992_v30  ;;  %v5004_v32 = vld [vmem:[%s4844_s18 + $0x68] sm:$0xff]  ;;  %v5007_v33 = vld [vmem:[%s4844_s18 + $0x70] sm:$0xff] }
  0x27   : > { %7354 = vst [vmem:[#allocation37_spill] sm:$0xff] %v4995_v31  ;;  %7355 = vst [vmem:[#allocation38_spill] sm:$0xff] %v5004_v32  ;;  %v5014_v34 = vld [vmem:[%s4844_s18 + $0x78] sm:$0xff]  ;;  %v5017_v35 = vld [vmem:[%s4844_s18 + $0x80] sm:$0xff] }
  0x28   : > { %4496 = vmatmul.mubr.msk.f32.gmra.mrb[4].mxu0 %vm7324_vm0, %v4927_v17  ;;  %4526 = vmatmul.mubr.msk.f32.gmra.mrb[4].mxu1 %vm7324_vm0, %v4932_v18  ;;  %7356 = vst [vmem:[#allocation39_spill] sm:$0xff] %v5007_v33  ;;  %7357 = vst [vmem:[#allocation40_spill] sm:$0xff] %v5014_v34  ;;  %v5024_v36 = vld [vmem:[%s4844_s18 + $0x88] sm:$0xff]  ;;  %v5027_v37 = vld [vmem:[%s4844_s18 + $0x90] sm:$0xff] }
  0x29   : > { %4498 = vmatprep.mubr.msk.f32.mxu0 %vm7324_vm0, %v4935_v19  ;;  %4528 = vmatprep.mubr.msk.f32.mxu1 %vm7324_vm0, %v4938_v20  ;;  %7358 = vst [vmem:[#allocation41_spill] sm:$0xff] %v5017_v35  ;;  %7359 = vst [vmem:[#allocation42_spill] sm:$0xff] %v5024_v36  ;;  %v5034_v38 = vld [vmem:[%s4844_s18 + $0x98] sm:$0xff]  ;;  %v5041_v39 = vld [vmem:[%s7272_s3] ss:$0 sm:$0xff] }
  0x2a   : > { %7360 = vst [vmem:[#allocation43_spill] sm:$0xff] %v5027_v37  ;;  %7361 = vst [vmem:[#allocation44_spill] sm:$0xff] %v5034_v38 }
  0x2c   : > { %4499 = vmatmul.mubr.msk.f32.gmra.mrb[6].mxu0 %vm7324_vm0, %v4947_v21  ;;  %4529 = vmatmul.mubr.msk.f32.gmra.mrb[6].mxu1 %vm7324_vm0, %v4952_v22 }
  0x2d   : > { %4501 = vmatprep.mubr.msk.f32.mxu0 %vm7324_vm0, %v4955_v23  ;;  %4531 = vmatprep.mubr.msk.f32.mxu1 %vm7324_vm0, %v4958_v24 }
  0x30   : > { %4502 = vmatmul.mubr.msk.f32.gmra.mrb[8].mxu0 %vm7324_vm0, %v4967_v25  ;;  %4532 = vmatmul.mubr.msk.f32.gmra.mrb[8].mxu1 %vm7324_vm0, %v4972_v26 }
  0x31   : > { %4504 = vmatprep.mubr.msk.f32.mxu0 %vm7324_vm0, %v4975_v27  ;;  %4534 = vmatprep.mubr.msk.f32.mxu1 %vm7324_vm0, %v4978_v28 }
  0x34   : > { %4505 = vmatmul.mubr.msk.f32.gmra.mrb[10].mxu0 %vm7324_vm0, %v4987_v29  ;;  %4535 = vmatmul.mubr.msk.f32.gmra.mrb[10].mxu1 %vm7324_vm0, %v4992_v30 }
  0x35   : > { %4507 = vmatprep.mubr.msk.f32.mxu0 %vm7324_vm0, %v4995_v31 }
  0x38   : > { %4508 = vmatmul.mubr.msk.f32.gmra.mrb[12].mxu0 %vm7324_vm0, %v5004_v32 }
  0x39   : > { %4510 = vmatprep.mubr.msk.f32.mxu0 %vm7324_vm0, %v5007_v33 }
  0x3c   : > { %4511 = vmatmul.mubr.msk.f32.gmra.mrb[14].mxu0 %vm7324_vm0, %v5014_v34 }
  0x3d   : > { %4513 = vmatprep.mubr.msk.f32.mxu0 %vm7324_vm0, %v5017_v35 }
  0x40   : > { %4514 = vmatmul.mubr.msk.f32.gmra.mrb[16].mxu0 %vm7324_vm0, %v5024_v36 }
  0x41   : > { %4516 = vmatprep.mubr.msk.f32.mxu0 %vm7324_vm0, %v5027_v37 }
  0x44   : > { %4517 = vmatmul.mubr.msk.f32.gmra.mrb[18].mxu0 %vm7324_vm0, %v5034_v38 }
  0xf3   : > { %v4491_v40 = vpop.f32.mrb[0].mxu0  ;;  %v4521_v41 = vpop.f32.mrb[0].mxu1 }
  0xf4   : > { %v619_v42 = vadd.f32 %v4491_v40, %v5041_v39  ;;  %v613_v43 = vpop.f32.mrb[1].mxu0  ;;  %v719_v44 = vadd.f32 %v4521_v41, %v5041_v39  ;;  %v713_v45 = vpop.f32.mrb[1].mxu1 }
  0xf5   : > { %v614_v46 = vadd.f32 %v5041_v39, %v613_v43  ;;  %v714_v47 = vadd.f32 %v5041_v39, %v713_v45 }
  0xf6   : > { %vm773_vm1 = vcmp.gt.f32.partialorder %v619_v42, 0.0  ;;  %v805_v48 = vmul.f32 0.2, %v619_v42  ;;  %vm793_vm2 = vcmp.gt.f32.partialorder %v719_v44, 0.0  ;;  %v825_v49 = vmul.f32 0.2, %v719_v44 }
  0xf7   : > { %vm772_vm3 = vcmp.gt.f32.partialorder %v614_v46, 0.0  ;;  %v804_v50 = vmul.f32 0.2, %v614_v46  ;;  %v4494_v51 = vpop.f32.mrb[2].mxu0  ;;  %vm792_vm4 = vcmp.gt.f32.partialorder %v714_v47, 0.0  ;;  %v4524_v52 = vpop.f32.mrb[2].mxu1 }
  0xf8   : > { %v5047_v53 = vsel %vm773_vm1, %v619_v42, %v805_v48  ;;  %v629_v54 = vadd.f32 %v4494_v51, %v5041_v39  ;;  %v623_v55 = vpop.f32.mrb[3].mxu0  ;;  %v5050_v56 = vsel %vm793_vm2, %v719_v44, %v825_v49  ;;  %v824_v57 = vmul.f32 0.2, %v714_v47  ;;  %v723_v58 = vpop.f32.mrb[3].mxu1 }
  0xf9   : > { %v5052_v59 = vsel %vm772_vm3, %v614_v46, %v804_v50  ;;  %v624_v60 = vadd.f32 %v5041_v39, %v623_v55  ;;  %v729_v61 = vadd.f32 %v4524_v52, %v5041_v39  ;;  %v724_v62 = vadd.f32 %v5041_v39, %v723_v58 }
  0xfa   : > { %vm775_vm5 = vcmp.gt.f32.partialorder %v629_v54, 0.0  ;;  %v807_v63 = vmul.f32 0.2, %v629_v54  ;;  %v5057_v4 = vsel %vm792_vm4, %v714_v47, %v824_v57 }
  0xfb   : > { %vm774_vm6 = vcmp.gt.f32.partialorder %v624_v60, 0.0  ;;  %v806_v5 = vmul.f32 0.2, %v624_v60  ;;  %v4497_v40 = vpop.f32.mrb[4].mxu0  ;;  %vm795_vm7 = vcmp.gt.f32.partialorder %v729_v61, 0.0  ;;  %vm794_vm8 = vcmp.gt.f32.partialorder %v724_v62, 0.0 }
  0xfc   : > { %v5059_v41 = vsel %vm775_vm5, %v629_v54, %v807_v63  ;;  %v639_v42 = vadd.f32 %v4497_v40, %v5041_v39  ;;  %v633_v43 = vpop.f32.mrb[5].mxu0  ;;  %v827_v44 = vmul.f32 0.2, %v729_v61  ;;  %v826_v45 = vmul.f32 0.2, %v724_v62  ;;  %v4527_v46 = vpop.f32.mrb[4].mxu1 }
  0xfd   : > { %v5062_v48 = vsel %vm774_vm6, %v624_v60, %v806_v5  ;;  %v634_v49 = vadd.f32 %v5041_v39, %v633_v43  ;;  %v739_v47 = vadd.f32 %v4527_v46, %v5041_v39  ;;  %v733_v50 = vpop.f32.mrb[5].mxu1 }
  0xfe   : > { %vm777_vm9 = vcmp.gt.f32.partialorder %v639_v42, 0.0  ;;  %v809_v51 = vmul.f32 0.2, %v639_v42  ;;  %v5066_v52 = vsel %vm795_vm7, %v729_v61, %v827_v44  ;;  %v5068_v55 = vsel %vm794_vm8, %v724_v62, %v826_v45 }
  0xff   : > { %vm776_vm10 = vcmp.gt.f32.partialorder %v634_v49, 0.0  ;;  %v808_v54 = vmul.f32 0.2, %v634_v49  ;;  %v4500_v57 = vpop.f32.mrb[6].mxu0  ;;  %vm797_vm11 = vcmp.gt.f32.partialorder %v739_v47, 0.0  ;;  %v734_v58 = vadd.f32 %v5041_v39, %v733_v50  ;;  %v4530_v63 = vpop.f32.mrb[6].mxu1 }
 0x100   : > { %v5071_v60 = vsel %vm777_vm9, %v639_v42, %v809_v51  ;;  %v649_v5 = vadd.f32 %v4500_v57, %v5041_v39  ;;  %v643_v40 = vpop.f32.mrb[7].mxu0  ;;  %v829_v43 = vmul.f32 0.2, %v739_v47  ;;  %v749_v46 = vadd.f32 %v4530_v63, %v5041_v39  ;;  %v743_v28 = vpop.f32.mrb[7].mxu1 }
 0x101   : > { %v5075_v61 = vsel %vm776_vm10, %v634_v49, %v808_v54  ;;  %v644_v62 = vadd.f32 %v5041_v39, %v643_v40  ;;  %vm796_vm12 = vcmp.gt.f32.partialorder %v734_v58, 0.0  ;;  %v828_v44 = vmul.f32 0.2, %v734_v58 }
 0x102   : > { %vm779_vm13 = vcmp.gt.f32.partialorder %v649_v5, 0.0  ;;  %v811_v45 = vmul.f32 0.2, %v649_v5  ;;  %v5078_v30 = vsel %vm797_vm11, %v739_v47, %v829_v43  ;;  %vm799_vm14 = vcmp.gt.f32.partialorder %v749_v46, 0.0 }
 0x103   : > { %vm778_vm15 = vcmp.gt.f32.partialorder %v644_v62, 0.0  ;;  %v810_v42 = vmul.f32 0.2, %v644_v62  ;;  %v4503_v50 = vpop.f32.mrb[8].mxu0  ;;  %v5080_v51 = vsel %vm796_vm12, %v734_v58, %v828_v44  ;;  %v831_v57 = vmul.f32 0.2, %v749_v46 }
 0x104   : > { %v5082_v24 = vsel %vm779_vm13, %v649_v5, %v811_v45  ;;  %v659_v49 = vadd.f32 %v4503_v50, %v5041_v39  ;;  %v653_v54 = vpop.f32.mrb[9].mxu0  ;;  %v744_v63 = vadd.f32 %v5041_v39, %v743_v28  ;;  %v4533_v40 = vpop.f32.mrb[8].mxu1 }
 0x105   : > { %v5086_v26 = vsel %vm778_vm15, %v644_v62, %v810_v42  ;;  %v654_v47 = vadd.f32 %v5041_v39, %v653_v54  ;;  %v5089_v43 = vsel %vm799_vm14, %v749_v46, %v831_v57  ;;  %v759_v20 = vadd.f32 %v4533_v40, %v5041_v39  ;;  %v753_v22 = vpop.f32.mrb[9].mxu1 }
 0x106   : > { %vm781_vm1 = vcmp.gt.f32.partialorder %v659_v49, 0.0  ;;  %v813_v58 = vmul.f32 0.2, %v659_v49  ;;  %vm798_vm2 = vcmp.gt.f32.partialorder %v744_v63, 0.0  ;;  %v830_v5 = vmul.f32 0.2, %v744_v63 }
 0x107   : > { %vm780_vm3 = vcmp.gt.f32.partialorder %v654_v47, 0.0  ;;  %v812_v44 = vmul.f32 0.2, %v654_v47  ;;  %v4506_v45 = vpop.f32.mrb[10].mxu0  ;;  %vm801_vm4 = vcmp.gt.f32.partialorder %v759_v20, 0.0  ;;  %v754_v28 = vadd.f32 %v5041_v39, %v753_v22  ;;  %v4536_v50 = vpop.f32.mrb[10].mxu1 }
 0x108   : > { %v5093_v62 = vsel %vm781_vm1, %v659_v49, %v813_v58  ;;  %v669_v42 = vadd.f32 %v4506_v45, %v5041_v39  ;;  %v663_v46 = vpop.f32.mrb[11].mxu0  ;;  %v5096_v57 = vsel %vm798_vm2, %v744_v63, %v830_v5  ;;  %v833_v54 = vmul.f32 0.2, %v759_v20  ;;  %v763_v40 = vpop.f32.mrb[11].mxu1 }
 0x109   : > { %v5098_v16 = vsel %vm780_vm3, %v654_v47, %v812_v44  ;;  %v664_v18 = vadd.f32 %v5041_v39, %v663_v46  ;;  %vm800_vm5 = vcmp.gt.f32.partialorder %v754_v28, 0.0  ;;  %v832_v12 = vmul.f32 0.2, %v754_v28 }
 0x10a   : > { %vm783_vm6 = vcmp.gt.f32.partialorder %v669_v42, 0.0  ;;  %v815_v14 = vmul.f32 0.2, %v669_v42  ;;  %v5101_v8 = vsel %vm801_vm4, %v759_v20, %v833_v54  ;;  %v769_v22 = vadd.f32 %v4536_v50, %v5041_v39 }
 0x10b   : > { %vm782_vm7 = vcmp.gt.f32.partialorder %v664_v18, 0.0  ;;  %v814_v49 = vmul.f32 0.2, %v664_v18  ;;  %v4509_v58 = vpop.f32.mrb[12].mxu0  ;;  %v5104_v45 = vsel %vm800_vm5, %v754_v28, %v832_v12  ;;  %v764_v63 = vadd.f32 %v5041_v39, %v763_v40 }
 0x10c   : > { %v5107_v5 = vsel %vm783_vm6, %v669_v42, %v815_v14  ;;  %v679_v47 = vadd.f32 %v4509_v58, %v5041_v39  ;;  %v673_v44 = vpop.f32.mrb[13].mxu0  ;;  %vm803_vm8 = vcmp.gt.f32.partialorder %v769_v22, 0.0  ;;  %v835_v46 = vmul.f32 0.2, %v769_v22 }
 0x10d   : > { %v846_v10 = vsel %vm782_vm7, %v664_v18, %v814_v49  ;;  %v674_v20 = vadd.f32 %v5041_v39, %v673_v44  ;;  %vm802_vm9 = vcmp.gt.f32.partialorder %v764_v63, 0.0  ;;  %v834_v54 = vmul.f32 0.2, %v764_v63 }
 0x10e   : > { %vm785_vm10 = vcmp.gt.f32.partialorder %v679_v47, 0.0  ;;  %v817_v50 = vmul.f32 0.2, %v679_v47  ;;  %v5111_v37 = vsel %vm803_vm8, %v769_v22, %v835_v46 }
 0x10f   : > { %vm784_vm11 = vcmp.gt.f32.partialorder %v674_v20, 0.0  ;;  %v816_v12 = vmul.f32 0.2, %v674_v20  ;;  %v4512_v28 = vpop.f32.mrb[14].mxu0  ;;  %v5113_v40 = vsel %vm802_vm9, %v764_v63, %v834_v54 }
 0x110   : > { %v849_v14 = vsel %vm785_vm10, %v679_v47, %v817_v50  ;;  %v689_v42 = vadd.f32 %v4512_v28, %v5041_v39  ;;  %v683_v58 = vpop.f32.mrb[15].mxu0 }
 0x111   : > { %v848_v38 = vsel %vm784_vm11, %v674_v20, %v816_v12  ;;  %v684_v18 = vadd.f32 %v5041_v39, %v683_v58 }
 0x112   : > { %vm787_vm12 = vcmp.gt.f32.partialorder %v689_v42, 0.0  ;;  %v819_v49 = vmul.f32 0.2, %v689_v42 }
 0x113   : > { %vm786_vm13 = vcmp.gt.f32.partialorder %v684_v18, 0.0  ;;  %v818_v44 = vmul.f32 0.2, %v684_v18  ;;  %v4515_v35 = vpop.f32.mrb[16].mxu0 }
 0x114   : > { %v851_v36 = vsel %vm787_vm12, %v689_v42, %v819_v49  ;;  %v699_v22 = vadd.f32 %v4515_v35, %v5041_v39  ;;  %v693_v46 = vpop.f32.mrb[17].mxu0 }
 0x115   : > { %v850_v33 = vsel %vm786_vm13, %v684_v18, %v818_v44  ;;  %v694_v63 = vadd.f32 %v5041_v39, %v693_v46 }
 0x116   : > { %vm789_vm14 = vcmp.gt.f32.partialorder %v699_v22, 0.0  ;;  %v821_v47 = vmul.f32 0.2, %v699_v22 }
 0x117   : > { %vm788_vm15 = vcmp.gt.f32.partialorder %v694_v63, 0.0  ;;  %v820_v54 = vmul.f32 0.2, %v694_v63  ;;  %v4518_v50 = vpop.f32.mrb[18].mxu0 }
 0x118   : > { %v853_v20 = vsel %vm789_vm14, %v699_v22, %v821_v47  ;;  %v709_v12 = vadd.f32 %v4518_v50, %v5041_v39  ;;  %v703_v28 = vpop.f32.mrb[19].mxu0 }
 0x119   : > { %v852_v58 = vsel %vm788_vm15, %v694_v63, %v820_v54  ;;  %v704_v34 = vadd.f32 %v5041_v39, %v703_v28 }
 0x11a   : > { %vm791_vm1 = vcmp.gt.f32.partialorder %v709_v12, 0.0  ;;  %v823_v42 = vmul.f32 0.2, %v709_v12 }
 0x11b   : > { %vm790_vm2 = vcmp.gt.f32.partialorder %v704_v34, 0.0  ;;  %v822_v35 = vmul.f32 0.2, %v704_v34 }
 0x11c   : > { %v855_v49 = vsel %vm791_vm1, %v709_v12, %v823_v42 }
 0x11d   : > { %v854_v18 = vsel %vm790_vm2, %v704_v34, %v822_v35 }
 0x11e   : > { %4749 = dma.done.wait [#allocation5], 256 }
 0x11f   : > { %4750 = vsyncadd [#allocation5], 4294967040 }
 0x120   : > { %4751 = dma.done.wait [#allocation5 + $0x1], 256 }
 0x121   : > { %4752 = vsyncadd [#allocation5 + $0x1], 4294967040  ;;  %4664 = vmatprep.subr.bf16.mxu1 %v4872_v6  ;;  %4541 = vmatprep.mubr.msk.f32.mxu1 %vm7324_vm0, %v4855_v0  ;;  %vm7325_vm3 = vcmask 31744   ;;  %v1114_v44 = vlaneseq  ;;  %s4761_s18 = smov 16   ;;  %s4762_s22 = smov 12   ;;  %v7394_v21 = vmov 0 }
 0x122   : > { %4666 = vmatpush3.bf16.msra.mxu1 %v4872_v6  ;;  %1079 = vst.msk [vmem:[#allocation4 + $0x18] sm:$0xff] %vm7325_vm3, %v5052_v59  ;;  %1080 = vst.msk [vmem:[#allocation4 + $0x20] sm:$0xff] %vm7325_vm3, %v5047_v53  ;;  %s4763_s23 = smov 4   ;;  %s4764_s24 = smov 20  }
 0x123   : > { %1081 = vst.msk [vmem:[#allocation4 + $0x28] sm:$0xff] %vm7325_vm3, %v5062_v48  ;;  %1082 = vst.msk [vmem:[#allocation4 + $0x30] sm:$0xff] %vm7325_vm3, %v5059_v41  ;;  %4668 = vmatprep.subr.bf16.mxu1 %v4872_v6  ;;  %v5181_v0 = vshrl.u32 %v1114_v44, 7  ;;  %s4765_s25 = smov 8   ;;  %s4766_s26 = smov 24  }
 0x124   : > { %1083 = vst.msk [vmem:[#allocation4 + $0x38] sm:$0xff] %vm7325_vm3, %v5075_v61  ;;  %1084 = vst.msk [vmem:[#allocation4 + $0x40] sm:$0xff] %vm7325_vm3, %v5071_v60  ;;  %s4767_s27 = smov 28   ;;  %s4768_s28 = smov 32  }
 0x125   : > { %1085 = vst.msk [vmem:[#allocation4 + $0x48] sm:$0xff] %vm7325_vm3, %v5086_v26  ;;  %1086 = vst.msk [vmem:[#allocation4 + $0x50] sm:$0xff] %vm7325_vm3, %v5082_v24  ;;  %4542 = vmatmul.mubr.msk.f32.vlgmr.msra.gmra.mrb[12].mxu1 %vm7324_vm0, %v4857_v1  ;;  %v1117_v34 = vadd.s32 16, %v5181_v0  ;;  %v1121_v22 = vadd.s32 48, %v5181_v0  ;;  %v1127_v32 = vadd.s32 96, %v5181_v0  ;;  %s874_s29 = ssub.s32 0, %s4834_s12 }
 0x126   : > { %1087 = vst.msk [vmem:[#allocation4 + $0x58] sm:$0xff] %vm7325_vm3, %v5098_v16  ;;  %1088 = vst.msk [vmem:[#allocation4 + $0x60] sm:$0xff] %vm7325_vm3, %v5093_v62  ;;  %4670 = vmatpush3.bf16.msra.mxu1 %v4872_v6  ;;  %4548 = vmatprep.mubr.msk.f32.mxu1 %vm7324_vm0, %v4862_v2  ;;  %v1118_v6 = vadd.s32 24, %v5181_v0  ;;  %s4292_s11 = smin.u32 %s4834_s12, %s874_s29  ;;  %p873_p6 = scmp.lt.s32.totalorder %s4834_s12, 0 }
 0x127   : > { %1089 = vst.msk [vmem:[#allocation4 + $0x68] sm:$0xff] %vm7325_vm3, %v846_v10  ;;  %1090 = vst.msk [vmem:[#allocation4 + $0x70] sm:$0xff] %vm7325_vm3, %v5107_v5  ;;  %v1165_v59 = vand.u32 15, %v1117_v34  ;;  %v1120_v5 = vadd.s32 40, %v5181_v0  ;;  %v1193_v54 = vand.u32 15, %v1121_v22  ;;  %s876_s13 = sand.u32 15, %s4292_s11  }
 0x128   : > { %1091 = vst.msk [vmem:[#allocation4 + $0x78] sm:$0xff] %vm7325_vm3, %v848_v38  ;;  %1092 = vst.msk [vmem:[#allocation4 + $0x80] sm:$0xff] %vm7325_vm3, %v849_v14  ;;  %s877_s15 = ssub.s32 0, %s876_s13  ;;  %s883_s19 = ssub.s32 0, %s4838_s14 }
 0x129   : > { %1093 = vst.msk [vmem:[#allocation4 + $0x88] sm:$0xff] %vm7325_vm3, %v850_v33  ;;  %1094 = vst.msk [vmem:[#allocation4 + $0x90] sm:$0xff] %vm7325_vm3, %v851_v36  ;;  %v1565_v10 = vld [vmem:[#allocation4 + $0x18] sm:$0xff]  ;;  %4549 = vmatmul.mubr.msk.f32.vlgmr.msra.gmra.mrb[14].mxu1 %vm7324_vm0, %v4864_v3  ;;  %v1566_v24 = vld [vmem:[#allocation4 + $0x20] sm:$0xff]  ;;  %v1151_v33 = vand.u32 15, %v5181_v0  ;;  %v1119_v36 = vadd.s32 32, %v5181_v0  ;;  %s7963_s15 = smov (!%p873_p6, %s877_s15), %s876_s13  ;;  %s4293_s20 = smin.u32 %s883_s19, %s4838_s14 }
 0x12a   : > { %1095 = vst.msk [vmem:[#allocation4 + $0x98] sm:$0xff] %vm7325_vm3, %v852_v58  ;;  %1096 = vst.msk [vmem:[#allocation4 + $0xa0] sm:$0xff] %vm7325_vm3, %v853_v20  ;;  %v1438_v16 = vld [vmem:[#allocation4 + $0x1f] sm:$0xff]  ;;  %2249 = vrot.lane.b32.xlu0 %v1565_v10, %s4761_s18  ;;  %vm5224_vm7 = vcmp.ne.s32.totalorder %v1165_v59, 0  ;;  %v5237_v61 = vld [vmem:[#allocation4 + $0x2f] sm:$0xff]  ;;  %v1186_v14 = vand.u32 15, %v1120_v5 }
 0x12b   : > { %1097 = vst.msk [vmem:[#allocation4 + $0xa8] sm:$0xff] %vm7325_vm3, %v854_v18  ;;  %1098 = vst.msk [vmem:[#allocation4 + $0xb0] sm:$0xff] %vm7325_vm3, %v855_v49  ;;  %2153 = vrot.lane.b32.xlu1 %v1438_v16, %s4762_s22  ;;  %v1597_v2 = vld [vmem:[#allocation4 + $0x19] sm:$0xff]  ;;  %v1598_v3 = vld [vmem:[#allocation4 + $0x21] sm:$0xff]  ;;  %vm5211_vm6 = vcmp.ne.s32.totalorder %v1151_v33, 0  ;;  %vm5275_vm10 = vcmp.ne.s32.totalorder %v1193_v54, 0 }
 0x12c   : > { %1099 = vst.msk [vmem:[#allocation4 + $0xb8] sm:$0xff] %vm7325_vm3, %v5057_v4  ;;  %1100 = vst.msk [vmem:[#allocation4 + $0xc0] sm:$0xff] %vm7325_vm3, %v5050_v56  ;;  %v5215_v56 = vld [vmem:[#allocation4 + $0x27] sm:$0xff]  ;;  %v1179_v4 = vand.u32 15, %v1119_v36  ;;  %v1568_v62 = vld [vmem:[#allocation4 + $0x30] sm:$0xff]  ;;  %vm5262_vm9 = vcmp.ne.s32.totalorder %v1186_v14, 15 }
 0x12d   : > { %1101 = vst.msk [vmem:[#allocation4 + $0xc8] sm:$0xff] %vm7325_vm3, %v5068_v55  ;;  %1102 = vst.msk [vmem:[#allocation4 + $0xd0] sm:$0xff] %vm7325_vm3, %v5066_v52  ;;  %v1795_v48 = vsel %vm5211_vm6, %v5215_v56, 0.0  ;;  %v5266_v47 = vld [vmem:[#allocation4 + $0x37] sm:$0xff]  ;;  %v1442_v58 = vld [vmem:[#allocation4 + $0x3f] sm:$0xff]  ;;  %v4769_v36 = vmov 0.0  }
 0x12e   : > { %1103 = vst.msk [vmem:[#allocation4 + $0xd8] sm:$0xff] %vm7325_vm3, %v5080_v51  ;;  %1104 = vst.msk [vmem:[#allocation4 + $0xe0] sm:$0xff] %vm7325_vm3, %v5078_v30  ;;  %2251 = vrot.lane.b32.xlu0 %v1566_v24, %s4761_s18  ;;  %v1172_v30 = vand.u32 15, %v1118_v6  ;;  %vm5228_vm8 = vcmp.ne.s32.totalorder %v1179_v4, 0  ;;  %v1727_v51 = vsel %vm5224_vm7, %v5215_v56, 0.0  ;;  %v1797_v20 = vsel %vm5224_vm7, %v5266_v47, 0.0 }
 0x12f   : > { %1105 = vst.msk [vmem:[#allocation4 + $0xe8] sm:$0xff] %vm7325_vm3, %v5096_v57  ;;  %1106 = vst.msk [vmem:[#allocation4 + $0xf0] sm:$0xff] %vm7325_vm3, %v5089_v43  ;;  %1899 = vrot.lane.b32.xlu1 %v1565_v10, %s4763_s23  ;;  %v1567_v43 = vld [vmem:[#allocation4 + $0x28] sm:$0xff]  ;;  %v1729_v42 = vsel %vm5228_vm8, %v5266_v47, 0.0  ;;  %v1569_v35 = vld [vmem:[#allocation4 + $0x38] sm:$0xff]  ;;  %v1124_v4 = vadd.s32 72, %v5181_v0 }
 0x130   : > { %1107 = vst.msk [vmem:[#allocation4 + $0xf8] sm:$0xff] %vm7325_vm3, %v5104_v45  ;;  %1108 = vst.msk [vmem:[#allocation4 + $0x100] sm:$0xff] %vm7325_vm3, %v5101_v8  ;;  %v1116_v8 = vadd.s32 8, %v5181_v0  ;;  %vm5207_vm5 = vcmp.ne.s32.totalorder %v1172_v30, 15  ;;  %v1599_v57 = vld [vmem:[#allocation4 + $0x29] sm:$0xff]  ;;  %v1600_v45 = vld [vmem:[#allocation4 + $0x31] sm:$0xff] }
 0x131   : > { %1109 = vst.msk [vmem:[#allocation4 + $0x108] sm:$0xff] %vm7325_vm3, %v5113_v40  ;;  %1110 = vst.msk [vmem:[#allocation4 + $0x110] sm:$0xff] %vm7325_vm3, %v5111_v37  ;;  %v1694_v41 = vsel %vm5207_vm5, %v1598_v3, 0.0  ;;  %v1764_v46 = vsel %vm5207_vm5, %v1600_v45, 0.0  ;;  %v1696_v50 = vsel %vm5262_vm9, %v1600_v45, 0.0  ;;  %v1570_v49 = vld [vmem:[#allocation4 + $0x40] sm:$0xff] }
 0x132   : > { %v1158_v1 = vand.u32 15, %v1116_v8  ;;  %1901 = vrot.lane.b32.xlu0 %v1566_v24, %s4763_s23  ;;  %v1601_v18 = vld [vmem:[#allocation4 + $0x39] sm:$0xff]  ;;  %v1602_v44 = vld [vmem:[#allocation4 + $0x41] sm:$0xff]  ;;  %v1122_v8 = vadd.s32 56, %v5181_v0  ;;  %v1444_v30 = vld [vmem:[#allocation4 + $0x4f] sm:$0xff]  ;;  %1076 = vst.msk [vmem:[#allocation4] sm:$0xff] %vm7325_vm3, %v4769_v36 }
 0x133   : > { %2377 = vrot.lane.b32.xlu1 %v1597_v2, %s4764_s24  ;;  %v1834_v10 = vsel %vm5207_vm5, %v1602_v44, 0.0  ;;  %v1766_v24 = vsel %vm5262_vm9, %v1602_v44, 0.0  ;;  %v5308_v6 = vld [vmem:[#allocation4 + $0x47] sm:$0xff]  ;;  %1113 = vst.msk [vmem:[#allocation4 + $0x128] sm:$0xff] %vm7325_vm3, %v4769_v36  ;;  %v1604_v59 = vld [vmem:[#allocation4 + $0x51] sm:$0xff]  ;;  %v1446_v22 = vld [vmem:[#allocation4 + $0x5f] sm:$0xff] }
 0x134   : > { %vm5196_vm4 = vcmp.ne.s32.totalorder %v1158_v1, 15  ;;  %v1200_v16 = vand.u32 15, %v1122_v8  ;;  %v1731_v33 = vsel %vm5275_vm10, %v5308_v6, 0.0  ;;  %v1571_v34 = vld [vmem:[#allocation4 + $0x48] sm:$0xff]  ;;  %v1125_v36 = vadd.s32 80, %v5181_v0  ;;  %v5486_v25 = vld [vmem:[#allocation4 + $0x77] sm:$0xff] }
 0x135   : > { %v1762_v37 = vsel %vm5196_vm4, %v1598_v3, 0.0  ;;  %v1832_v40 = vsel %vm5196_vm4, %v1600_v45, 0.0  ;;  %v1799_v3 = vsel %vm5228_vm8, %v5308_v6, 0.0  ;;  %v1603_v38 = vld [vmem:[#allocation4 + $0x49] sm:$0xff]  ;;  %7393 = vst [vmem:[#allocation50_spill] sm:$0xff] %v5486_v25  ;;  %p879_p7 = scmp.ne.s32.totalorder %s7963_s15, 0 }
 0x136   : > { %2379 = vrot.lane.b32.xlu0 %v1762_v37, %s4764_s24  ;;  %vm5304_vm11 = vcmp.ne.s32.totalorder %v1200_v16, 15  ;;  %v1572_v37 = vld [vmem:[#allocation4 + $0x50] sm:$0xff]  ;;  %v1138_v52 = vadd.s32 184, %v5181_v0  ;;  %vm7492_vm0 = vcmask 31744   ;;  %p882_p8 = scmp.lt.s32.totalorder %s4838_s14, 0  ;;  %s885_s29 = sand.u32 15, %s4293_s20  }
 0x137   : > { %2027 = vrot.lane.b32.xlu1 %v1597_v2, %s4765_s25  ;;  %v1698_v2 = vsel %vm5304_vm11, %v1602_v44, 0.0  ;;  %s880_s12 = scalar_select %p879_p7, 1, 0  ;;  %v4708_v14 = vld [vmem:[#allocation4 + $0x4f] sm:$0xff] }
 0x138   : > { %s886_s11 = ssub.s32 0, %s885_s29  ;;  %p4366_p10 = scmp.ne.s32.totalorder %s4828_s10, 0 }
 0x139   : > { %s881_s16 = scvt.s32.f32 %s880_s12  ;;  %s7965_s11 = smov (!%p882_p8, %s886_s11), %s885_s29 }
 0x13a   : > { %2029 = vrot.lane.b32.xlu0 %v1694_v41, %s4765_s25  ;;  %v1836_v41 = vsel %vm5262_vm9, %v1604_v59, 0.0  ;;  %p888_p9 = scmp.ne.s32.totalorder %s7965_s11, 0 }
 0x13b   : > { %2505 = vrot.lane.b32.xlu1 %v1795_v48, %s4766_s26  ;;  %v1214_v48 = vand.u32 15, %v1124_v4  ;;  %v5414_v4 = vld [vmem:[#allocation4 + $0x67] sm:$0xff] }
 0x13c   : > { %7384 = vst [vmem:[#allocation45_spill] sm:$0xff] %v5414_v4  ;;  %s889_s14 = scalar_select %p888_p9, 1, 0 }
 0x13d   : > { %vm5342_vm12 = vcmp.ne.s32.totalorder %v1214_v48, 15 }
 0x13e   : > { %2507 = vrot.lane.b32.xlu0 %v5237_v61, %s4766_s26  ;;  %v1700_v5 = vsel %vm5342_vm12, %v1604_v59, 0.0  ;;  %s890_s13 = scvt.s32.f32 %s889_s14 }
 0x13f   : > { %2155 = vrot.lane.b32.xlu1 %v1727_v51, %s4762_s22  ;;  %v1123_v51 = vadd.s32 64, %v5181_v0 }
 0x141   : > { %v1207_v45 = vand.u32 15, %v1123_v51 }
 0x142   : > { %2157 = vrot.lane.b32.xlu0 %v5237_v61, %s4762_s22 }
 0x143   : > { %2603 = vrot.lane.b32.xlu1 %v1567_v43, %s4767_s27  ;;  %vm5355_vm13 = vcmp.ne.s32.totalorder %v1207_v45, 0 }
 0x144   : > { %v1803_v51 = vsel %vm5355_vm13, %v5414_v4, 0.0 }
 0x146   : > { %2605 = vrot.lane.b32.xlu0 %v1568_v62, %s4767_s27 }
 0x147   : > { %2253 = vrot.lane.b32.xlu1 %v1567_v43, %s4761_s18 }
 0x14a   : > { %1903 = vrot.lane.b32.xlu0 %v1567_v43, %s4763_s23  ;;  %v1768_v43 = vsel %vm5304_vm11, %v1604_v59, 0.0 }
 0x14b   : > { %2731 = vrot.lane.b32.xlu1 %v1599_v57, %s4768_s28 }
 0x14e   : > { %2381 = vrot.lane.b32.xlu0 %v1599_v57, %s4764_s24 }
 0x14f   : > { %2255 = vrot.lane.b32.xlu1 %v1568_v62, %s4761_s18 }
 0x152   : > { %1905 = vrot.lane.b32.xlu0 %v1568_v62, %s4763_s23 }
 0x153   : > { %2733 = vrot.lane.b32.xlu1 %v1832_v40, %s4768_s28 }
 0x156   : > { %2383 = vrot.lane.b32.xlu0 %v1764_v46, %s4764_s24 }
 0x157   : > { %2031 = vrot.lane.b32.xlu1 %v1599_v57, %s4765_s25  ;;  %v5346_v57 = vld [vmem:[#allocation4 + $0x57] sm:$0xff] }
 0x158   : > { %v1801_v40 = vsel %vm5275_vm10, %v5346_v57, 0.0  ;;  %v1733_v46 = vsel %vm5355_vm13, %v5346_v57, 0.0 }
 0x15a   : > { %2033 = vrot.lane.b32.xlu0 %v1696_v50, %s4765_s25  ;;  %v1573_v50 = vld [vmem:[#allocation4 + $0x58] sm:$0xff] }
 0x15b   : > { %2509 = vrot.lane.b32.xlu1 %v1797_v20, %s4766_s26 }
 0x15e   : > { %2511 = vrot.lane.b32.xlu0 %v1442_v58, %s4766_s26 }
 0x15f   : > { %2159 = vrot.lane.b32.xlu1 %v1729_v42, %s4762_s22  ;;  %v1574_v42 = vld [vmem:[#allocation4 + $0x60] sm:$0xff] }
 0x162   : > { %2161 = vrot.lane.b32.xlu0 %v1442_v58, %s4762_s22 }
 0x163   : > { %2607 = vrot.lane.b32.xlu1 %v1569_v35, %s4767_s27 }
 0x166   : > { %2609 = vrot.lane.b32.xlu0 %v1570_v49, %s4767_s27 }
 0x167   : > { %2257 = vrot.lane.b32.xlu1 %v1569_v35, %s4761_s18 }
 0x16a   : > { %1907 = vrot.lane.b32.xlu0 %v1569_v35, %s4763_s23 }
 0x16b   : > { %2735 = vrot.lane.b32.xlu1 %v1601_v18, %s4768_s28 }
 0x16e   : > { %2385 = vrot.lane.b32.xlu0 %v1601_v18, %s4764_s24 }
 0x16f   : > { %2259 = vrot.lane.b32.xlu1 %v1570_v49, %s4761_s18 }
 0x172   : > { %1909 = vrot.lane.b32.xlu0 %v1570_v49, %s4763_s23 }
 0x173   : > { %2737 = vrot.lane.b32.xlu1 %v1834_v10, %s4768_s28 }
 0x176   : > { %2387 = vrot.lane.b32.xlu0 %v1766_v24, %s4764_s24  ;;  %v1606_v24 = vld [vmem:[#allocation4 + $0x61] sm:$0xff] }
 0x177   : > { %2035 = vrot.lane.b32.xlu1 %v1601_v18, %s4765_s25  ;;  %v1605_v18 = vld [vmem:[#allocation4 + $0x59] sm:$0xff] }
 0x17a   : > { %2037 = vrot.lane.b32.xlu0 %v1698_v2, %s4765_s25  ;;  %v1126_v2 = vadd.s32 88, %v5181_v0 }
 0x17b   : > { %2513 = vrot.lane.b32.xlu1 %v1799_v3, %s4766_s26  ;;  %v1838_v3 = vsel %vm5304_vm11, %v1606_v24, 0.0 }
 0x17e   : > { %2515 = vrot.lane.b32.xlu0 %v1444_v30, %s4766_s26 }
 0x17f   : > { %2163 = vrot.lane.b32.xlu1 %v1731_v33, %s4762_s22 }
 0x182   : > { %2165 = vrot.lane.b32.xlu0 %v1444_v30, %s4762_s22 }
 0x183   : > { %2611 = vrot.lane.b32.xlu1 %v1571_v34, %s4767_s27 }
 0x186   : > { %2613 = vrot.lane.b32.xlu0 %v1572_v37, %s4767_s27 }
 0x187   : > { %2261 = vrot.lane.b32.xlu1 %v1571_v34, %s4761_s18 }
 0x18a   : > { %1911 = vrot.lane.b32.xlu0 %v1571_v34, %s4763_s23  ;;  %v1228_v34 = vand.u32 15, %v1126_v2  ;;  %v1576_v2 = vld [vmem:[#allocation4 + $0x70] sm:$0xff] }
 0x18b   : > { %2739 = vrot.lane.b32.xlu1 %v1603_v38, %s4768_s28 }
 0x18c   : > { %vm5410_vm14 = vcmp.ne.s32.totalorder %v1228_v34, 15 }
 0x18d   : > { %v1702_v48 = vsel %vm5410_vm14, %v1606_v24, 0.0 }
 0x18e   : > { %2389 = vrot.lane.b32.xlu0 %v1603_v38, %s4764_s24 }
 0x18f   : > { %2263 = vrot.lane.b32.xlu1 %v1572_v37, %s4761_s18 }
 0x192   : > { %1913 = vrot.lane.b32.xlu0 %v1572_v37, %s4763_s23  ;;  %v1770_v37 = vsel %vm5342_vm12, %v1606_v24, 0.0 }
 0x193   : > { %2741 = vrot.lane.b32.xlu1 %v1836_v41, %s4768_s28  ;;  %v1221_v41 = vand.u32 15, %v1125_v36  ;;  %v1607_v36 = vld [vmem:[#allocation4 + $0x69] sm:$0xff] }
 0x195   : > { %vm5427_vm15 = vcmp.ne.s32.totalorder %v1221_v41, 0 }
 0x196   : > { %2391 = vrot.lane.b32.xlu0 %v1768_v43, %s4764_s24 }
 0x197   : > { %2039 = vrot.lane.b32.xlu1 %v1603_v38, %s4765_s25 }
 0x19a   : > { %2041 = vrot.lane.b32.xlu0 %v1700_v5, %s4765_s25 }
 0x19b   : > { %2517 = vrot.lane.b32.xlu1 %v1801_v40, %s4766_s26  ;;  %v1448_v40 = vld [vmem:[#allocation4 + $0x6f] sm:$0xff] }
 0x19c   : > { %v5364_v63 = vpop.permute.xlu0 %2249 }
 0x19d   : > { %v5366_v54 = vpop.permute.xlu1 %2153 }
 0x19e   : > { %2519 = vrot.lane.b32.xlu0 %v1446_v22, %s4766_s26 }
 0x19f   : > { %2167 = vrot.lane.b32.xlu1 %v1733_v46, %s4762_s22 }
 0x1a0   : > { %v5370_v20 = vpop.permute.xlu0 %2251 }
 0x1a1   : > { %v5372_v58 = vpop.permute.xlu1 %1899 }
 0x1a2   : > { %2169 = vrot.lane.b32.xlu0 %v1446_v22, %s4762_s22  ;;  %v1735_v22 = vsel %vm5427_vm15, %v5414_v4, 0.0  ;;  %v1130_v4 = vadd.s32 120, %v5181_v0 }
 0x1a3   : > { %2615 = vrot.lane.b32.xlu1 %v1573_v50, %s4767_s27 }
 0x1a4   : > { %v5376_v35 = vpop.permute.xlu0 %1901 }
 0x1a5   : > { %v5378_v49 = vpop.permute.xlu1 %2377 }
 0x1a6   : > { %2617 = vrot.lane.b32.xlu0 %v1574_v42, %s4767_s27 }
 0x1a7   : > { %2265 = vrot.lane.b32.xlu1 %v1573_v50, %s4761_s18 }
 0x1a8   : > { %v5382_v44 = vpop.permute.xlu0 %2379 }
 0x1a9   : > { %v5384_v8 = vpop.permute.xlu1 %2027 }
 0x1aa   : > { %1915 = vrot.lane.b32.xlu0 %v1573_v50, %s4763_s23 }
 0x1ab   : > { %2743 = vrot.lane.b32.xlu1 %v1605_v18, %s4768_s28 }
 0x1ac   : > { %v5388_v10 = vpop.permute.xlu0 %2029 }
 0x1ad   : > { %v5390_v16 = vpop.permute.xlu1 %2505 }
 0x1ae   : > { %2393 = vrot.lane.b32.xlu0 %v1605_v18, %s4764_s24 }
 0x1af   : > { %2267 = vrot.lane.b32.xlu1 %v1574_v42, %s4761_s18 }
 0x1b0   : > { %v5397_v30 = vpop.permute.xlu0 %2507 }
 0x1b1   : > { %v5399_v33 = vpop.permute.xlu1 %2155 }
 0x1b2   : > { %1917 = vrot.lane.b32.xlu0 %v1574_v42, %s4763_s23  ;;  %v1575_v42 = vld [vmem:[#allocation4 + $0x68] sm:$0xff] }
 0x1b3   : > { %2745 = vrot.lane.b32.xlu1 %v1838_v3, %s4768_s28 }
 0x1b4   : > { %v5406_v38 = vpop.permute.xlu0 %2157 }
 0x1b5   : > { %v5408_v59 = vpop.permute.xlu1 %2603 }
 0x1b6   : > { %2395 = vrot.lane.b32.xlu0 %v1770_v37, %s4764_s24 }
 0x1b7   : > { %2043 = vrot.lane.b32.xlu1 %v1605_v18, %s4765_s25 }
 0x1b8   : > { %v5423_v43 = vpop.permute.xlu0 %2605 }
 0x1b9   : > { %7385 = vst [vmem:[#allocation46_spill] sm:$0xff] %v5423_v43  ;;  %v5425_v45 = vpop.permute.xlu1 %2253  ;;  %v1452_v43 = vld [vmem:[#allocation4 + $0x8f] sm:$0xff] }
 0x1ba   : > { %2045 = vrot.lane.b32.xlu0 %v1702_v48, %s4765_s25 }
 0x1bb   : > { %2521 = vrot.lane.b32.xlu1 %v1803_v51, %s4766_s26 }
 0x1bc   : > { %v5436_v46 = vpop.permute.xlu0 %1903 }
 0x1bd   : > { %v5438_v50 = vpop.permute.xlu1 %2731 }
 0x1be   : > { %7388 = vst [vmem:[#allocation47_spill] sm:$0xff] %v5438_v50  ;;  %2523 = vrot.lane.b32.xlu0 %v1448_v40, %s4766_s26 }
 0x1bf   : > { %2171 = vrot.lane.b32.xlu1 %v1735_v22, %s4762_s22  ;;  %v1128_v22 = vadd.s32 104, %v5181_v0 }
 0x1c0   : > { %v5442_v18 = vpop.permute.xlu0 %2381 }
 0x1c1   : > { %v5444_v24 = vpop.permute.xlu1 %2255 }
 0x1c2   : > { %2173 = vrot.lane.b32.xlu0 %v1448_v40, %s4762_s22  ;;  %v1608_v40 = vld [vmem:[#allocation4 + $0x71] sm:$0xff] }
 0x1c3   : > { %2619 = vrot.lane.b32.xlu1 %v1575_v42, %s4767_s27  ;;  %v1840_v28 = vsel %vm5342_vm12, %v1608_v40, 0.0  ;;  %v1772_v27 = vsel %vm5410_vm14, %v1608_v40, 0.0 }
 0x1c4   : > { %v5448_v3 = vpop.permute.xlu0 %1905 }
 0x1c5   : > { %v5450_v34 = vpop.permute.xlu1 %2733 }
 0x1c6   : > { %7389 = vst [vmem:[#allocation48_spill] sm:$0xff] %v5450_v34  ;;  %2621 = vrot.lane.b32.xlu0 %v1576_v2, %s4767_s27 }
 0x1c7   : > { %2269 = vrot.lane.b32.xlu1 %v1575_v42, %s4761_s18 }
 0x1c8   : > { %v5454_v37 = vpop.permute.xlu0 %2383 }
 0x1c9   : > { %v5456_v41 = vpop.permute.xlu1 %2031 }
 0x1ca   : > { %1919 = vrot.lane.b32.xlu0 %v1575_v42, %s4763_s23  ;;  %v1242_v42 = vand.u32 15, %v1128_v22  ;;  %v1235_v22 = vand.u32 15, %v1127_v32 }
 0x1cb   : > { %2747 = vrot.lane.b32.xlu1 %v1607_v36, %s4768_s28 }
 0x1cc   : > { %v5460_v48 = vpop.permute.xlu0 %2033  ;;  %vm5482_vm1 = vcmp.ne.s32.totalorder %v1242_v42, 15  ;;  %vm5499_vm2 = vcmp.ne.s32.totalorder %v1235_v22, 0  ;;  %v1577_v22 = vld [vmem:[#allocation4 + $0x78] sm:$0xff] }
 0x1cd   : > { %v5462_v51 = vpop.permute.xlu1 %2509  ;;  %v7395_v21 = vsel %vm5499_vm2, 4294967295, %v7394_v21  ;;  %v1737_v32 = vsel %vm5499_vm2, %v5486_v25, 0.0 }
 0x1ce   : > { %2397 = vrot.lane.b32.xlu0 %v1607_v36, %s4764_s24  ;;  %7396 = vst [vmem:[#allocation51_spill] sm:$0xff] %v7395_v21  ;;  %v980_v21 = vstv %s881_s16 }
 0x1cf   : > { %2271 = vrot.lane.b32.xlu1 %v1576_v2, %s4761_s18 }
 0x1d0   : > { %v5469_v60 = vpop.permute.xlu0 %2511 }
 0x1d1   : > { %v5471_v31 = vpop.permute.xlu1 %2159 }
 0x1d2   : > { %1921 = vrot.lane.b32.xlu0 %v1576_v2, %s4763_s23  ;;  %v1805_v2 = vsel %vm5427_vm15, %v5486_v25, 0.0  ;;  %v1610_v25 = vld [vmem:[#allocation4 + $0x81] sm:$0xff] }
 0x1d3   : > { %2749 = vrot.lane.b32.xlu1 %v1840_v28, %s4768_s28  ;;  %v1704_v28 = vsel %vm5482_vm1, %v1608_v40, 0.0 }
 0x1d4   : > { %v5478_v29 = vpop.permute.xlu0 %2161 }
 0x1d5   : > { %v5480_v23 = vpop.permute.xlu1 %2607 }
 0x1d6   : > { %7390 = vst [vmem:[#allocation49_spill] sm:$0xff] %v5480_v23  ;;  %2399 = vrot.lane.b32.xlu0 %v1772_v27, %s4764_s24  ;;  %v1450_v27 = vld [vmem:[#allocation4 + $0x7f] sm:$0xff] }
 0x1d7   : > { %2047 = vrot.lane.b32.xlu1 %v1607_v36, %s4765_s25 }
 0x1d8   : > { %v5495_v19 = vpop.permute.xlu0 %2609 }
 0x1d9   : > { %v5497_v42 = vpop.permute.xlu1 %2257 }
 0x1da   : > { %2049 = vrot.lane.b32.xlu0 %v1704_v28, %s4765_s25 }
 0x1db   : > { %2525 = vrot.lane.b32.xlu1 %v1805_v2, %s4766_s26  ;;  %v1578_v2 = vld [vmem:[#allocation4 + $0x80] sm:$0xff] }
 0x1dc   : > { %v5508_v36 = vpop.permute.xlu0 %1907 }
 0x1dd   : > { %v5510_v40 = vpop.permute.xlu1 %2735 }
 0x1de   : > { %7397 = vst [vmem:[#allocation52_spill] sm:$0xff] %v5510_v40  ;;  %2527 = vrot.lane.b32.xlu0 %v1450_v27, %s4766_s26 }
 0x1df   : > { %2175 = vrot.lane.b32.xlu1 %v1737_v32, %s4762_s22  ;;  %v1609_v32 = vld [vmem:[#allocation4 + $0x79] sm:$0xff] }
 0x1e0   : > { %v5515_v15 = vpop.permute.xlu0 %2385 }
 0x1e1   : > { %v5517_v28 = vpop.permute.xlu1 %2259 }
 0x1e2   : > { %2177 = vrot.lane.b32.xlu0 %v1450_v27, %s4762_s22 }
 0x1e3   : > { %2623 = vrot.lane.b32.xlu1 %v1577_v22, %s4767_s27 }
 0x1e4   : > { %v5522_v17 = vpop.permute.xlu0 %1909 }
 0x1e5   : > { %7398 = vst [vmem:[#allocation53_spill] sm:$0xff] %v5522_v17  ;;  %v5524_v11 = vpop.permute.xlu1 %2737 }
 0x1e6   : > { %7399 = vst [vmem:[#allocation54_spill] sm:$0xff] %v5524_v11  ;;  %2625 = vrot.lane.b32.xlu0 %v1578_v2, %s4767_s27 }
 0x1e7   : > { %2273 = vrot.lane.b32.xlu1 %v1577_v22, %s4761_s18 }
 0x1e8   : > { %v5529_v13 = vpop.permute.xlu0 %2387 }
 0x1e9   : > { %7400 = vst [vmem:[#allocation55_spill] sm:$0xff] %v5529_v13  ;;  %v5531_v7 = vpop.permute.xlu1 %2035  ;;  %v1256_v13 = vand.u32 15, %v1130_v4 }
 0x1ea   : > { %7401 = vst [vmem:[#allocation56_spill] sm:$0xff] %v5531_v7  ;;  %1923 = vrot.lane.b32.xlu0 %v1577_v22, %s4763_s23  ;;  %v1842_v7 = vsel %vm5410_vm14, %v1610_v25, 0.0  ;;  %vm7323_vm14 = vcmask 1043456  }
 0x1eb   : > { %2751 = vrot.lane.b32.xlu1 %v1609_v32, %s4768_s28  ;;  %vm5557_vm5 = vcmp.ne.s32.totalorder %v1256_v13, 15  ;;  %v7411_v13 = vmov 0 }
 0x1ec   : > { %v5535_v27 = vpop.permute.xlu0 %2037 }
 0x1ed   : > { %7402 = vst [vmem:[#allocation57_spill] sm:$0xff] %v5535_v27  ;;  %v5537_v9 = vpop.permute.xlu1 %2513  ;;  %v1129_v27 = vadd.s32 112, %v5181_v0 }
 0x1ee   : > { %7403 = vst [vmem:[#allocation58_spill] sm:$0xff] %v5537_v9  ;;  %2401 = vrot.lane.b32.xlu0 %v1609_v32, %s4764_s24  ;;  %v1774_v9 = vsel %vm5482_vm1, %v1610_v25, 0.0 }
 0x1ef   : > { %2275 = vrot.lane.b32.xlu1 %v1578_v2, %s4761_s18  ;;  %v1249_v4 = vand.u32 15, %v1129_v27 }
 0x1f0   : > { %v5544_v40 = vpop.permute.xlu0 %2515 }
 0x1f1   : > { %7404 = vst [vmem:[#allocation59_spill] sm:$0xff] %v5544_v40  ;;  %v5546_v22 = vpop.permute.xlu1 %2163  ;;  %vm5569_vm9 = vcmp.ne.s32.totalorder %v1249_v4, 0 }
 0x1f2   : > { %7405 = vst [vmem:[#allocation60_spill] sm:$0xff] %v5546_v22  ;;  %1925 = vrot.lane.b32.xlu0 %v1578_v2, %s4763_s23  ;;  %v1451_v22 = vld [vmem:[#allocation4 + $0x87] sm:$0xff]  ;;  %v7412_v13 = vsel %vm5569_vm9, 4294967295, %v7411_v13 }
 0x1f3   : > { %2753 = vrot.lane.b32.xlu1 %v1842_v7, %s4768_s28  ;;  %v1706_v7 = vsel %vm5557_vm5, %v1610_v25, 0.0  ;;  %v1807_v2 = vsel %vm5499_vm2, %v1451_v22, 0.0  ;;  %7413 = vst [vmem:[#allocation64_spill] sm:$0xff] %v7412_v13  ;;  %v1739_v4 = vsel %vm5569_vm9, %v1451_v22, 0.0  ;;  %v3089_v22 = vld [vmem:[%s7273_s4] sm:$0xff] }
 0x1f4   : > { %v5553_v34 = vpop.permute.xlu0 %2165 }
 0x1f5   : > { %7406 = vst [vmem:[#allocation61_spill] sm:$0xff] %v5553_v34  ;;  %v5555_v1 = vpop.permute.xlu1 %2611 }
 0x1f6   : > { %7407 = vst [vmem:[#allocation62_spill] sm:$0xff] %v5555_v1  ;;  %2403 = vrot.lane.b32.xlu0 %v1774_v9, %s4764_s24 }
 0x1f7   : > { %2051 = vrot.lane.b32.xlu1 %v1609_v32, %s4765_s25 }
 0x1f8   : > { %v4543_v34 = vpop.f32.mrb[12].mxu1  ;;  %v5567_v40 = vpop.permute.xlu0 %2613 }
 0x1f9   : > { %7410 = vst [vmem:[#allocation63_spill] sm:$0xff] %v5567_v40  ;;  %v971_v27 = vadd.f32 %v4543_v34, %v5041_v39  ;;  %v5574_v1 = vpop.permute.xlu1 %2261  ;;  %v965_v9 = vpop.f32.mrb[13].mxu1 }
 0x1fa   : > { %7414 = vst [vmem:[#allocation65_spill] sm:$0xff] %v5574_v1  ;;  %v966_v32 = vadd.f32 %v5041_v39, %v965_v9  ;;  %2053 = vrot.lane.b32.xlu0 %v1706_v7, %s4765_s25 }
 0x1fb   : > { %2529 = vrot.lane.b32.xlu1 %v1807_v2, %s4766_s26  ;;  %vm975_vm11 = vcmp.gt.f32.partialorder %v971_v27, 0.0  ;;  %v977_v25 = vmul.f32 0.2, %v971_v27  ;;  %v1579_v2 = vld [vmem:[#allocation4 + $0x88] sm:$0xff] }
 0x1fc   : > { %vm974_vm12 = vcmp.gt.f32.partialorder %v966_v32, 0.0  ;;  %v976_v40 = vmul.f32 0.2, %v966_v32  ;;  %v5581_v17 = vpop.permute.xlu0 %1911 }
 0x1fd   : > { %v979_v34 = vsel %vm975_vm11, %v971_v27, %v977_v25  ;;  %v5583_v1 = vpop.permute.xlu1 %2739  ;;  %v3090_v27 = vld [vmem:[%s7273_s4 + $0x8] sm:$0xff]  ;;  %v3091_v25 = vld [vmem:[%s7273_s4 + $0x10] sm:$0xff] }
 0x1fe   : > { %v982_v23 = vmul.f32 %v980_v21, %v979_v34  ;;  %v978_v9 = vsel %vm974_vm12, %v966_v32, %v976_v40  ;;  %2531 = vrot.lane.b32.xlu0 %v1452_v43, %s4766_s26  ;;  %v4671_v32 = vpack.c.bf16 %v3090_v27, %v3089_v22 }
 0x1ff   : > { %2179 = vrot.lane.b32.xlu1 %v1739_v4, %s4762_s22  ;;  %v981_v7 = vmul.f32 %v980_v21, %v978_v9  ;;  %v1580_v21 = vld [vmem:[#allocation4 + $0x90] sm:$0xff]  ;;  %v3092_v4 = vld [vmem:[%s7273_s4 + $0x18] sm:$0xff] }
 0x200   : > { %1078 = vst.msk [vmem:[#allocation4 + $0x10] sm:$0xff] %vm7325_vm3, %v982_v23  ;;  %v5588_v50 = vpop.permute.xlu0 %2389  ;;  %4672 = vmatprep.subr.bf16.mxu1 %v4671_v32  ;;  %v4675_v9 = vpack.c.bf16 %v3092_v4, %v3091_v25 }
 0x201   : > { %1077 = vst.msk [vmem:[#allocation4 + $0x8] sm:$0xff] %vm7325_vm3, %v981_v7  ;;  %v5597_v40 = vpop.permute.xlu1 %2263  ;;  %4674 = vmatpush3.bf16.msra.mxu1 %v4671_v32  ;;  %v3093_v32 = vld [vmem:[%s7273_s4 + $0x20] sm:$0xf] }
 0x202   : > { %7415 = vst [vmem:[#allocation66_spill] sm:$0xff] %v5597_v40  ;;  %2181 = vrot.lane.b32.xlu0 %v1452_v43, %s4762_s22  ;;  %v1611_v43 = vld [vmem:[#allocation4 + $0x89] sm:$0xff]  ;;  %4676 = vmatprep.subr.bf16.mxu1 %v4675_v9 }
 0x203   : > { %2627 = vrot.lane.b32.xlu1 %v1579_v2, %s4767_s27 }
 0x204   : > { %v5601_v23 = vpop.permute.xlu0 %1913 }
 0x205   : > { %7416 = vst [vmem:[#allocation67_spill] sm:$0xff] %v5601_v23  ;;  %v5609_v34 = vpop.permute.xlu1 %2741  ;;  %4678 = vmatpush3.bf16.msra.mxu1 %v4675_v9 }
 0x206   : > { %7417 = vst [vmem:[#allocation68_spill] sm:$0xff] %v5609_v34  ;;  %2629 = vrot.lane.b32.xlu0 %v1580_v21, %s4767_s27  ;;  %4559 = vmatprep.subr.msk.mxu1 %vm7323_vm14, %v3093_v32 }
 0x207   : > { %2277 = vrot.lane.b32.xlu1 %v1579_v2, %s4761_s18  ;;  %v1564_v27 = vld [vmem:[#allocation4 + $0x10] sm:$0xff] }
 0x208   : > { %v5613_v7 = vpop.permute.xlu0 %2391  ;;  %v1595_v9 = vld [vmem:[#allocation4 + $0x9] sm:$0xff] }
 0x209   : > { %7418 = vst [vmem:[#allocation69_spill] sm:$0xff] %v5613_v7  ;;  %v5615_v22 = vpop.permute.xlu1 %2039  ;;  %4560 = vmatpush3.msk.msra.mxu1 %vm7323_vm14, %v3093_v32  ;;  %v5630_v7 = vld [vmem:[#allocation4 + $0x17] sm:$0xff] }
 0x20a   : > { %7419 = vst [vmem:[#allocation70_spill] sm:$0xff] %v5615_v22  ;;  %1897 = vrot.lane.b32.xlu0 %v1564_v27, %s4763_s23  ;;  %v1563_v22 = vld [vmem:[#allocation4 + $0x8] sm:$0xff]  ;;  %v1596_v27 = vld [vmem:[#allocation4 + $0x11] sm:$0xff]  ;;  %v1725_v32 = vsel %vm5211_vm6, %v5630_v7, 0.0 }
 0x20b   : > { %2755 = vrot.lane.b32.xlu1 %v1611_v43, %s4768_s28 }
 0x20c   : > { %v5623_v25 = vpop.permute.xlu0 %2041 }
 0x20d   : > { %7420 = vst [vmem:[#allocation71_spill] sm:$0xff] %v5623_v25  ;;  %v5626_v4 = vpop.permute.xlu1 %2517  ;;  %v1692_v25 = vsel %vm5196_vm4, %v1596_v27, 0.0 }
 0x20e   : > { %7421 = vst [vmem:[#allocation72_spill] sm:$0xff] %v5626_v4  ;;  %1895 = vrot.lane.b32.xlu0 %v1563_v22, %s4763_s23  ;;  %v1612_v22 = vld [vmem:[#allocation4 + $0x91] sm:$0xff] }
 0x20f   : > { %2023 = vrot.lane.b32.xlu1 %v1595_v9, %s4765_s25  ;;  %v1844_v26 = vsel %vm5482_vm1, %v1612_v22, 0.0 }
 0x210   : > { %v5632_v34 = vpop.permute.xlu0 %2519 }
 0x211   : > { %7422 = vst [vmem:[#allocation73_spill] sm:$0xff] %v5632_v34  ;;  %v5634_v23 = vpop.permute.xlu1 %2167 }
 0x212   : > { %7423 = vst [vmem:[#allocation74_spill] sm:$0xff] %v5634_v23  ;;  %2151 = vrot.lane.b32.xlu0 %v1725_v32, %s4762_s22  ;;  %v1131_v23 = vadd.s32 128, %v5181_v0 }
 0x213   : > { %2025 = vrot.lane.b32.xlu1 %v1692_v25, %s4765_s25  ;;  %v1132_v25 = vadd.s32 136, %v5181_v0 }
 0x214   : > { %v5643_v9 = vpop.permute.xlu0 %2169 }
 0x215   : > { %7424 = vst [vmem:[#allocation75_spill] sm:$0xff] %v5643_v9  ;;  %v5645_v4 = vpop.permute.xlu1 %2615  ;;  %v1270_v9 = vand.u32 15, %v1132_v25 }
 0x216   : > { %7425 = vst [vmem:[#allocation76_spill] sm:$0xff] %v5645_v4  ;;  %1927 = vrot.lane.b32.xlu0 %v1579_v2, %s4763_s23  ;;  %v5661_v4 = vld [vmem:[#allocation4 + $0x97] sm:$0xff]  ;;  %v1263_v2 = vand.u32 15, %v1131_v23 }
 0x217   : > { %2279 = vrot.lane.b32.xlu1 %v1580_v21, %s4761_s18  ;;  %7429 = vst [vmem:[#allocation80_spill] sm:$0xff] %v5661_v4  ;;  %vm5678_vm1 = vcmp.ne.s32.totalorder %v1270_v9, 15  ;;  %v1581_v9 = vld [vmem:[#allocation4 + $0x98] sm:$0xff] }
 0x218   : > { %v5651_v27 = vpop.permute.xlu0 %2617  ;;  %vm5674_vm4 = vcmp.ne.s32.totalorder %v1263_v2, 0  ;;  %v1708_v25 = vsel %vm5678_vm1, %v1612_v22, 0.0 }
 0x219   : > { %7426 = vst [vmem:[#allocation77_spill] sm:$0xff] %v5651_v27  ;;  %v5655_v34 = vpop.permute.xlu1 %2265 }
 0x21a   : > { %7427 = vst [vmem:[#allocation78_spill] sm:$0xff] %v5655_v34  ;;  %2405 = vrot.lane.b32.xlu0 %v1611_v43, %s4764_s24  ;;  %v1809_v34 = vsel %vm5569_vm9, %v5661_v4, 0.0 }
 0x21b   : > { %2757 = vrot.lane.b32.xlu1 %v1844_v26, %s4768_s28  ;;  %v1776_v26 = vsel %vm5557_vm5, %v1612_v22, 0.0 }
 0x21c   : > { %v5659_v32 = vpop.permute.xlu0 %1915 }
 0x21d   : > { %7428 = vst [vmem:[#allocation79_spill] sm:$0xff] %v5659_v32  ;;  %v5663_v62 = vpop.permute.xlu1 %2743  ;;  %v7432_v32 = vmov 0 }
 0x21e   : > { %7430 = vst [vmem:[#allocation81_spill] sm:$0xff] %v5663_v62  ;;  %1929 = vrot.lane.b32.xlu0 %v1580_v21, %s4763_s23  ;;  %v7433_v32 = vsel %vm5674_vm4, 4294967295, %v7432_v32  ;;  %v1741_v21 = vsel %vm5674_vm4, %v5661_v4, 0.0 }
 0x21f   : > { %2055 = vrot.lane.b32.xlu1 %v1611_v43, %s4765_s25  ;;  %7434 = vst [vmem:[#allocation83_spill] sm:$0xff] %v7433_v32 }
 0x220   : > { %v5672_v27 = vpop.permute.xlu0 %2393 }
 0x221   : > { %7431 = vst [vmem:[#allocation82_spill] sm:$0xff] %v5672_v27  ;;  %v5682_v43 = vpop.permute.xlu1 %2267 }
 0x222   : > { %7437 = vst [vmem:[#allocation84_spill] sm:$0xff] %v5682_v43  ;;  %2407 = vrot.lane.b32.xlu0 %v1776_v26, %s4764_s24  ;;  %v5697_v43 = vld [vmem:[#allocation4 + $0x9f] sm:$0xff] }
 0x223   : > { %2533 = vrot.lane.b32.xlu1 %v1809_v34, %s4766_s26  ;;  %7440 = vst [vmem:[#allocation87_spill] sm:$0xff] %v5697_v43 }
 0x224   : > { %v5691_v2 = vpop.permute.xlu0 %1917 }
 0x225   : > { %7438 = vst [vmem:[#allocation85_spill] sm:$0xff] %v5691_v2  ;;  %v5693_v27 = vpop.permute.xlu1 %2745 }
 0x226   : > { %7439 = vst [vmem:[#allocation86_spill] sm:$0xff] %v5693_v27  ;;  %2057 = vrot.lane.b32.xlu0 %v1708_v25, %s4765_s25  ;;  %v1582_v25 = vld [vmem:[#allocation4 + $0xa0] sm:$0xff] }
 0x227   : > { %2183 = vrot.lane.b32.xlu1 %v1741_v21, %s4762_s22  ;;  %v1613_v21 = vld [vmem:[#allocation4 + $0x99] sm:$0xff] }
 0x228   : > { %v5699_v34 = vpop.permute.xlu0 %2395 }
 0x229   : > { %7441 = vst [vmem:[#allocation88_spill] sm:$0xff] %v5699_v34  ;;  %v5701_v26 = vpop.permute.xlu1 %2043 }
 0x22a   : > { %7442 = vst [vmem:[#allocation89_spill] sm:$0xff] %v5701_v26  ;;  %2535 = vrot.lane.b32.xlu0 %v5697_v43, %s4766_s26 }
 0x22b   : > { %2631 = vrot.lane.b32.xlu1 %v1581_v9, %s4767_s27 }
 0x22c   : > { %v5706_v22 = vpop.permute.xlu0 %2045 }
 0x22d   : > { %7443 = vst [vmem:[#allocation90_spill] sm:$0xff] %v5706_v22  ;;  %v5708_v4 = vpop.permute.xlu1 %2521  ;;  %v1614_v22 = vld [vmem:[#allocation4 + $0xa1] sm:$0xff] }
 0x22e   : > { %7444 = vst [vmem:[#allocation91_spill] sm:$0xff] %v5708_v4  ;;  %2185 = vrot.lane.b32.xlu0 %v5697_v43, %s4762_s22  ;;  %v1846_v43 = vsel %vm5557_vm5, %v1614_v22, 0.0 }
 0x22f   : > { %2281 = vrot.lane.b32.xlu1 %v1581_v9, %s4761_s18 }
 0x230   : > { %v5713_v27 = vpop.permute.xlu0 %2523 }
 0x231   : > { %7445 = vst [vmem:[#allocation92_spill] sm:$0xff] %v5713_v27  ;;  %v5715_v34 = vpop.permute.xlu1 %2171  ;;  %v1133_v27 = vadd.s32 144, %v5181_v0 }
 0x232   : > { %7446 = vst [vmem:[#allocation93_spill] sm:$0xff] %v5715_v34  ;;  %2633 = vrot.lane.b32.xlu0 %v1582_v25, %s4767_s27  ;;  %v1134_v34 = vadd.s32 152, %v5181_v0 }
 0x233   : > { %2759 = vrot.lane.b32.xlu1 %v1613_v21, %s4768_s28  ;;  %v1277_v13 = vand.u32 15, %v1133_v27 }
 0x234   : > { %v5719_v2 = vpop.permute.xlu0 %2173 }
 0x235   : > { %7447 = vst [vmem:[#allocation94_spill] sm:$0xff] %v5719_v2  ;;  %v5721_v26 = vpop.permute.xlu1 %2619  ;;  %vm5747_vm5 = vcmp.ne.s32.totalorder %v1277_v13, 0 }
 0x236   : > { %7448 = vst [vmem:[#allocation95_spill] sm:$0xff] %v5721_v26  ;;  %1931 = vrot.lane.b32.xlu0 %v1581_v9, %s4763_s23  ;;  %v1455_v26 = vld [vmem:[#allocation4 + $0xa7] sm:$0xff]  ;;  %v1284_v9 = vand.u32 15, %v1134_v34 }
 0x237   : > { %2283 = vrot.lane.b32.xlu1 %v1582_v25, %s4761_s18  ;;  %v1811_v11 = vsel %vm5674_vm4, %v1455_v26, 0.0 }
 0x238   : > { %v5727_v4 = vpop.permute.xlu0 %2621  ;;  %vm5751_vm11 = vcmp.ne.s32.totalorder %v1284_v9, 15  ;;  %v1583_v9 = vld [vmem:[#allocation4 + $0xa8] sm:$0xff] }
 0x239   : > { %7449 = vst [vmem:[#allocation96_spill] sm:$0xff] %v5727_v4  ;;  %v5731_v62 = vpop.permute.xlu1 %2269  ;;  %v1778_v4 = vsel %vm5678_vm1, %v1614_v22, 0.0 }
 0x23a   : > { %7450 = vst [vmem:[#allocation97_spill] sm:$0xff] %v5731_v62  ;;  %2409 = vrot.lane.b32.xlu0 %v1613_v21, %s4764_s24  ;;  %v7454_v62 = vmov 0 }
 0x23b   : > { %2761 = vrot.lane.b32.xlu1 %v1846_v43, %s4768_s28  ;;  %v7455_v62 = vsel %vm5747_vm5, 4294967295, %v7454_v62 }
 0x23c   : > { %v5735_v2 = vpop.permute.xlu0 %1919  ;;  %7456 = vst [vmem:[#allocation101_spill] sm:$0xff] %v7455_v62 }
 0x23d   : > { %7451 = vst [vmem:[#allocation98_spill] sm:$0xff] %v5735_v2  ;;  %v5737_v40 = vpop.permute.xlu1 %2747 }
 0x23e   : > { %7452 = vst [vmem:[#allocation99_spill] sm:$0xff] %v5737_v40  ;;  %1933 = vrot.lane.b32.xlu0 %v1582_v25, %s4763_s23  ;;  %v1710_v25 = vsel %vm5751_vm11, %v1614_v22, 0.0  ;;  %v1615_v22 = vld [vmem:[#allocation4 + $0xa9] sm:$0xff] }
 0x23f   : > { %2059 = vrot.lane.b32.xlu1 %v1613_v21, %s4765_s25  ;;  %v1743_v21 = vsel %vm5747_vm5, %v1455_v26, 0.0 }
 0x240   : > { %v5745_v43 = vpop.permute.xlu0 %2397 }
 0x241   : > { %7453 = vst [vmem:[#allocation100_spill] sm:$0xff] %v5745_v43  ;;  %v5755_v34 = vpop.permute.xlu1 %2271 }
 0x242   : > { %7459 = vst [vmem:[#allocation102_spill] sm:$0xff] %v5755_v34  ;;  %2411 = vrot.lane.b32.xlu0 %v1778_v4, %s4764_s24  ;;  %v1456_v34 = vld [vmem:[#allocation4 + $0xaf] sm:$0xff] }
 0x243   : > { %2537 = vrot.lane.b32.xlu1 %v1811_v11, %s4766_s26 }
 0x244   : > { %v5763_v13 = vpop.permute.xlu0 %1921 }
 0x245   : > { %7460 = vst [vmem:[#allocation103_spill] sm:$0xff] %v5763_v13  ;;  %v5765_v32 = vpop.permute.xlu1 %2749 }
 0x246   : > { %7461 = vst [vmem:[#allocation104_spill] sm:$0xff] %v5765_v32  ;;  %2061 = vrot.lane.b32.xlu0 %v1710_v25, %s4765_s25  ;;  %v1616_v32 = vld [vmem:[#allocation4 + $0xb1] sm:$0xff] }
 0x247   : > { %2187 = vrot.lane.b32.xlu1 %v1743_v21, %s4762_s22  ;;  %v1584_v21 = vld [vmem:[#allocation4 + $0xb0] sm:$0xff] }
 0x248   : > { %v5769_v43 = vpop.permute.xlu0 %2399 }
 0x249   : > { %7462 = vst [vmem:[#allocation105_spill] sm:$0xff] %v5769_v43  ;;  %v5771_v11 = vpop.permute.xlu1 %2047 }
 0x24a   : > { %7463 = vst [vmem:[#allocation106_spill] sm:$0xff] %v5771_v11  ;;  %2539 = vrot.lane.b32.xlu0 %v1456_v34, %s4766_s26 }
 0x24b   : > { %2635 = vrot.lane.b32.xlu1 %v1583_v9, %s4767_s27 }
 0x24c   : > { %v5775_v4 = vpop.permute.xlu0 %2049 }
 0x24d   : > { %7464 = vst [vmem:[#allocation107_spill] sm:$0xff] %v5775_v4  ;;  %v5777_v26 = vpop.permute.xlu1 %2525 }
 0x24e   : > { %7465 = vst [vmem:[#allocation108_spill] sm:$0xff] %v5777_v26  ;;  %2189 = vrot.lane.b32.xlu0 %v1456_v34, %s4762_s22  ;;  %v1848_v34 = vsel %vm5678_vm1, %v1616_v32, 0.0 }
 0x24f   : > { %2285 = vrot.lane.b32.xlu1 %v1583_v9, %s4761_s18 }
 0x250   : > { %v5781_v25 = vpop.permute.xlu0 %2527 }
 0x251   : > { %7466 = vst [vmem:[#allocation109_spill] sm:$0xff] %v5781_v25  ;;  %v5783_v13 = vpop.permute.xlu1 %2175  ;;  %v1135_v25 = vadd.s32 160, %v5181_v0 }
 0x252   : > { %7467 = vst [vmem:[#allocation110_spill] sm:$0xff] %v5783_v13  ;;  %2637 = vrot.lane.b32.xlu0 %v1584_v21, %s4767_s27  ;;  %v1136_v13 = vadd.s32 168, %v5181_v0 }
 0x253   : > { %2763 = vrot.lane.b32.xlu1 %v1615_v22, %s4768_s28  ;;  %v1291_v2 = vand.u32 15, %v1135_v25 }
 0x254   : > { %v5787_v43 = vpop.permute.xlu0 %2177 }
 0x255   : > { %7468 = vst [vmem:[#allocation111_spill] sm:$0xff] %v5787_v43  ;;  %v5789_v4 = vpop.permute.xlu1 %2623  ;;  %vm5815_vm12 = vcmp.ne.s32.totalorder %v1291_v2, 0 }
 0x256   : > { %7469 = vst [vmem:[#allocation112_spill] sm:$0xff] %v5789_v4  ;;  %1935 = vrot.lane.b32.xlu0 %v1583_v9, %s4763_s23  ;;  %v1457_v4 = vld [vmem:[#allocation4 + $0xb7] sm:$0xff]  ;;  %v1298_v9 = vand.u32 15, %v1136_v13 }
 0x257   : > { %2287 = vrot.lane.b32.xlu1 %v1584_v21, %s4761_s18  ;;  %v1813_v23 = vsel %vm5747_vm5, %v1457_v4, 0.0  ;;  %vm7501_vm5 = vcmask 64512  }
 0x258   : > { %v5795_v26 = vpop.permute.xlu0 %2625  ;;  %vm5819_vm1 = vcmp.ne.s32.totalorder %v1298_v9, 15  ;;  %v1585_v9 = vld [vmem:[#allocation4 + $0xb8] sm:$0xff] }
 0x259   : > { %7470 = vst [vmem:[#allocation113_spill] sm:$0xff] %v5795_v26  ;;  %v5799_v11 = vpop.permute.xlu1 %2273  ;;  %v1780_v26 = vsel %vm5751_vm11, %v1616_v32, 0.0 }
 0x25a   : > { %7471 = vst [vmem:[#allocation114_spill] sm:$0xff] %v5799_v11  ;;  %2413 = vrot.lane.b32.xlu0 %v1615_v22, %s4764_s24  ;;  %v7474_v11 = vmov 0 }
 0x25b   : > { %2765 = vrot.lane.b32.xlu1 %v1848_v34, %s4768_s28  ;;  %v7475_v11 = vsel %vm5815_vm12, 4294967295, %v7474_v11 }
 0x25c   : > { %v5803_v43 = vpop.permute.xlu0 %1923 }
 0x25d   : > { %7472 = vst [vmem:[#allocation115_spill] sm:$0xff] %v5803_v43  ;;  %v5805_v40 = vpop.permute.xlu1 %2751 }
 0x25e   : > { %1937 = vrot.lane.b32.xlu0 %v1584_v21, %s4763_s23  ;;  %v1712_v21 = vsel %vm5819_vm1, %v1616_v32, 0.0 }
 0x25f   : > { %2063 = vrot.lane.b32.xlu1 %v1615_v22, %s4765_s25  ;;  %v1745_v22 = vsel %vm5815_vm12, %v1457_v4, 0.0 }
 0x260   : > { %v5813_v34 = vpop.permute.xlu0 %2401 }
 0x261   : > { %7473 = vst [vmem:[#allocation116_spill] sm:$0xff] %v5813_v34  ;;  %v5823_v25 = vpop.permute.xlu1 %2275 }
 0x262   : > { %7478 = vst [vmem:[#allocation117_spill] sm:$0xff] %v5823_v25  ;;  %2415 = vrot.lane.b32.xlu0 %v1780_v26, %s4764_s24  ;;  %v1458_v25 = vld [vmem:[#allocation4 + $0xbf] sm:$0xff] }
 0x263   : > { %2541 = vrot.lane.b32.xlu1 %v1813_v23, %s4766_s26  ;;  %v1617_v26 = vld [vmem:[#allocation4 + $0xb9] sm:$0xff] }
 0x264   : > { %v5831_v2 = vpop.permute.xlu0 %1925 }
 0x265   : > { %7479 = vst [vmem:[#allocation118_spill] sm:$0xff] %v5831_v2  ;;  %v5833_v62 = vpop.permute.xlu1 %2753 }
 0x266   : > { %7480 = vst [vmem:[#allocation119_spill] sm:$0xff] %v5833_v62  ;;  %2065 = vrot.lane.b32.xlu0 %v1712_v21, %s4765_s25 }
 0x267   : > { %2191 = vrot.lane.b32.xlu1 %v1745_v22, %s4762_s22  ;;  %v1586_v22 = vld [vmem:[#allocation4 + $0xc0] sm:$0xff] }
 0x268   : > { %v5837_v43 = vpop.permute.xlu0 %2403 }
 0x269   : > { %7481 = vst [vmem:[#allocation120_spill] sm:$0xff] %v5837_v43  ;;  %v5839_v23 = vpop.permute.xlu1 %2051 }
 0x26a   : > { %7482 = vst [vmem:[#allocation121_spill] sm:$0xff] %v5839_v23  ;;  %2543 = vrot.lane.b32.xlu0 %v1458_v25, %s4766_s26  ;;  %v5857_v23 = vld [vmem:[#allocation4 + $0xc1] sm:$0xff] }
 0x26b   : > { %2639 = vrot.lane.b32.xlu1 %v1585_v9, %s4767_s27 }
 0x26c   : > { %v5843_v4 = vpop.permute.xlu0 %2053 }
 0x26d   : > { %7483 = vst [vmem:[#allocation122_spill] sm:$0xff] %v5843_v4  ;;  %v5845_v32 = vpop.permute.xlu1 %2529  ;;  %v1533_v4 = vsel %vm5224_vm7, %v5630_v7, 0.0  ;;  %vm7327_vm7 = vcmask 64512  }
 0x26e   : > { %7484 = vst [vmem:[#allocation123_spill] sm:$0xff] %v5845_v32  ;;  %2193 = vrot.lane.b32.xlu0 %v1458_v25, %s4762_s22  ;;  %v1850_v25 = vsel %vm5751_vm11, %v5857_v23, 0.0  ;;  %vm7326_vm11 = vcmask 97280  }
 0x26f   : > { %2289 = vrot.lane.b32.xlu1 %v1585_v9, %s4761_s18 }
 0x270   : > { %v5849_v21 = vpop.permute.xlu0 %2531 }
 0x271   : > { %7485 = vst [vmem:[#allocation124_spill] sm:$0xff] %v5849_v21  ;;  %v5851_v2 = vpop.permute.xlu1 %2179  ;;  %v2829_v21 = vsel %vm7325_vm3, %v1533_v4, %v5372_v58  ;;  %v1312_v4 = vand.u32 15, %v1138_v52 }
 0x272   : > { %7486 = vst [vmem:[#allocation125_spill] sm:$0xff] %v5851_v2  ;;  %2641 = vrot.lane.b32.xlu0 %v1586_v22, %s4767_s27  ;;  %v1137_v2 = vadd.s32 176, %v5181_v0  ;;  %v2862_v27 = vsel %vm7327_vm7, %v2829_v21, %v5384_v8 }
 0x273   : > { %2767 = vrot.lane.b32.xlu1 %v1617_v26, %s4768_s28  ;;  %v2895_v8 = vsel %vm7326_vm11, %v2862_v27, %v5399_v33  ;;  %v7491_v33 = vsel %vm5228_vm8, %v5215_v56, 0.0  ;;  %v2832_v56 = vsel %vm7492_vm0, %v5237_v61, %v5448_v3  ;;  %vm3056_vm8 = vcmask 261120  }
 0x274   : > { %v5855_v43 = vpop.permute.xlu0 %2181  ;;  %v1305_v58 = vand.u32 15, %v1137_v2  ;;  %v1539_v61 = vsel %vm5355_vm13, %v5308_v6, 0.0 }
 0x275   : > { %7487 = vst [vmem:[#allocation126_spill] sm:$0xff] %v5855_v43  ;;  %v5862_v62 = vpop.permute.xlu1 %2627 }
 0x276   : > { %7488 = vst [vmem:[#allocation127_spill] sm:$0xff] %v5862_v62  ;;  %1939 = vrot.lane.b32.xlu0 %v1585_v9, %s4763_s23  ;;  %v1459_v62 = vld [vmem:[#allocation4 + $0xc7] sm:$0xff] }
 0x277   : > { %2291 = vrot.lane.b32.xlu1 %v1586_v22, %s4761_s18 }
 0x278   : > { %v5871_v43 = vpop.permute.xlu0 %2629 }
 0x279   : > { %7489 = vst [vmem:[#allocation128_spill] sm:$0xff] %v5871_v43  ;;  %v5875_v7 = vpop.permute.xlu1 %2277  ;;  %v4706_v43 = vld [vmem:[#allocation4 + $0x1f] sm:$0xff] }
 0x27a   : > { %7490 = vst [vmem:[#allocation129_spill] sm:$0xff] %v5875_v7  ;;  %2417 = vrot.lane.b32.xlu0 %v1617_v26, %s4764_s24  ;;  %v2830_v32 = vsel %vm7325_vm3, %v4706_v43, %v5376_v35  ;;  %v1435_v7 = vld [vmem:[#allocation4 + $0x7] sm:$0xff]  ;;  %v1815_v35 = vsel %vm5815_vm12, %v1459_v62, 0.0  ;;  %v2831_v43 = vsel %vm7492_vm0, %v7491_v33, %v5436_v46  ;;  %vm5910_vm3 = vcmp.ne.s32.totalorder %v1312_v4, 15 }
 0x27b   : > { %2769 = vrot.lane.b32.xlu1 %v1850_v25, %s4768_s28  ;;  %v2863_v25 = vsel %vm7327_vm7, %v2830_v32, %v5388_v10  ;;  %v1782_v10 = vsel %vm5819_vm1, %v5857_v23, 0.0  ;;  %vm7497_vm7 = vcmask 130048   ;;  %vm7500_vm12 = vcmask 162816  }
 0x27c   : > { %v1898_v9 = vpop.permute.xlu0 %1897  ;;  %v2896_v2 = vsel %vm7326_vm11, %v2863_v25, %v5406_v38  ;;  %v1531_v38 = vsel %vm5211_vm6, %v1435_v7, 0.0  ;;  %vm5906_vm11 = vcmp.ne.s32.totalorder %v1305_v58, 0  ;;  %vm7498_vm6 = vmmov %vm7492_vm0  ;;  %v2864_v7 = vsel %vm7501_vm5, %v2831_v43, %v5456_v41  ;;  %v1436_v58 = vld [vmem:[#allocation4 + $0xf] sm:$0xff] }
 0x27d   : > { %v5883_v34 = vpop.permute.xlu1 %2755  ;;  %v2928_v55 = vsel %vm7497_vm7, %v2896_v2, %v5444_v24  ;;  %vm7499_vm14 = vmmov %vm7497_vm7  ;;  %v1714_v41 = vsel %vm5910_vm3, %v5857_v23, 0.0  ;;  %vm7506_vm0 = vcmask 228352   ;;  %v7510_v23 = vsel %vm5275_vm10, %v5266_v47, 0.0  ;;  %v4550_v47 = vpop.f32.mrb[14].mxu1 }
 0x27e   : > { %1941 = vrot.lane.b32.xlu0 %v1586_v22, %s4763_s23  ;;  %v2927_v21 = vsel %vm7499_vm14, %v2895_v8, %v5425_v45  ;;  %v2961_v52 = vsel %vm7500_vm12, %v2928_v55, %v5454_v37  ;;  %vm7502_vm7 = vmmov %vm7501_vm5  ;;  %vm7503_vm14 = vcmask 195584   ;;  %vm7504_vm12 = vcmask 97280   ;;  %v1057_v33 = vpop.f32.mrb[15].mxu1 }
 0x27f   : > { %2067 = vrot.lane.b32.xlu1 %v1617_v26, %s4765_s25  ;;  %v2865_v24 = vsel %vm7502_vm7, %v2832_v56, %v5460_v48  ;;  %v2994_v45 = vsel %vm7503_vm14, %v2961_v52, %v5469_v60  ;;  %v2897_v3 = vsel %vm7504_vm12, %v2864_v7, %v5471_v31  ;;  %v1747_v37 = vsel %vm5906_vm11, %v1459_v62, 0.0  ;;  %vm7505_vm5 = vmmov %vm7504_vm12  ;;  %v7526_v56 = vld [vmem:[#allocation49_spill] sm:$0xff] }
 0x280   : > { %v1896_v32 = vpop.permute.xlu0 %1895  ;;  %v2898_v48 = vsel %vm7505_vm5, %v2865_v24, %v5478_v29  ;;  %v3027_v27 = vsel %vm7506_vm0, %v2994_v45, %v5495_v19  ;;  %vm7509_vm14 = vcmask 130048   ;;  %vm7511_vm12 = vcmask 31744   ;;  %v7532_v24 = vld [vmem:[#allocation54_spill] sm:$0xff] }
 0x281   : > { %v2024_v53 = vpop.permute.xlu1 %2023  ;;  %v2827_v46 = vsel %vm7498_vm6, %v1531_v38, %v1896_v32  ;;  %vm7507_vm6 = vmmov %vm7502_vm7  ;;  %vm7508_vm7 = vcmask 162816   ;;  %v2929_v62 = vsel %vm7509_vm14, %v2897_v3, %v5497_v42  ;;  %v2833_v29 = vsel %vm7511_vm12, %v7510_v23, %v5508_v36 }
 0x282   : > { %2419 = vrot.lane.b32.xlu0 %v1782_v10, %s4764_s24  ;;  %v2860_v60 = vsel %vm7507_vm6, %v2827_v46, %v2024_v53  ;;  %v2960_v31 = vsel %vm7508_vm7, %v2927_v21, %v5442_v18  ;;  %vm7512_vm5 = vmmov %vm7511_vm12  ;;  %vm7513_vm0 = vcmask 97280   ;;  %v1541_v18 = vsel %vm5427_vm15, %v5346_v57, 0.0  ;;  %v4707_v46 = vld [vmem:[#allocation4 + $0x3f] sm:$0xff] }
 0x283   : > { %2545 = vrot.lane.b32.xlu1 %v1815_v35, %s4766_s26  ;;  %v2828_v19 = vsel %vm7512_vm5, %v1436_v58, %v1898_v9  ;;  %vm7514_vm6 = vmmov %vm7508_vm7  ;;  %vm7515_vm7 = vcmask 64512   ;;  %v5976_v9 = vld [vmem:[#allocation4 + $0xc8] sm:$0xff]  ;;  %vm7518_vm5 = vcmask 195584   ;;  %v3060_v45 = vsel %vm3056_vm8, %v3027_v27, %v7532_v24 }
 0x284   : > { %v2152_v4 = vpop.permute.xlu0 %2151  ;;  %v2962_v2 = vsel %vm7514_vm6, %v2929_v62, %v5515_v15  ;;  %vm7516_vm10 = vmmov %vm7513_vm0  ;;  %v5978_v35 = vld [vmem:[#allocation4 + $0xcf] sm:$0xff]  ;;  %v2993_v10 = vsel %vm7518_vm5, %v2960_v31, %v5462_v51  ;;  %v1072_v58 = vstv %s890_s13  ;;  %v7563_v24 = vld [vmem:[#allocation67_spill] sm:$0xff]  ;;  %vm7596_vm15 = vcmask 64512  }
 0x285   : > { %v2026_v25 = vpop.permute.xlu1 %2025  ;;  %v2893_v8 = vsel %vm7513_vm0, %v2860_v60, %v2152_v4  ;;  %vm7517_vm12 = vmmov %vm7514_vm6  ;;  %v7534_v4 = vld [vmem:[#allocation55_spill] sm:$0xff]  ;;  %v7536_v62 = vld [vmem:[#allocation52_spill] sm:$0xff] }
 0x286   : > { %v2861_v42 = vsel %vm7515_vm7, %v2828_v19, %v2026_v25  ;;  %v2925_v12 = vsel %vm7509_vm14, %v2893_v8, %v5364_v63  ;;  %2069 = vrot.lane.b32.xlu0 %v1714_v41, %s4765_s25  ;;  %v1063_v63 = vadd.f32 %v4550_v47, %v5041_v39  ;;  %vm7519_vm0 = vmmov %vm7509_vm14  ;;  %vm3101_vm7 = vcmask 293888   ;;  %v7537_v25 = vld [vmem:[#allocation56_spill] sm:$0xff]  ;;  %v7541_v47 = vld [vmem:[#allocation45_spill] sm:$0xff] }
 0x287   : > { %2195 = vrot.lane.b32.xlu1 %v1747_v37, %s4762_s22  ;;  %v2894_v36 = vsel %vm7516_vm10, %v2861_v42, %v5366_v54  ;;  %v2958_v15 = vsel %vm7517_vm12, %v2925_v12, %v5378_v49  ;;  %vm7520_vm6 = vmmov %vm7518_vm5  ;;  %v1058_v49 = vadd.f32 %v5041_v39, %v1057_v33  ;;  %v7525_v39 = vld [vmem:[#allocation47_spill] sm:$0xff]  ;;  %v7533_v37 = vld [vmem:[#allocation48_spill] sm:$0xff] }
 0x288   : > { %v2926_v43 = vsel %vm7519_vm0, %v2894_v36, %v5370_v20  ;;  %v2991_v32 = vsel %vm7520_vm6, %v2958_v15, %v5390_v16  ;;  %v5987_v54 = vpop.permute.xlu0 %1927  ;;  %vm7521_vm14 = vmmov %vm7519_vm0  ;;  %vm1067_vm5 = vcmp.gt.f32.partialorder %v1063_v63, 0.0  ;;  %v1069_v53 = vmul.f32 0.2, %v1063_v63  ;;  %v7539_v42 = vld [vmem:[#allocation57_spill] sm:$0xff] }
 0x289   : > { %v2930_v38 = vsel %vm7521_vm14, %v2898_v48, %v5517_v28  ;;  %vm7522_vm10 = vmmov %vm7517_vm12  ;;  %v5994_v55 = vpop.permute.xlu1 %2279  ;;  %vm7523_vm12 = vcmask 228352   ;;  %vm7529_vm14 = vcmask 31744   ;;  %v1068_v7 = vmul.f32 0.2, %v1058_v49 }
 0x28a   : > { %v2959_v51 = vsel %vm7522_vm10, %v2926_v43, %v5382_v44  ;;  %v3024_v20 = vsel %vm7523_vm12, %v2991_v32, %v5408_v59  ;;  %vm7524_vm0 = vmmov %vm7520_vm6  ;;  %2547 = vrot.lane.b32.xlu0 %v5978_v35, %s4766_s26  ;;  %v7528_v59 = vld [vmem:[#allocation53_spill] sm:$0xff]  ;;  %v1071_v48 = vsel %vm1067_vm5, %v1063_v63, %v1069_v53  ;;  %v1543_v15 = vsel %vm5499_vm2, %v7541_v47, 0.0  ;;  %v7543_v63 = vld [vmem:[#allocation58_spill] sm:$0xff] }
 0x28b   : > { %v2992_v16 = vsel %vm7524_vm0, %v2959_v51, %v5397_v30  ;;  %2643 = vrot.lane.b32.xlu1 %v5976_v9, %s4767_s27  ;;  %v3057_v28 = vsel %vm3056_vm8, %v3024_v20, %v7525_v39  ;;  %vm7527_vm6 = vmmov %vm7523_vm12  ;;  %v2834_v21 = vsel %vm7529_vm14, %v4707_v46, %v7528_v59  ;;  %v7530_v30 = vld [vmem:[#allocation46_spill] sm:$0xff]  ;;  %vm1066_vm12 = vcmp.gt.f32.partialorder %v1058_v49, 0.0  ;;  %v7545_v43 = vld [vmem:[#allocation59_spill] sm:$0xff] }
 0x28c   : > { %v3026_v44 = vsel %vm7527_vm6, %v2993_v10, %v7526_v56  ;;  %4561 = vmatprep.mubr.msk.f32.mxu1 %vm3101_vm7, %v3057_v28  ;;  %vm7531_vm10 = vmmov %vm7527_vm6  ;;  %v6015_v3 = vpop.permute.xlu0 %2405  ;;  %vm7535_vm0 = vcmask 162816   ;;  %v1074_v19 = vmul.f32 %v1072_v58, %v1071_v48  ;;  %v1070_v27 = vsel %vm1066_vm12, %v1058_v49, %v1068_v7  ;;  %v6047_v20 = vld [vmem:[#allocation4 + $0xc9] sm:$0xff]  ;;  %v7556_v56 = vld [vmem:[#allocation65_spill] sm:$0xff] }
 0x28d   : > { %v3025_v52 = vsel %vm7531_vm10, %v2992_v16, %v7530_v30  ;;  %v2963_v60 = vsel %vm7535_vm0, %v2930_v38, %v7534_v4  ;;  %v6022_v31 = vpop.permute.xlu1 %2757  ;;  %v3059_v23 = vsel %vm3056_vm8, %v3026_v44, %v7536_v62  ;;  %vm7538_vm6 = vcmask 64512   ;;  %v7549_v38 = vld [vmem:[#allocation61_spill] sm:$0xff]  ;;  %v7552_v16 = vld [vmem:[#allocation62_spill] sm:$0xff]  ;;  %v7624_v47 = vld [vmem:[#allocation108_spill] sm:$0xff] }
 0x28e   : > { %v3058_v41 = vsel %vm3056_vm8, %v3025_v52, %v7533_v37  ;;  %v2866_v8 = vsel %vm7538_vm6, %v2833_v29, %v7537_v25  ;;  %vm7540_vm14 = vmmov %vm7538_vm6  ;;  %v1073_v10 = vmul.f32 %v1072_v58, %v1070_v27  ;;  %vm7544_vm5 = vcmask 195584   ;;  %v7547_v29 = vld [vmem:[#allocation60_spill] sm:$0xff]  ;;  %2197 = vrot.lane.b32.xlu0 %v5978_v35, %s4762_s22  ;;  %v7561_v52 = vld [vmem:[#allocation66_spill] sm:$0xff] }
 0x28f   : > { %4562 = vmatmul.mubr.msk.f32.vlgmr.msra.gmra.mrb[16].mxu1 %vm3101_vm7, %v3058_v41  ;;  %v2867_v12 = vsel %vm7540_vm14, %v2834_v21, %v7539_v42  ;;  %2293 = vrot.lane.b32.xlu1 %v5976_v9, %s4761_s18  ;;  %v2995_v33 = vsel %vm7544_vm5, %v2962_v2, %v7543_v63  ;;  %vm7546_vm10 = vmmov %vm7544_vm5  ;;  %vm7548_vm12 = vcmask 97280   ;;  %vm7551_vm6 = vcmask 31744   ;;  %v7554_v2 = vld [vmem:[#allocation63_spill] sm:$0xff]  ;;  %v6064_v59 = vld [vmem:[#allocation4 + $0xd0] sm:$0xff] }
 0x290   : > { %4564 = vmatprep.mubr.msk.f32.mxu1 %vm3101_vm7, %v3059_v23  ;;  %v2996_v32 = vsel %vm7546_vm10, %v2963_v60, %v7545_v43  ;;  %v2899_v49 = vsel %vm7548_vm12, %v2866_v8, %v7547_v29  ;;  %vm7550_vm0 = vmmov %vm7548_vm12  ;;  %1112 = vst.msk [vmem:[#allocation4 + $0x120] sm:$0xff] %vm7551_vm6, %v1074_v19  ;;  %vm7553_vm14 = vcmask 228352   ;;  %vm7557_vm10 = vcmask 130048   ;;  %v6062_v46 = vpop.permute.xlu0 %1929  ;;  %v7566_v41 = vld [vmem:[#allocation69_spill] sm:$0xff]  ;;  %v7568_v48 = vld [vmem:[#allocation70_spill] sm:$0xff] }
 0x291   : > { %v2900_v51 = vsel %vm7550_vm0, %v2867_v12, %v7549_v38  ;;  %v3028_v39 = vsel %vm7553_vm14, %v2995_v33, %v7552_v16  ;;  %vm7555_vm5 = vmmov %vm7553_vm14  ;;  %v2931_v44 = vsel %vm7557_vm10, %v2899_v49, %v7556_v56  ;;  %v7570_v58 = vld [vmem:[#allocation50_spill] sm:$0xff]  ;;  %v6090_v62 = vld [vmem:[#allocation4 + $0xd1] sm:$0xff]  ;;  %v6103_v12 = vadd.s32 192, %v5181_v0 }
 0x292   : > { %v3029_v28 = vsel %vm7555_vm5, %v2996_v32, %v7554_v2  ;;  %vm7558_vm12 = vmmov %vm7551_vm6  ;;  %v3061_v21 = vsel %vm3056_vm8, %v3028_v39, %v5583_v1  ;;  %v1545_v60 = vsel %vm5569_vm9, %v7570_v58, 0.0  ;;  %v7574_v19 = vld [vmem:[#allocation72_spill] sm:$0xff]  ;;  %v7576_v25 = vld [vmem:[#allocation73_spill] sm:$0xff]  ;;  %2645 = vrot.lane.b32.xlu0 %v6064_v59, %s4767_s27 }
 0x293   : > { %v2835_v53 = vsel %vm7558_vm12, %v1539_v61, %v5581_v17  ;;  %vm7559_vm0 = vmmov %vm7551_vm6  ;;  %vm7560_vm6 = vcmask 162816   ;;  %v6075_v17 = vpop.permute.xlu1 %2055  ;;  %4565 = vmatmul.mubr.msk.f32.gmra.mrb[18].mxu1 %vm3101_vm7, %v3060_v45  ;;  %v7565_v61 = vld [vmem:[#allocation68_spill] sm:$0xff]  ;;  %2771 = vrot.lane.b32.xlu1 %v6047_v20, %s4768_s28  ;;  %v7572_v45 = vld [vmem:[#allocation71_spill] sm:$0xff] }
 0x294   : > { %1111 = vst.msk [vmem:[#allocation4 + $0x118] sm:$0xff] %vm7559_vm0, %v1073_v10  ;;  %v2964_v30 = vsel %vm7560_vm6, %v2931_v44, %v5588_v50  ;;  %vm7562_vm14 = vmmov %vm7557_vm10  ;;  %v3062_v37 = vsel %vm3056_vm8, %v3029_v28, %v7565_v61  ;;  %vm7569_vm10 = vcmask 64512   ;;  %4567 = vmatprep.mubr.msk.f32.mxu1 %vm3101_vm7, %v3061_v21  ;;  %v6100_v42 = vld [vmem:[#allocation4 + $0xd7] sm:$0xff]  ;;  %v7580_v33 = vld [vmem:[#allocation75_spill] sm:$0xff]  ;;  %v1852_v21 = vsel %vm5819_vm1, %v6090_v62, 0.0 }
 0x295   : > { %v2932_v7 = vsel %vm7562_vm14, %v2900_v51, %v7561_v52  ;;  %vm7564_vm13 = vmmov %vm7559_vm0  ;;  %v2868_v50 = vsel %vm7569_vm10, %v2835_v53, %v7568_v48  ;;  %vm7575_vm0 = vcmask 195584   ;;  %v7578_v10 = vld [vmem:[#allocation74_spill] sm:$0xff]  ;;  %vm7579_vm14 = vcmask 97280   ;;  %v7582_v32 = vld [vmem:[#allocation76_spill] sm:$0xff]  ;;  %v6113_v51 = vpop.permute.xlu0 %2407 }
 0x296   : > { %v2836_v6 = vsel %vm7564_vm13, %v4708_v14, %v7563_v24  ;;  %vm7567_vm5 = vmmov %vm7560_vm6  ;;  %v2997_v27 = vsel %vm7575_vm0, %v2964_v30, %v7574_v19  ;;  %v2901_v63 = vsel %vm7579_vm14, %v2868_v50, %v7578_v10  ;;  %v7584_v49 = vld [vmem:[#allocation77_spill] sm:$0xff]  ;;  %v7586_v16 = vld [vmem:[#allocation78_spill] sm:$0xff]  ;;  %v1817_v57 = vsel %vm5906_vm11, %v6100_v42, 0.0  ;;  %1943 = vrot.lane.b32.xlu0 %v5976_v9, %s4763_s23 }
 0x297   : > { %v2965_v1 = vsel %vm7567_vm5, %v2932_v7, %v7566_v41  ;;  %vm7573_vm12 = vmmov %vm7569_vm10  ;;  %vm7583_vm5 = vcmask 228352   ;;  %v7588_v2 = vld [vmem:[#allocation79_spill] sm:$0xff]  ;;  %v7590_v56 = vld [vmem:[#allocation81_spill] sm:$0xff]  ;;  %v6125_v53 = vpop.permute.xlu1 %2533  ;;  %4568 = vmatmul.mubr.msk.f32.gmra.mrb[20].mxu1 %vm3101_vm7, %v3062_v37  ;;  %2295 = vrot.lane.b32.xlu1 %v6064_v59, %s4761_s18  ;;  %vm7598_vm1 = vcmask 195584   ;;  %v1784_v61 = vsel %vm5910_vm3, %v6090_v62, 0.0 }
 0x298   : > { %v2869_v23 = vsel %vm7573_vm12, %v2836_v6, %v7572_v45  ;;  %vm7577_vm6 = vmmov %vm7575_vm0  ;;  %v3030_v29 = vsel %vm7583_vm5, %v2997_v27, %v7582_v32  ;;  %vm7587_vm12 = vcmask 130048   ;;  %vm7589_vm0 = vcmask 31744   ;;  %v7591_v30 = vld [vmem:[#allocation82_spill] sm:$0xff]  ;;  %v7593_v7 = vld [vmem:[#allocation84_spill] sm:$0xff] }
 0x299   : > { %v2998_v8 = vsel %vm7577_vm6, %v2965_v1, %v7576_v25  ;;  %vm7581_vm13 = vmmov %vm7579_vm14  ;;  %v2933_v39 = vsel %vm7587_vm12, %v2901_v63, %v7586_v16  ;;  %v2837_v28 = vsel %vm7589_vm0, %v1541_v18, %v7588_v2  ;;  %v3063_v44 = vsel %vm3056_vm8, %v3030_v29, %v7590_v56  ;;  %v7595_v14 = vld [vmem:[#allocation89_spill] sm:$0xff]  ;;  %v7597_v24 = vld [vmem:[#allocation91_spill] sm:$0xff]  ;;  %v6160_v9 = vpop.permute.xlu0 %2057 }
 0x29a   : > { %v2902_v43 = vsel %vm7581_vm13, %v2869_v23, %v7580_v33  ;;  %vm7585_vm10 = vmmov %vm7583_vm5  ;;  %vm7592_vm6 = vcmask 162816   ;;  %4570 = vmatprep.mubr.msk.f32.mxu1 %vm3101_vm7, %v3063_v44  ;;  %v1140_v18 = vadd.s32 200, %v5181_v0  ;;  %v2870_v13 = vsel %vm7596_vm15, %v2837_v28, %v7595_v14  ;;  %v4709_v41 = vld [vmem:[#allocation4 + $0x5f] sm:$0xff]  ;;  %v7599_v1 = vld [vmem:[#allocation85_spill] sm:$0xff]  ;;  %2421 = vrot.lane.b32.xlu0 %v6047_v20, %s4764_s24 }
 0x29b   : > { %v3031_v38 = vsel %vm7585_vm10, %v2998_v8, %v7584_v49  ;;  %v2966_v52 = vsel %vm7592_vm6, %v2933_v39, %v7591_v30  ;;  %vm7594_vm14 = vmmov %vm7587_vm12  ;;  %v1319_v37 = vand.u32 15, %v6103_v12  ;;  %v7601_v50 = vld [vmem:[#allocation86_spill] sm:$0xff]  ;;  %v7602_v23 = vld [vmem:[#allocation93_spill] sm:$0xff]  ;;  %vm7603_vm5 = vcmask 97280   ;;  %v6170_v49 = vpop.permute.xlu1 %2183  ;;  %2773 = vrot.lane.b32.xlu1 %v1852_v21, %s4768_s28 }
 0x29c   : > { %v2934_v5 = vsel %vm7594_vm14, %v2902_v43, %v7593_v7  ;;  %v2999_v6 = vsel %vm7598_vm1, %v2966_v52, %v7597_v24  ;;  %vm7600_vm13 = vmmov %vm7589_vm0  ;;  %v3064_v45 = vsel %vm3056_vm8, %v3031_v38, %v7601_v50  ;;  %v2903_v19 = vsel %vm7603_vm5, %v2870_v13, %v7602_v23  ;;  %v7604_v27 = vld [vmem:[#allocation95_spill] sm:$0xff]  ;;  %v7605_v8 = vld [vmem:[#allocation88_spill] sm:$0xff] }
 0x29d   : > { %v2838_v48 = vsel %vm7600_vm13, %v4709_v41, %v7599_v1  ;;  %v3032_v25 = vsel %vm7585_vm10, %v2999_v6, %v7604_v27  ;;  %vm7606_vm12 = vmmov %vm7592_vm6  ;;  %v7607_v63 = vld [vmem:[#allocation90_spill] sm:$0xff]  ;;  %v7609_v33 = vld [vmem:[#allocation97_spill] sm:$0xff]  ;;  %4571 = vmatmul.mubr.msk.f32.gmra.mrb[22].mxu1 %vm3101_vm7, %v3064_v45  ;;  %v1326_v44 = vand.u32 15, %v1140_v18  ;;  %v2536_v50 = vpop.permute.xlu0 %2535 }
 0x29e   : > { %v2967_v10 = vsel %vm7606_vm12, %v2934_v5, %v7605_v8  ;;  %vm7608_vm0 = vmmov %vm7596_vm15  ;;  %v7611_v32 = vld [vmem:[#allocation99_spill] sm:$0xff]  ;;  %v7612_v38 = vld [vmem:[#allocation92_spill] sm:$0xff]  ;;  %1945 = vrot.lane.b32.xlu0 %v6064_v59, %s4763_s23 }
 0x29f   : > { %v2871_v12 = vsel %vm7608_vm0, %v2838_v48, %v7607_v63  ;;  %vm7610_vm6 = vmmov %vm7594_vm14  ;;  %v3065_v29 = vsel %vm3056_vm8, %v3032_v25, %v7611_v32  ;;  %v7614_v39 = vld [vmem:[#allocation98_spill] sm:$0xff]  ;;  %v7616_v28 = vld [vmem:[#allocation100_spill] sm:$0xff]  ;;  %2071 = vrot.lane.b32.xlu1 %v6047_v20, %s4765_s25 }
 0x2a0   : > { %v2935_v43 = vsel %vm7610_vm6, %v2903_v19, %v7609_v33  ;;  %vm7613_vm14 = vmmov %vm7598_vm1  ;;  %4573 = vmatprep.mubr.msk.f32.mxu1 %vm3101_vm7, %v3065_v29  ;;  %v7618_v30 = vld [vmem:[#allocation94_spill] sm:$0xff]  ;;  %v7620_v7 = vld [vmem:[#allocation96_spill] sm:$0xff] }
 0x2a1   : > { %v3000_v16 = vsel %vm7613_vm14, %v2967_v10, %v7612_v38  ;;  %vm7615_vm15 = vmmov %vm7600_vm13  ;;  %v7622_v14 = vld [vmem:[#allocation106_spill] sm:$0xff]  ;;  %v7628_v21 = vld [vmem:[#allocation104_spill] sm:$0xff] }
 0x2a2   : > { %v2839_v2 = vsel %vm7615_vm15, %v1543_v15, %v7614_v39  ;;  %vm7617_vm1 = vmmov %vm7606_vm12  ;;  %v7626_v13 = vld [vmem:[#allocation102_spill] sm:$0xff]  ;;  %v7631_v1 = vld [vmem:[#allocation112_spill] sm:$0xff]  ;;  %2423 = vrot.lane.b32.xlu0 %v1784_v61, %s4764_s24 }
 0x2a3   : > { %v2968_v56 = vsel %vm7617_vm1, %v2935_v43, %v7616_v28  ;;  %vm7619_vm13 = vmmov %vm7603_vm5  ;;  %v7629_v6 = vld [vmem:[#allocation110_spill] sm:$0xff]  ;;  %v4710_v45 = vld [vmem:[#allocation4 + $0x6f] sm:$0xff]  ;;  %2549 = vrot.lane.b32.xlu1 %v1817_v57, %s4766_s26 }
 0x2a4   : > { %v2904_v52 = vsel %vm7619_vm13, %v2871_v12, %v7618_v30  ;;  %vm7621_vm5 = vmmov %vm7585_vm10  ;;  %v7633_v23 = vld [vmem:[#allocation103_spill] sm:$0xff]  ;;  %v7635_v27 = vld [vmem:[#allocation105_spill] sm:$0xff]  ;;  %v2632_v12 = vpop.permute.xlu1 %2631 }
 0x2a5   : > { %v3033_v5 = vsel %vm7621_vm5, %v3000_v16, %v7620_v7  ;;  %vm7623_vm10 = vmmov %vm7608_vm0  ;;  %v7637_v8 = vld [vmem:[#allocation114_spill] sm:$0xff]  ;;  %v7639_v33 = vld [vmem:[#allocation107_spill] sm:$0xff] }
 0x2a6   : > { %v2872_v36 = vsel %vm7623_vm10, %v2839_v2, %v7622_v14  ;;  %vm7625_vm2 = vmmov %vm7613_vm14  ;;  %v3066_v18 = vsel %vm3056_vm8, %v3033_v5, %v7628_v21  ;;  %v7641_v32 = vld [vmem:[#allocation109_spill] sm:$0xff]  ;;  %v7643_v38 = vld [vmem:[#allocation116_spill] sm:$0xff] }
 0x2a7   : > { %v3001_v15 = vsel %vm7625_vm2, %v2968_v56, %v7624_v47  ;;  %vm7627_vm12 = vmmov %vm7610_vm6  ;;  %4574 = vmatmul.mubr.msk.f32.gmra.mrb[24].mxu1 %vm3101_vm7, %v3066_v18  ;;  %v7649_v28 = vld [vmem:[#allocation113_spill] sm:$0xff]  ;;  %v7651_v30 = vld [vmem:[#allocation115_spill] sm:$0xff] }
 0x2a8   : > { %v2936_v24 = vsel %vm7627_vm12, %v2904_v52, %v7626_v13  ;;  %vm7630_vm0 = vmmov %vm7619_vm13  ;;  %v7653_v7 = vld [vmem:[#allocation123_spill] sm:$0xff]  ;;  %v7658_v47 = vld [vmem:[#allocation121_spill] sm:$0xff]  ;;  %v6247_v13 = vpop.permute.xlu0 %2185 }
 0x2a9   : > { %v2905_v41 = vsel %vm7630_vm0, %v2872_v36, %v7629_v6  ;;  %vm7632_vm6 = vmmov %vm7621_vm5  ;;  %v7657_v14 = vld [vmem:[#allocation119_spill] sm:$0xff]  ;;  %v7664_v21 = vld [vmem:[#allocation125_spill] sm:$0xff]  ;;  %v6255_v6 = vpop.permute.xlu1 %2281 }
 0x2aa   : > { %v3034_v48 = vsel %vm7632_vm6, %v3001_v15, %v7631_v1  ;;  %vm7634_vm14 = vmmov %vm7615_vm15  ;;  %v7660_v4 = vld [vmem:[#allocation127_spill] sm:$0xff]  ;;  %v7668_v1 = vld [vmem:[#allocation124_spill] sm:$0xff] }
 0x2ab   : > { %v2840_v19 = vsel %vm7634_vm14, %v4710_v45, %v7633_v23  ;;  %vm7636_vm15 = vmmov %vm7617_vm1  ;;  %v3067_v63 = vsel %vm3056_vm8, %v3034_v48, %v5805_v40  ;;  %v7647_v40 = vld [vmem:[#allocation111_spill] sm:$0xff]  ;;  %v7670_v45 = vld [vmem:[#allocation129_spill] sm:$0xff] }
 0x2ac   : > { %v2969_v25 = vsel %vm7636_vm15, %v2936_v24, %v7635_v27  ;;  %vm7638_vm1 = vmmov %vm7627_vm12  ;;  %4576 = vmatprep.mubr.msk.f32.mxu1 %vm3101_vm7, %v3067_v63 }
 0x2ad   : > { %v2937_v10 = vsel %vm7638_vm1, %v2905_v41, %v7637_v8  ;;  %vm7640_vm13 = vmmov %vm7623_vm10  ;;  %v2634_v8 = vpop.permute.xlu0 %2633  ;;  %v2760_v63 = vpop.permute.xlu1 %2759 }
 0x2ae   : > { %v2873_v43 = vsel %vm7640_vm13, %v2840_v19, %v7639_v33  ;;  %vm7642_vm5 = vmmov %vm7625_vm2  ;;  %vm6221_vm2 = vcmp.ne.s32.totalorder %v1319_v37, 0  ;;  %v7655_v37 = vld [vmem:[#allocation117_spill] sm:$0xff]  ;;  %v4711_v33 = vld [vmem:[#allocation4 + $0x7f] sm:$0xff] }
 0x2af   : > { %v3002_v29 = vsel %vm7642_vm5, %v2969_v25, %v7641_v32  ;;  %vm7644_vm10 = vmmov %vm7636_vm15  ;;  %v1749_v27 = vsel %vm6221_vm2, %v6100_v42, 0.0  ;;  %v7679_v32 = vld [vmem:[#allocation122_spill] sm:$0xff] }
 0x2b0   : > { %v2970_v16 = vsel %vm7644_vm10, %v2937_v10, %v7643_v38  ;;  %vm7648_vm12 = vmmov %vm7630_vm0  ;;  %2199 = vrot.lane.b32.xlu1 %v1749_v27, %s4762_s22  ;;  %v7681_v38 = vld [vmem:[#allocation126_spill] sm:$0xff] }
 0x2b1   : > { %v2906_v2 = vsel %vm7648_vm12, %v2873_v43, %v7647_v40  ;;  %vm7650_vm0 = vmmov %vm7632_vm6  ;;  %v7677_v43 = vld [vmem:[#allocation118_spill] sm:$0xff]  ;;  %v6307_v40 = vpop.permute.xlu1 %2283 }
 0x2b2   : > { %v3035_v56 = vsel %vm7650_vm0, %v3002_v29, %v7649_v28  ;;  %vm7652_vm6 = vmmov %vm7634_vm14  ;;  %v6303_v29 = vld [vmem:[#allocation4 + $0xdf] sm:$0xff] }
 0x2b3   : > { %v2841_v52 = vsel %vm7652_vm6, %v1545_v60, %v7651_v30  ;;  %vm7654_vm14 = vmmov %vm7642_vm5  ;;  %v3068_v36 = vsel %vm3056_vm8, %v3035_v56, %v7657_v14  ;;  %v7662_v60 = vld [vmem:[#allocation120_spill] sm:$0xff]  ;;  %v1622_v14 = vld [vmem:[#allocation4 + $0xe1] sm:$0xff] }
 0x2b4   : > { %v3003_v20 = vsel %vm7654_vm14, %v2970_v16, %v7653_v7  ;;  %vm7656_vm15 = vmmov %vm7638_vm1  ;;  %4577 = vmatmul.mubr.msk.f32.gmra.mrb[26].mxu1 %vm3101_vm7, %v3068_v36 }
 0x2b5   : > { %v2938_v5 = vsel %vm7656_vm15, %v2906_v2, %v7655_v37  ;;  %vm7659_vm1 = vmmov %vm7640_vm13  ;;  %v2762_v7 = vpop.permute.xlu1 %2761  ;;  %v1590_v37 = vld [vmem:[#allocation4 + $0xe0] sm:$0xff] }
 0x2b6   : > { %v2874_v15 = vsel %vm7659_vm1, %v2841_v52, %v7658_v47  ;;  %vm7661_vm13 = vmmov %vm7650_vm0  ;;  %v1854_v47 = vsel %vm5910_vm3, %v1622_v14, 0.0 }
 0x2b7   : > { %v3036_v58 = vsel %vm7661_vm13, %v3003_v20, %v7660_v4  ;;  %vm7663_vm9 = vmmov %vm7644_vm10  ;;  %vm6258_vm10 = vcmp.ne.s32.totalorder %v1326_v44, 15  ;;  %v1141_v4 = vadd.s32 208, %v5181_v0 }
 0x2b8   : > { %v2971_v24 = vsel %vm7663_vm9, %v2938_v5, %v7662_v60  ;;  %vm7665_vm5 = vmmov %vm7648_vm12  ;;  %v3069_v18 = vsel %vm3056_vm8, %v3036_v58, %v5883_v34  ;;  %v7672_v34 = vld [vmem:[#allocation128_spill] sm:$0xff]  ;;  %v1142_v60 = vadd.s32 216, %v5181_v0  ;;  %v1786_v27 = vsel %vm6258_vm10, %v1622_v14, 0.0 }
 0x2b9   : > { %v2907_v59 = vsel %vm7665_vm5, %v2874_v15, %v7664_v21  ;;  %vm7669_vm12 = vmmov %vm7654_vm14  ;;  %4579 = vmatprep.mubr.msk.f32.mxu1 %vm3101_vm7, %v3069_v18  ;;  %v6325_v5 = vpop.permute.xlu1 %2059  ;;  %v1333_v22 = vand.u32 15, %v1141_v4  ;;  %v1144_v21 = vadd.s32 232, %v5181_v0 }
 0x2ba   : > { %v3004_v48 = vsel %vm7669_vm12, %v2971_v24, %v7668_v1  ;;  %vm7671_vm0 = vmmov %vm7656_vm15  ;;  %v4712_v24 = vld [vmem:[#allocation4 + $0x87] sm:$0xff] }
 0x2bb   : > { %v2939_v23 = vsel %vm7671_vm0, %v2907_v59, %v7670_v45  ;;  %vm7673_vm6 = vmmov %vm7661_vm13  ;;  %vm7678_vm13 = vcmask 31744   ;;  %v1547_v59 = vsel %vm5674_vm4, %v4712_v24, 0.0  ;;  %v6343_v1 = vld [vmem:[#allocation4 + $0xe7] sm:$0xff]  ;;  %v1340_v45 = vand.u32 15, %v1142_v60 }
 0x2bc   : > { %v3037_v44 = vsel %vm7673_vm6, %v3004_v48, %v7672_v34  ;;  %vm7674_vm14 = vmmov %vm7663_vm9  ;;  %vm7680_vm9 = vcmask 64512   ;;  %v1819_v34 = vsel %vm6221_vm2, %v6343_v1, 0.0  ;;  %vm6358_vm4 = vcmp.ne.s32.totalorder %v1333_v22, 0 }
 0x2bd   : > { %v2972_v19 = vsel %vm7674_vm14, %v2939_v23, %v6015_v3  ;;  %v3070_v25 = vsel %vm3056_vm8, %v3037_v44, %v6022_v31  ;;  %vm7675_vm15 = vmmov %vm7669_vm12  ;;  %v1716_v3 = vsel %vm6258_vm10, %v6090_v62, 0.0  ;;  %v2842_v31 = vsel %vm7678_vm13, %v4711_v33, %v7677_v43  ;;  %v2538_v36 = vpop.permute.xlu1 %2537 }
 0x2be   : > { %v3005_v57 = vsel %vm7675_vm15, %v2972_v19, %v6125_v53  ;;  %vm7676_vm1 = vmmov %vm7673_vm6  ;;  %4580 = vmatmul.mubr.msk.f32.gmra.mrb[28].mxu1 %vm3101_vm7, %v3070_v25  ;;  %2073 = vrot.lane.b32.xlu0 %v1716_v3, %s4765_s25  ;;  %v1589_v53 = vld [vmem:[#allocation4 + $0xd8] sm:$0xff]  ;;  %v2875_v62 = vsel %vm7680_vm9, %v2842_v31, %v7679_v32  ;;  %v4713_v31 = vld [vmem:[#allocation4 + $0x8f] sm:$0xff]  ;;  %v1143_v60 = vadd.s32 224, %v5181_v0 }
 0x2bf   : > { %v3038_v10 = vsel %vm7676_vm1, %v3005_v57, %v2632_v12  ;;  %v6301_v12 = vpop.permute.xlu0 %1931  ;;  %v2908_v16 = vsel %vm7665_vm5, %v2875_v62, %v7681_v38  ;;  %vm7682_vm12 = vmmov %vm7671_vm0  ;;  %2647 = vrot.lane.b32.xlu1 %v1589_v53, %s4767_s27  ;;  %v1591_v32 = vld [vmem:[#allocation4 + $0xe8] sm:$0xff] }
 0x2c0   : > { %v3071_v61 = vsel %vm3056_vm8, %v3038_v10, %v2760_v63  ;;  %v2940_v2 = vsel %vm7682_vm12, %v2908_v16, %v5994_v55  ;;  %vm7683_vm0 = vmmov %vm7674_vm14  ;;  %v1621_v55 = vld [vmem:[#allocation4 + $0xd9] sm:$0xff]  ;;  %v1751_v10 = vsel %vm6358_vm4, %v6343_v1, 0.0  ;;  %v6392_v16 = vld [vmem:[#allocation4 + $0xef] sm:$0xff]  ;;  %v1347_v41 = vand.u32 15, %v1143_v60 }
 0x2c1   : > { %4582 = vmatprep.mubr.msk.f32.mxu1 %vm3101_vm7, %v3071_v61  ;;  %v2973_v28 = vsel %vm7683_vm0, %v2940_v2, %v6113_v51  ;;  %vm7684_vm6 = vmmov %vm7675_vm15  ;;  %v6336_v58 = vpop.permute.xlu1 %2187 }
 0x2c2   : > { %2551 = vrot.lane.b32.xlu0 %v6303_v29, %s4766_s26  ;;  %v3006_v56 = vsel %vm7684_vm6, %v2973_v28, %v2536_v50  ;;  %vm7685_vm14 = vmmov %vm7676_vm1 }
 0x2c3   : > { %v2410_v30 = vpop.permute.xlu0 %2409  ;;  %v3039_v52 = vsel %vm7685_vm14, %v3006_v56, %v2634_v8  ;;  %2297 = vrot.lane.b32.xlu1 %v1589_v53, %s4761_s18  ;;  %vm7687_vm3 = vmmov %vm7678_vm13  ;;  %vm6366_vm13 = vcmp.ne.s32.totalorder %v1340_v45, 15  ;;  %v6432_v45 = vld [vmem:[#allocation4 + $0xf7] sm:$0xff] }
 0x2c4   : > { %v3072_v20 = vsel %vm3056_vm8, %v3039_v52, %v2762_v7  ;;  %v2843_v23 = vsel %vm7687_vm3, %v1547_v59, %v5987_v54  ;;  %vm7688_vm15 = vmmov %vm7680_vm9  ;;  %v1718_v61 = vsel %vm6366_vm13, %v1622_v14, 0.0  ;;  %v1624_v14 = vld [vmem:[#allocation4 + $0xf1] sm:$0xff] }
 0x2c5   : > { %4583 = vmatmul.mubr.msk.f32.gmra.mrb[30].mxu1 %vm3101_vm7, %v3072_v20  ;;  %v2636_v48 = vpop.permute.xlu1 %2635  ;;  %v2876_v44 = vsel %vm7688_vm15, %v2843_v23, %v6075_v17  ;;  %vm7691_vm1 = vmmov %vm7665_vm5  ;;  %v7705_v59 = vld [vmem:[#allocation80_spill] sm:$0xff] }
 0x2c6   : > { %2201 = vrot.lane.b32.xlu0 %v6303_v29, %s4762_s22  ;;  %v2909_v54 = vsel %vm7691_vm1, %v2876_v44, %v6170_v49  ;;  %vm7694_vm9 = vmmov %vm7682_vm12 }
 0x2c7   : > { %v6323_v51 = vpop.permute.xlu0 %1933  ;;  %2775 = vrot.lane.b32.xlu1 %v1621_v55, %s4768_s28  ;;  %v2941_v17 = vsel %vm7694_vm9, %v2909_v54, %v6255_v6  ;;  %vm7695_vm5 = vmmov %vm7683_vm0 }
 0x2c8   : > { %v2974_v3 = vsel %vm7695_vm5, %v2941_v17, %v2410_v30  ;;  %vm7696_vm12 = vmmov %vm7684_vm6 }
 0x2c9   : > { %v6364_v57 = vpop.permute.xlu1 %2285  ;;  %v3007_v49 = vsel %vm7696_vm12, %v2974_v3, %v2538_v36  ;;  %vm7697_vm0 = vmmov %vm7685_vm14  ;;  %v1788_v3 = vsel %vm6366_vm13, %v1624_v14, 0.0 }
 0x2ca   : > { %2649 = vrot.lane.b32.xlu0 %v1590_v37, %s4767_s27  ;;  %v3040_v33 = vsel %vm7697_vm0, %v3007_v49, %v2636_v48  ;;  %vm7698_vm6 = vmmov %vm7687_vm3 }
 0x2cb   : > { %v2412_v50 = vpop.permute.xlu0 %2411  ;;  %2299 = vrot.lane.b32.xlu1 %v1590_v37, %s4761_s18  ;;  %vm7699_vm14 = vmmov %vm7688_vm15 }
 0x2cc   : > { %vm7700_vm3 = vmmov %vm7691_vm1 }
 0x2cd   : > { %v2764_v43 = vpop.permute.xlu1 %2763  ;;  %vm7701_vm15 = vmmov %vm7694_vm9 }
 0x2ce   : > { %1947 = vrot.lane.b32.xlu0 %v1589_v53, %s4763_s23  ;;  %v3073_v6 = vsel %vm3056_vm8, %v3040_v33, %v2764_v43  ;;  %v2844_v53 = vsel %vm7698_vm6, %v4713_v31, %v6062_v46  ;;  %vm7702_vm1 = vmmov %vm7695_vm5 }
 0x2cf   : > { %v6333_v15 = vpop.permute.xlu0 %2061  ;;  %2777 = vrot.lane.b32.xlu1 %v1854_v47, %s4768_s28  ;;  %4585 = vmatprep.mubr.msk.f32.mxu1 %vm3101_vm7, %v3073_v6  ;;  %v2877_v62 = vsel %vm7699_vm14, %v2844_v53, %v6160_v9  ;;  %vm7703_vm9 = vmmov %vm7696_vm12  ;;  %v1856_v47 = vsel %vm6258_vm10, %v1624_v14, 0.0 }
 0x2d0   : > { %v2910_v2 = vsel %vm7700_vm3, %v2877_v62, %v6247_v13  ;;  %vm7704_vm5 = vmmov %vm7697_vm0  ;;  %v7715_v62 = vld [vmem:[#allocation87_spill] sm:$0xff] }
 0x2d1   : > { %v6396_v28 = vpop.permute.xlu1 %2287  ;;  %v2942_v46 = vsel %vm7701_vm15, %v2910_v2, %v6307_v40  ;;  %v1623_v40 = vld [vmem:[#allocation4 + $0xe9] sm:$0xff]  ;;  %vm7708_vm10 = vmmov %vm7698_vm6  ;;  %vm6447_vm6 = vcmp.ne.s32.totalorder %v1347_v41, 0 }
 0x2d2   : > { %2425 = vrot.lane.b32.xlu0 %v1621_v55, %s4764_s24  ;;  %v2975_v56 = vsel %vm7702_vm1, %v2942_v46, %v2412_v50  ;;  %vm7709_vm0 = vmmov %vm7699_vm14  ;;  %v1753_v33 = vsel %vm6447_vm6, %v6432_v45, 0.0  ;;  %v1593_v46 = vld [vmem:[#allocation4 + $0xf8] sm:$0xff] }
 0x2d3   : > { %v2540_v18 = vpop.permute.xlu0 %2539  ;;  %2075 = vrot.lane.b32.xlu1 %v1621_v55, %s4765_s25  ;;  %v1592_v55 = vld [vmem:[#allocation4 + $0xf0] sm:$0xff]  ;;  %vm7712_vm14 = vmmov %vm7700_vm3 }
 0x2d4   : > { %v3008_v9 = vsel %vm7703_vm9, %v2975_v56, %v2540_v18  ;;  %v7706_v18 = vld [vmem:[#allocation101_spill] sm:$0xff] }
 0x2d5   : > { %v2766_v7 = vpop.permute.xlu1 %2765  ;;  %vm7707_vm12 = vnez %v7706_v18 }
 0x2d6   : > { %1949 = vrot.lane.b32.xlu0 %v1590_v37, %s4763_s23  ;;  %v1549_v22 = vsel %vm7707_vm12, %v7705_v59, 0.0  ;;  %vm7716_vm12 = vmmov %vm7708_vm10 }
 0x2d7   : > { %v6354_v19 = vpop.permute.xlu0 %2189  ;;  %2553 = vrot.lane.b32.xlu1 %v1819_v34, %s4766_s26  ;;  %v1354_v34 = vand.u32 15, %v1144_v21  ;;  %v2845_v44 = vsel %vm7708_vm10, %v1549_v22, %v6301_v12  ;;  %v2846_v2 = vsel %vm7716_vm12, %v7715_v62, %v6323_v51  ;;  %vm7717_vm10 = vmmov %vm7709_vm0  ;;  %vm7723_vm12 = vcmask 228352   ;;  %v1626_v21 = vld [vmem:[#allocation4 + $0x101] sm:$0xff] }
 0x2d8   : > { %v2878_v54 = vsel %vm7709_vm0, %v2845_v44, %v6325_v5  ;;  %v2879_v56 = vsel %vm7717_vm10, %v2846_v2, %v6333_v15  ;;  %vm7718_vm0 = vcmask 1043456   ;;  %v1858_v18 = vsel %vm6366_vm13, %v1626_v21, 0.0 }
 0x2d9   : > { %v6413_v37 = vpop.permute.xlu1 %2063  ;;  %v2911_v12 = vsel %vm7712_vm14, %v2878_v54, %v6336_v58  ;;  %vm6455_vm3 = vcmp.ne.s32.totalorder %v1354_v34, 15  ;;  %v4714_v34 = vld [vmem:[#allocation4 + $0xa7] sm:$0xff]  ;;  %vm7724_vm10 = vnez %v7475_v11  ;;  %vm7725_vm13 = vcmask 31744  }
 0x2da   : > { %2427 = vrot.lane.b32.xlu0 %v1786_v27, %s4764_s24  ;;  %v1821_v27 = vsel %vm6358_vm4, %v6432_v45, 0.0  ;;  %v2943_v5 = vsel %vm7701_vm15, %v2911_v12, %v6364_v57  ;;  %v1720_v6 = vsel %vm6455_vm3, %v1624_v14, 0.0  ;;  %vm7719_vm15 = vmmov %vm7718_vm0  ;;  %v1551_v44 = vsel %vm7724_vm10, %v4714_v34, 0.0  ;;  %v1723_v54 = vld [vmem:[#allocation4 + $0x107] sm:$0xff] }
 0x2db   : > { %v2638_v63 = vpop.permute.xlu0 %2637  ;;  %2203 = vrot.lane.b32.xlu1 %v1751_v10, %s4762_s22  ;;  %v1790_v11 = vsel %vm6455_vm3, %v1626_v21, 0.0  ;;  %vm7735_vm10 = vcmask 228352  }
 0x2dc   : > { %v3041_v52 = vsel %vm7704_vm5, %v3008_v9, %v2638_v63 }
 0x2dd   : > { %v3074_v13 = vsel %vm3056_vm8, %v3041_v52, %v2766_v7  ;;  %v2542_v36 = vpop.permute.xlu1 %2541  ;;  %v2912_v52 = vsel %vm7712_vm14, %v2879_v56, %v6354_v19 }
 0x2de   : > { %2077 = vrot.lane.b32.xlu0 %v1718_v61, %s4765_s25  ;;  %4586 = vmatmul.mubr.msk.f32.gmra.mrb[32].mxu1 %vm3101_vm7, %v3074_v13 }
 0x2df   : > { %v6390_v38 = vpop.permute.xlu0 %1935  ;;  %2651 = vrot.lane.b32.xlu1 %v1591_v32, %s4767_s27 }
 0x2e1   : > { %v6424_v24 = vpop.permute.xlu1 %2191 }
 0x2e2   : > { %2555 = vrot.lane.b32.xlu0 %v6392_v16, %s4766_s26 }
 0x2e3   : > { %v2414_v30 = vpop.permute.xlu0 %2413  ;;  %2301 = vrot.lane.b32.xlu1 %v1591_v32, %s4761_s18 }
 0x2e4   : > { %v2976_v61 = vsel %vm7702_vm1, %v2943_v5, %v2414_v30  ;;  %v6485_v30 = vld [vmem:[#allocation4 + $0xff] sm:$0xff]  ;;  %vm7720_vm1 = vcmask 130048   ;;  %v2847_v5 = vsel %vm7725_vm13, %v1551_v44, %v6390_v38 }
 0x2e5   : > { %v2640_v23 = vpop.permute.xlu1 %2639  ;;  %v3009_v58 = vsel %vm7703_vm9, %v2976_v61, %v2542_v36  ;;  %v2944_v51 = vsel %vm7720_vm1, %v2912_v52, %v6396_v28  ;;  %vm7721_vm9 = vcmask 162816   ;;  %v1625_v28 = vld [vmem:[#allocation4 + $0xf9] sm:$0xff]  ;;  %v1757_v52 = vld [vmem:[#allocation4 + $0x108] sm:$0xff] }
 0x2e6   : > { %2205 = vrot.lane.b32.xlu0 %v6392_v16, %s4762_s22  ;;  %v3042_v31 = vsel %vm7704_vm5, %v3009_v58, %v2640_v23  ;;  %vm7722_vm5 = vcmask 195584   ;;  %v1594_v36 = vld [vmem:[#allocation4 + $0x100] sm:$0xff]  ;;  %v1146_v23 = vadd.s32 248, %v5181_v0 }
 0x2e7   : > { %v6411_v20 = vpop.permute.xlu0 %1937  ;;  %2779 = vrot.lane.b32.xlu1 %v1623_v40, %s4768_s28 }
 0x2e8   : > { %v1368_v12 = vand.u32 15, %v1146_v23  ;;  %v1760_v23 = vld [vmem:[#allocation4 + $0x111] sm:$0xff] }
 0x2e9   : > { %v6453_v49 = vpop.permute.xlu1 %2289 }
 0x2ea   : > { %2653 = vrot.lane.b32.xlu0 %v1592_v55, %s4767_s27  ;;  %vm6546_vm1 = vcmp.ne.s32.totalorder %v1368_v12, 15 }
 0x2eb   : > { %v2416_v50 = vpop.permute.xlu0 %2415  ;;  %2303 = vrot.lane.b32.xlu1 %v1592_v55, %s4761_s18 }
 0x2ec   : > { %v2977_v15 = vsel %vm7721_vm9, %v2944_v51, %v2416_v50  ;;  %vm7732_vm9 = vcmask 130048  }
 0x2ed   : > { %v2768_v53 = vpop.permute.xlu1 %2767 }
 0x2ee   : > { %1951 = vrot.lane.b32.xlu0 %v1591_v32, %s4763_s23  ;;  %v3075_v57 = vsel %vm3056_vm8, %v3042_v31, %v2768_v53  ;;  %v3523_v32 = vld [vmem:[%s7275_s6] sm:$0xf] }
 0x2ef   : > { %v6421_v4 = vpop.permute.xlu0 %2065  ;;  %2781 = vrot.lane.b32.xlu1 %v1856_v47, %s4768_s28  ;;  %4588 = vmatprep.mubr.msk.f32.mxu1 %vm3101_vm7, %v3075_v57  ;;  %v1722_v57 = vsel %vm6546_vm1, %v1626_v21, 0.0  ;;  %v1758_v21 = vld [vmem:[#allocation4 + $0x110] sm:$0xff] }
 0x2f0   : > { %4609 = vmatprep.subr.msk.mxu0 %vm7718_vm0, %v3523_v32  ;;  %vm7726_vm0 = vcmask 64512  }
 0x2f1   : > { %v6490_v7 = vpop.permute.xlu1 %2291  ;;  %4610 = vmatpush3.msk.msra.mxu0 %vm7719_vm15, %v3523_v32  ;;  %v2880_v61 = vsel %vm7726_vm0, %v2847_v5, %v6413_v37  ;;  %vm7729_vm15 = vcmask 97280  }
 0x2f2   : > { %2429 = vrot.lane.b32.xlu0 %v1623_v40, %s4764_s24  ;;  %v2913_v58 = vsel %vm7729_vm15, %v2880_v61, %v6424_v24  ;;  %v1794_v61 = vld [vmem:[#allocation4 + $0x11f] sm:$0xff] }
 0x2f3   : > { %v2544_v48 = vpop.permute.xlu0 %2543  ;;  %2079 = vrot.lane.b32.xlu1 %v1623_v40, %s4765_s25  ;;  %v2945_v37 = vsel %vm7732_vm9, %v2913_v58, %v6453_v49 }
 0x2f4   : > { %v3010_v13 = vsel %vm7722_vm5, %v2977_v15, %v2544_v48  ;;  %v1145_v48 = vadd.s32 240, %v5181_v0  ;;  %v1823_v0 = vsel %vm6447_vm6, %v1723_v54, 0.0  ;;  %vm7733_vm5 = vcmask 162816   ;;  %v1724_v15 = vld [vmem:[#allocation4 + $0x10f] sm:$0xff] }
 0x2f5   : > { %v2770_v19 = vpop.permute.xlu1 %2769 }
 0x2f6   : > { %1953 = vrot.lane.b32.xlu0 %v1592_v55, %s4763_s23  ;;  %v1361_v8 = vand.u32 15, %v1145_v48 }
 0x2f7   : > { %v6443_v17 = vpop.permute.xlu0 %2193  ;;  %2557 = vrot.lane.b32.xlu1 %v1821_v27, %s4766_s26 }
 0x2f8   : > { %vm6536_vm14 = vcmp.ne.s32.totalorder %v1361_v8, 0  ;;  %v1793_v8 = vld [vmem:[#allocation4 + $0x117] sm:$0xff] }
 0x2f9   : > { %v6508_v47 = vpop.permute.xlu1 %2067  ;;  %v1755_v24 = vsel %vm6536_vm14, %v1723_v54, 0.0  ;;  %v1860_v54 = vsel %vm6455_vm3, %v1760_v23, 0.0  ;;  %vm7736_vm3 = vmmov %vm7726_vm0 }
 0x2fa   : > { %2431 = vrot.lane.b32.xlu0 %v1788_v3, %s4764_s24 }
 0x2fb   : > { %v2642_v43 = vpop.permute.xlu0 %2641  ;;  %2207 = vrot.lane.b32.xlu1 %v1753_v33, %s4762_s22 }
 0x2fc   : > { %v3043_v55 = vsel %vm7723_vm12, %v3010_v13, %v2642_v43  ;;  %vm7734_vm12 = vcmask 195584  }
 0x2fd   : > { %v3076_v14 = vsel %vm3056_vm8, %v3043_v55, %v2770_v19  ;;  %v2546_v59 = vpop.permute.xlu1 %2545 }
 0x2fe   : > { %2081 = vrot.lane.b32.xlu0 %v1720_v6, %s4765_s25  ;;  %4589 = vmatmul.mubr.msk.f32.gmra.mrb[34].mxu1 %vm3101_vm7, %v3076_v14 }
 0x2ff   : > { %v6483_v9 = vpop.permute.xlu0 %1939  ;;  %2655 = vrot.lane.b32.xlu1 %v1593_v46, %s4767_s27 }
 0x301   : > { %v6519_v41 = vpop.permute.xlu1 %2195 }
 0x302   : > { %2559 = vrot.lane.b32.xlu0 %v6485_v30, %s4766_s26 }
 0x303   : > { %v2418_v40 = vpop.permute.xlu0 %2417  ;;  %2305 = vrot.lane.b32.xlu1 %v1593_v46, %s4761_s18 }
 0x304   : > { %v2978_v31 = vsel %vm7733_vm5, %v2945_v37, %v2418_v40 }
 0x305   : > { %v2644_v3 = vpop.permute.xlu1 %2643  ;;  %v3011_v53 = vsel %vm7734_vm12, %v2978_v31, %v2546_v59 }
 0x306   : > { %2209 = vrot.lane.b32.xlu0 %v6485_v30, %s4762_s22  ;;  %v3044_v32 = vsel %vm7735_vm10, %v3011_v53, %v2644_v3  ;;  %v4716_v3 = vld [vmem:[#allocation4 + $0xb7] sm:$0xff] }
 0x307   : > { %v6506_v50 = vpop.permute.xlu0 %1941  ;;  %2783 = vrot.lane.b32.xlu1 %v1625_v28, %s4768_s28  ;;  %v1553_v12 = vsel %vm5906_vm11, %v4716_v3, 0.0  ;;  %vm7738_vm11 = vmmov %vm7732_vm9 }
 0x308   : > { %v2849_v58 = vsel %vm7725_vm13, %v1553_v12, %v6483_v9 }
 0x309   : > { %v6542_v43 = vpop.permute.xlu1 %2293  ;;  %v2882_v63 = vsel %vm7736_vm3, %v2849_v58, %v6508_v47 }
 0x30a   : > { %2657 = vrot.lane.b32.xlu0 %v1594_v36, %s4767_s27 }
 0x30b   : > { %v2420_v60 = vpop.permute.xlu0 %2419  ;;  %2307 = vrot.lane.b32.xlu1 %v1594_v36, %s4761_s18 }
 0x30d   : > { %v2772_v62 = vpop.permute.xlu1 %2771 }
 0x30e   : > { %1955 = vrot.lane.b32.xlu0 %v1593_v46, %s4763_s23  ;;  %v3077_v49 = vsel %vm3056_vm8, %v3044_v32, %v2772_v62  ;;  %v4715_v46 = vld [vmem:[#allocation4 + $0xaf] sm:$0xff]  ;;  %v1830_v32 = vld [vmem:[#allocation4 + $0x121] sm:$0xff] }
 0x30f   : > { %v6516_v22 = vpop.permute.xlu0 %2069  ;;  %2785 = vrot.lane.b32.xlu1 %v1858_v18, %s4768_s28  ;;  %v2848_v56 = vsel %vm7725_vm13, %v4715_v46, %v6411_v20  ;;  %4591 = vmatprep.mubr.msk.f32.mxu1 %vm3101_vm7, %v3077_v49  ;;  %v1862_v49 = vsel %vm6546_vm1, %v1830_v32, 0.0 }
 0x310   : > { %v2881_v51 = vsel %vm7726_vm0, %v2848_v56, %v6421_v4  ;;  %vm7737_vm0 = vmmov %vm7729_vm15  ;;  %v4717_v56 = vld [vmem:[#allocation4 + $0xbf] sm:$0xff] }
 0x311   : > { %v2914_v13 = vsel %vm7729_vm15, %v2881_v51, %v6443_v17  ;;  %v6571_v40 = vpop.permute.xlu1 %2295  ;;  %v2915_v26 = vsel %vm7737_vm0, %v2882_v63, %v6519_v41  ;;  %vm7739_vm15 = vmmov %vm7733_vm5 }
 0x312   : > { %2433 = vrot.lane.b32.xlu0 %v1625_v28, %s4764_s24  ;;  %v2946_v19 = vsel %vm7732_vm9, %v2914_v13, %v6490_v7  ;;  %v1759_v7 = vld [vmem:[#allocation4 + $0x109] sm:$0xff]  ;;  %v2947_v53 = vsel %vm7738_vm11, %v2915_v26, %v6542_v43  ;;  %vm7740_vm9 = vmmov %vm7734_vm12  ;;  %v1829_v43 = vld [vmem:[#allocation4 + $0x119] sm:$0xff] }
 0x313   : > { %v2548_v27 = vpop.permute.xlu0 %2547  ;;  %2083 = vrot.lane.b32.xlu1 %v1625_v28, %s4765_s25  ;;  %v2979_v20 = vsel %vm7733_vm5, %v2946_v19, %v2420_v60  ;;  %vm7741_vm5 = vmmov %vm7735_vm10 }
 0x314   : > { %v3012_v14 = vsel %vm7734_vm12, %v2979_v20, %v2548_v27  ;;  %v1792_v27 = vsel %vm6546_vm1, %v1760_v23, 0.0  ;;  %vm7742_vm12 = vmmov %vm7725_vm13 }
 0x315   : > { %v2774_v28 = vpop.permute.xlu1 %2773  ;;  %vm7744_vm13 = vmmov %vm7737_vm0 }
 0x316   : > { %1957 = vrot.lane.b32.xlu0 %v1594_v36, %s4763_s23  ;;  %vm7745_vm1 = vmmov %vm7738_vm11 }
 0x317   : > { %v6544_v38 = vpop.permute.xlu0 %2197  ;;  %2561 = vrot.lane.b32.xlu1 %v1823_v0, %s4766_s26  ;;  %vm7747_vm0 = vmmov %vm7740_vm9 }
 0x318   : > { %vm7748_vm11 = vmmov %vm7741_vm5 }
 0x319   : > { %v6586_v59 = vpop.permute.xlu1 %2071 }
 0x31a   : > { %2435 = vrot.lane.b32.xlu0 %v1790_v11, %s4764_s24  ;;  %v1825_v11 = vsel %vm6536_vm14, %v1793_v8, 0.0 }
 0x31b   : > { %v2646_v2 = vpop.permute.xlu0 %2645  ;;  %2211 = vrot.lane.b32.xlu1 %v1755_v24, %s4762_s22  ;;  %v1828_v24 = vld [vmem:[#allocation4 + $0x120] sm:$0xff] }
 0x31c   : > { %v3045_v4 = vsel %vm7735_vm10, %v3012_v14, %v2646_v2  ;;  %vm7743_vm10 = vmmov %vm7736_vm3 }
 0x31d   : > { %v3078_v17 = vsel %vm3056_vm8, %v3045_v4, %v2774_v28  ;;  %v2550_v18 = vpop.permute.xlu1 %2549  ;;  %vm7746_vm3 = vmmov %vm7739_vm15 }
 0x31e   : > { %2085 = vrot.lane.b32.xlu0 %v1722_v57, %s4765_s25  ;;  %4592 = vmatmul.mubr.msk.f32.gmra.mrb[36].mxu1 %vm3101_vm7, %v3078_v17  ;;  %v1827_v57 = vld [vmem:[#allocation4 + $0x118] sm:$0xff] }
 0x31f   : > { %v6573_v55 = vpop.permute.xlu0 %1943  ;;  %2659 = vrot.lane.b32.xlu1 %v1757_v52, %s4767_s27 }
 0x322   : > { %2563 = vrot.lane.b32.xlu0 %v1724_v15, %s4766_s26  ;;  %v6594_v34 = vpop.permute.xlu1 %2199 }
 0x323   : > { %v2422_v36 = vpop.permute.xlu0 %2421  ;;  %2309 = vrot.lane.b32.xlu1 %v1757_v52, %s4761_s18  ;;  %v2850_v52 = vsel %vm7742_vm12, %v4717_v56, %v6506_v50 }
 0x324   : > { %v2980_v9 = vsel %vm7739_vm15, %v2947_v53, %v2422_v36  ;;  %v2883_v51 = vsel %vm7743_vm10, %v2850_v52, %v6516_v22  ;;  %vm7749_vm15 = vmmov %vm7742_vm12 }
 0x325   : > { %v3013_v62 = vsel %vm7740_vm9, %v2980_v9, %v2550_v18  ;;  %v2916_v6 = vsel %vm7744_vm13, %v2883_v51, %v6544_v38  ;;  %vm7750_vm9 = vmmov %vm7743_vm10  ;;  %v6687_v51 = vld [vmem:[%s7274_s5] ss:$0 sm:$0xff] }
 0x326   : > { %2213 = vrot.lane.b32.xlu0 %v1724_v15, %s4762_s22  ;;  %v2948_v19 = vsel %vm7745_vm1, %v2916_v6, %v6571_v40  ;;  %v4718_v40 = vld [vmem:[#allocation4 + $0xc7] sm:$0xff]  ;;  %vm7752_vm12 = vmmov %vm7745_vm1 }
 0x327   : > { %v6588_v60 = vpop.permute.xlu0 %1945  ;;  %2787 = vrot.lane.b32.xlu1 %v1759_v7, %s4768_s28  ;;  %vm7753_vm10 = vmmov %vm7746_vm3 }
 0x328   : > { %vm7756_vm1 = vmmov %vm7749_vm15 }
 0x32a   : > { %2661 = vrot.lane.b32.xlu0 %v1758_v21, %s4767_s27 }
 0x32b   : > { %v2424_v48 = vpop.permute.xlu0 %2423  ;;  %2437 = vrot.lane.b32.xlu1 %v1759_v7, %s4764_s24 }
 0x32c   : > { %v2981_v20 = vsel %vm7746_vm3, %v2948_v19, %v2424_v48  ;;  %v1555_v48 = vsel %vm6221_vm2, %v4718_v40, 0.0  ;;  %vm7755_vm2 = vmmov %vm7748_vm11 }
 0x32d   : > { %vm7757_vm3 = vmmov %vm7750_vm9 }
 0x32e   : > { %2311 = vrot.lane.b32.xlu0 %v1758_v21, %s4761_s18 }
 0x32f   : > { %2439 = vrot.lane.b32.xlu1 %v1792_v27, %s4764_s24 }
 0x330   : > { %v6596_v44 = vpop.permute.xlu0 %2073 }
 0x331   : > { %v2648_v5 = vpop.permute.xlu1 %2647 }
 0x332   : > { %2789 = vrot.lane.b32.xlu0 %v1860_v54, %s4768_s28  ;;  %v3046_v47 = vsel %vm7741_vm5, %v3013_v62, %v2648_v5  ;;  %v2851_v54 = vsel %vm7749_vm15, %v1555_v48, %v6573_v55  ;;  %vm7751_vm5 = vmmov %vm7744_vm13 }
 0x333   : > { %2567 = vrot.lane.b32.xlu1 %v1794_v61, %s4766_s26  ;;  %v2884_v8 = vsel %vm7750_vm9, %v2851_v54, %v6586_v59  ;;  %vm7754_vm13 = vmmov %vm7747_vm0  ;;  %v2852_v59 = vsel %vm7756_vm1, %v5978_v35, %v6588_v60 }
 0x334   : > { %v2552_v0 = vpop.permute.xlu0 %2551  ;;  %v2917_v3 = vsel %vm7751_vm5, %v2884_v8, %v6594_v34  ;;  %v2885_v34 = vsel %vm7757_vm3, %v2852_v59, %v6596_v44  ;;  %vm7760_vm15 = vmmov %vm7753_vm10 }
 0x335   : > { %v2298_v37 = vpop.permute.xlu1 %2297  ;;  %v3014_v14 = vsel %vm7747_vm0, %v2981_v20, %v2552_v0  ;;  %vm7758_vm0 = vmmov %vm7751_vm5 }
 0x336   : > { %2565 = vrot.lane.b32.xlu0 %v1825_v11, %s4766_s26  ;;  %v2949_v0 = vsel %vm7752_vm12, %v2917_v3, %v2298_v37  ;;  %vm7761_vm9 = vmmov %vm7754_vm13 }
 0x337   : > { %2665 = vrot.lane.b32.xlu1 %v1828_v24, %s4767_s27  ;;  %vm7762_vm5 = vmmov %vm7755_vm2 }
 0x338   : > { %v2202_v31 = vpop.permute.xlu0 %2201 }
 0x339   : > { %v2776_v2 = vpop.permute.xlu1 %2775  ;;  %v2918_v26 = vsel %vm7758_vm0, %v2885_v34, %v2202_v31 }
 0x33a   : > { %2663 = vrot.lane.b32.xlu0 %v1827_v57, %s4767_s27  ;;  %v3079_v46 = vsel %vm3056_vm8, %v3046_v47, %v2776_v2 }
 0x33b   : > { %2793 = vrot.lane.b32.xlu1 %v1862_v49, %s4768_s28  ;;  %4594 = vmatprep.mubr.msk.f32.mxu1 %vm3101_vm7, %v3079_v46  ;;  %v1557_v46 = vsel %vm6358_vm4, %v6100_v42, 0.0  ;;  %vm7767_vm4 = vmmov %vm7760_vm15 }
 0x33c   : > { %v2650_v41 = vpop.permute.xlu0 %2649 }
 0x33d   : > { %v2300_v15 = vpop.permute.xlu1 %2299  ;;  %v3047_v50 = vsel %vm7748_vm11, %v3014_v14, %v2650_v41  ;;  %vm7759_vm11 = vmmov %vm7752_vm12 }
 0x33e   : > { %2791 = vrot.lane.b32.xlu0 %v1829_v43, %s4768_s28  ;;  %v2950_v53 = vsel %vm7759_vm11, %v2918_v26, %v2300_v15  ;;  %vm7763_vm12 = vmmov %vm7756_vm1 }
 0x33f   : > { %vm7768_vm1 = vmmov %vm7761_vm9 }
 0x340   : > { %v1948_v13 = vpop.permute.xlu0 %1947 }
 0x341   : > { %v2778_v4 = vpop.permute.xlu1 %2777  ;;  %v2853_v52 = vsel %vm7763_vm12, %v1557_v46, %v1948_v13 }
 0x342   : > { %v3080_v36 = vsel %vm3056_vm8, %v3047_v50, %v2778_v4 }
 0x343   : > { %4595 = vmatmul.mubr.msk.f32.gmra.mrb[38].mxu1 %vm3101_vm7, %v3080_v36 }
 0x344   : > { %v2426_v28 = vpop.permute.xlu0 %2425 }
 0x345   : > { %v2076_v22 = vpop.permute.xlu1 %2075  ;;  %v2982_v61 = vsel %vm7753_vm10, %v2949_v0, %v2426_v28  ;;  %vm7764_vm10 = vmmov %vm7757_vm3 }
 0x346   : > { %v2886_v6 = vsel %vm7764_vm10, %v2853_v52, %v2076_v22  ;;  %vm7769_vm3 = vmmov %vm7763_vm12 }
 0x348   : > { %v1950_v17 = vpop.permute.xlu0 %1949 }
 0x349   : > { %v2554_v38 = vpop.permute.xlu1 %2553  ;;  %v2854_v36 = vsel %vm7769_vm3, %v6303_v29, %v1950_v17 }
 0x34a   : > { %v3015_v39 = vsel %vm7754_vm13, %v2982_v61, %v2554_v38  ;;  %vm7765_vm13 = vmmov %vm7758_vm0 }
 0x34b   : > { %vm7770_vm0 = vmmov %vm7762_vm5 }
 0x34c   : > { %v2428_v7 = vpop.permute.xlu0 %2427 }
 0x34d   : > { %v2204_v21 = vpop.permute.xlu1 %2203  ;;  %v2983_v57 = vsel %vm7760_vm15, %v2950_v53, %v2428_v7 }
 0x34e   : > { %v2919_v15 = vsel %vm7765_vm13, %v2886_v6, %v2204_v21 }
 0x350   : > { %v6642_v18 = vpop.permute.xlu0 %2077 }
 0x351   : > { %v2652_v23 = vpop.permute.xlu1 %2651 }
 0x352   : > { %v3048_v11 = vsel %vm7755_vm2, %v3015_v39, %v2652_v23  ;;  %vm7766_vm2 = vmmov %vm7759_vm11 }
 0x353   : > { %vm7773_vm12 = vmmov %vm7766_vm2 }
 0x354   : > { %v2556_v27 = vpop.permute.xlu0 %2555 }
 0x355   : > { %v2302_v12 = vpop.permute.xlu1 %2301  ;;  %v3016_v32 = vsel %vm7761_vm9, %v2983_v57, %v2556_v27  ;;  %vm7771_vm9 = vmmov %vm7764_vm10 }
 0x356   : > { %v2951_v20 = vsel %vm7766_vm2, %v2919_v15, %v2302_v12  ;;  %v2887_v27 = vsel %vm7771_vm9, %v2854_v36, %v6642_v18  ;;  %vm7774_vm10 = vmmov %vm7769_vm3 }
 0x358   : > { %v2206_v5 = vpop.permute.xlu0 %2205 }
 0x359   : > { %v2780_v58 = vpop.permute.xlu1 %2779 }
 0x35a   : > { %v3081_v55 = vsel %vm3056_vm8, %v3048_v11, %v2780_v58 }
 0x35b   : > { %4597 = vmatprep.mubr.msk.f32.mxu1 %vm3101_vm7, %v3081_v55 }
 0x35c   : > { %v2654_v63 = vpop.permute.xlu0 %2653 }
 0x35d   : > { %v2304_v37 = vpop.permute.xlu1 %2303  ;;  %v3049_v9 = vsel %vm7762_vm5, %v3016_v32, %v2654_v63  ;;  %vm7772_vm5 = vmmov %vm7765_vm13 }
 0x35e   : > { %v2920_v3 = vsel %vm7772_vm5, %v2887_v27, %v2206_v5 }
 0x35f   : > { %v2952_v12 = vsel %vm7773_vm12, %v2920_v3, %v2304_v37 }
 0x360   : > { %v6664_v24 = vpop.permute.xlu0 %1951 }
 0x361   : > { %v2782_v62 = vpop.permute.xlu1 %2781 }
 0x362   : > { %v3082_v60 = vsel %vm3056_vm8, %v3049_v9, %v2782_v62  ;;  %v4563_v19 = vpop.f32.mrb[16].mxu1 }
 0x363   : > { %4598 = vmatmul.mubr.msk.f32.gmra.mrb[40].mxu1 %vm3101_vm7, %v3082_v60  ;;  %v3274_v14 = vadd.f32 %v4563_v19, %v6687_v51  ;;  %v3268_v50 = vpop.f32.mrb[17].mxu1 }
 0x364   : > { %v2430_v35 = vpop.permute.xlu0 %2429  ;;  %v3269_v28 = vadd.f32 %v6687_v51, %v3268_v50 }
 0x365   : > { %v6672_v44 = vpop.permute.xlu1 %2079  ;;  %v2984_v13 = vsel %vm7767_vm4, %v2951_v20, %v2430_v35  ;;  %v3460_v38 = vmul.f32 0.2, %v3274_v14  ;;  %vm3428_vm11 = vcmp.gt.f32.partialorder %v3274_v14, 0.0  ;;  %vm7775_vm4 = vmmov %vm7769_vm3  ;;  %vm7777_vm3 = vcmask 195584  }
 0x366   : > { %v4566_v7 = vpop.f32.mrb[18].mxu1  ;;  %vm3427_vm15 = vcmp.gt.f32.partialorder %v3269_v28, 0.0  ;;  %v3459_v23 = vmul.f32 0.2, %v3269_v28  ;;  %vm7779_vm5 = vmmov %vm7775_vm4 }
 0x367   : > { %v3284_v21 = vadd.f32 %v4566_v7, %v6687_v51  ;;  %v3278_v8 = vpop.f32.mrb[19].mxu1  ;;  %v3492_v39 = vsel %vm3428_vm11, %v3274_v14, %v3460_v38  ;;  %vm7778_vm11 = vmmov %vm7775_vm4 }
 0x368   : > { %v6674_v31 = vpop.permute.xlu0 %1953  ;;  %v3279_v29 = vadd.f32 %v6687_v51, %v3278_v8  ;;  %v3491_v17 = vsel %vm3427_vm15, %v3269_v28, %v3459_v23  ;;  %vm7780_vm12 = vmmov %vm7775_vm4 }
 0x369   : > { %v2558_v47 = vpop.permute.xlu1 %2557  ;;  %v3462_v0 = vmul.f32 0.2, %v3284_v21  ;;  %4611 = vmatprep.mubr.msk.f32.mxu0 %vm7774_vm10, %v3491_v17  ;;  %vm3430_vm13 = vcmp.gt.f32.partialorder %v3284_v21, 0.0 }
 0x36a   : > { %v3017_v4 = vsel %vm7768_vm1, %v2984_v13, %v2558_v47  ;;  %v4569_v61 = vpop.f32.mrb[20].mxu1  ;;  %vm3429_vm2 = vcmp.gt.f32.partialorder %v3279_v29, 0.0  ;;  %v3461_v18 = vmul.f32 0.2, %v3279_v29  ;;  %4612 = vmatmul.mubr.msk.f32.vlgmr.msra.gmra.mrb[20].mxu0 %vm7775_vm4, %v3492_v39  ;;  %vm7776_vm1 = vcmask 162816  }
 0x36b   : > { %v3294_v11 = vadd.f32 %v4569_v61, %v6687_v51  ;;  %v3288_v55 = vpop.f32.mrb[21].mxu1  ;;  %v3494_v32 = vsel %vm3430_vm13, %v3284_v21, %v3462_v0 }
 0x36c   : > { %v2432_v2 = vpop.permute.xlu0 %2431  ;;  %v3289_v34 = vadd.f32 %v6687_v51, %v3288_v55  ;;  %v3493_v26 = vsel %vm3429_vm2, %v3279_v29, %v3461_v18  ;;  %vm7781_vm2 = vmmov %vm7775_vm4 }
 0x36d   : > { %v6676_v41 = vpop.permute.xlu1 %2207  ;;  %v2985_v63 = vsel %vm7776_vm1, %v2952_v12, %v2432_v2  ;;  %v3464_v53 = vmul.f32 0.2, %v3294_v11  ;;  %4614 = vmatprep.mubr.msk.f32.mxu0 %vm7778_vm11, %v3493_v26  ;;  %vm3432_vm15 = vcmp.gt.f32.partialorder %v3294_v11, 0.0  ;;  %vm7782_vm4 = vmmov %vm7781_vm2 }
 0x36e   : > { %vm3431_vm9 = vcmp.gt.f32.partialorder %v3289_v34, 0.0  ;;  %v3463_v9 = vmul.f32 0.2, %v3289_v34  ;;  %4615 = vmatmul.mubr.msk.f32.gmra.mrb[22].mxu0 %vm7779_vm5, %v3494_v32 }
 0x36f   : > { %v3496_v6 = vsel %vm3432_vm15, %v3294_v11, %v3464_v53  ;;  %v1559_v11 = vsel %vm6447_vm6, %v6343_v1, 0.0  ;;  %vm7791_vm6 = vcmask 97280  }
 0x370   : > { %v6678_v49 = vpop.permute.xlu0 %2081  ;;  %v4572_v57 = vpop.f32.mrb[22].mxu1 }
 0x371   : > { %v2656_v43 = vpop.permute.xlu1 %2655  ;;  %v3304_v62 = vadd.f32 %v4572_v57, %v6687_v51  ;;  %v3298_v2 = vpop.f32.mrb[23].mxu1 }
 0x372   : > { %v3050_v22 = vsel %vm7770_vm0, %v3017_v4, %v2656_v43  ;;  %v3299_v46 = vadd.f32 %v6687_v51, %v3298_v2  ;;  %v3495_v43 = vsel %vm3431_vm9, %v3289_v34, %v3463_v9 }
 0x373   : > { %4617 = vmatprep.mubr.msk.f32.mxu0 %vm7780_vm12, %v3495_v43  ;;  %vm3434_vm10 = vcmp.gt.f32.partialorder %v3304_v62, 0.0 }
 0x374   : > { %v2560_v56 = vpop.permute.xlu0 %2559  ;;  %vm3433_vm13 = vcmp.gt.f32.partialorder %v3299_v46, 0.0  ;;  %v3465_v15 = vmul.f32 0.2, %v3299_v46  ;;  %4618 = vmatmul.mubr.msk.f32.gmra.mrb[24].mxu0 %vm7781_vm2, %v3496_v6 }
 0x375   : > { %v6693_v25 = vpop.permute.xlu1 %2305  ;;  %v3018_v59 = vsel %vm7777_vm3, %v2985_v63, %v2560_v56  ;;  %v3466_v56 = vmul.f32 0.2, %v3304_v62 }
 0x376   : > { %v3497_v4 = vsel %vm3433_vm13, %v3299_v46, %v3465_v15 }
 0x377   : > { %4620 = vmatprep.mubr.msk.f32.mxu0 %vm7782_vm4, %v3497_v4 }
 0x378   : > { %v6695_v42 = vpop.permute.xlu0 %2209 }
 0x379   : > { %v2784_v40 = vpop.permute.xlu1 %2783 }
 0x37a   : > { %v3083_v54 = vsel %vm3056_vm8, %v3050_v22, %v2784_v40  ;;  %v4575_v52 = vpop.f32.mrb[24].mxu1  ;;  %v3498_v22 = vsel %vm3434_vm10, %v3304_v62, %v3466_v56 }
 0x37b   : > { %4600 = vmatprep.mubr.msk.f32.mxu1 %vm3101_vm7, %v3083_v54  ;;  %v3314_v19 = vadd.f32 %v4575_v52, %v6687_v51  ;;  %v3308_v13 = vpop.f32.mrb[25].mxu1 }
 0x37c   : > { %v2658_v48 = vpop.permute.xlu0 %2657  ;;  %v3309_v50 = vadd.f32 %v6687_v51, %v3308_v13 }
 0x37d   : > { %v6715_v5 = vpop.permute.xlu1 %2307  ;;  %v3051_v37 = vsel %vm7770_vm0, %v3018_v59, %v2658_v48  ;;  %v3468_v28 = vmul.f32 0.2, %v3314_v19  ;;  %vm3436_vm1 = vcmp.gt.f32.partialorder %v3314_v19, 0.0  ;;  %vm7783_vm0 = vmmov %vm7781_vm2 }
 0x37e   : > { %vm3435_vm3 = vcmp.gt.f32.partialorder %v3309_v50, 0.0  ;;  %v3467_v38 = vmul.f32 0.2, %v3309_v50  ;;  %4621 = vmatmul.mubr.msk.f32.gmra.mrb[26].mxu0 %vm7783_vm0, %v3498_v22  ;;  %vm7784_vm11 = vmmov %vm7783_vm0 }
 0x37f   : > { %v3500_v3 = vsel %vm3436_vm1, %v3314_v19, %v3468_v28  ;;  %vm7785_vm5 = vmmov %vm7783_vm0  ;;  %vm7789_vm1 = vcmask 64512  }
 0x380   : > { %v6717_v58 = vpop.permute.xlu0 %1955  ;;  %v3499_v27 = vsel %vm3435_vm3, %v3309_v50, %v3467_v38  ;;  %vm7786_vm12 = vmmov %vm7783_vm0 }
 0x381   : > { %v2786_v35 = vpop.permute.xlu1 %2785  ;;  %4623 = vmatprep.mubr.msk.f32.mxu0 %vm7784_vm11, %v3499_v27  ;;  %vm7787_vm2 = vmmov %vm7783_vm0  ;;  %vm7792_vm11 = vcmask 130048  }
 0x382   : > { %v3084_v47 = vsel %vm3056_vm8, %v3051_v37, %v2786_v35  ;;  %4624 = vmatmul.mubr.msk.f32.gmra.mrb[28].mxu0 %vm7785_vm5, %v3500_v3  ;;  %vm7788_vm4 = vmmov %vm7783_vm0  ;;  %vm7795_vm5 = vcmask 228352  }
 0x383   : > { %4601 = vmatmul.mubr.msk.f32.gmra.mrb[42].mxu1 %vm3101_vm7, %v3084_v47  ;;  %v2855_v37 = vsel %vm7788_vm4, %v1559_v11, %v6664_v24  ;;  %vm7790_vm3 = vmmov %vm7783_vm0 }
 0x384   : > { %v6727_v60 = vpop.permute.xlu0 %2433  ;;  %v2888_v57 = vsel %vm7789_vm1, %v2855_v37, %v6672_v44  ;;  %vm7798_vm4 = vmmov %vm7791_vm6 }
 0x385   : > { %v6735_v20 = vpop.permute.xlu1 %2083  ;;  %v2921_v10 = vsel %vm7791_vm6, %v2888_v57, %v6676_v41  ;;  %vm7801_vm6 = vmmov %vm7783_vm0 }
 0x386   : > { %v2953_v62 = vsel %vm7792_vm11, %v2921_v10, %v6693_v25 }
 0x387   : > { %v4578_v36 = vpop.f32.mrb[26].mxu1 }
 0x388   : > { %v6737_v14 = vpop.permute.xlu0 %1957  ;;  %v3324_v7 = vadd.f32 %v4578_v36, %v6687_v51  ;;  %v3318_v48 = vpop.f32.mrb[27].mxu1 }
 0x389   : > { %v2562_v21 = vpop.permute.xlu1 %2561  ;;  %v3319_v23 = vadd.f32 %v6687_v51, %v3318_v48 }
 0x38a   : > { %v3470_v54 = vmul.f32 0.2, %v3324_v7  ;;  %vm3438_vm15 = vcmp.gt.f32.partialorder %v3324_v7, 0.0 }
 0x38b   : > { %vm3437_vm9 = vcmp.gt.f32.partialorder %v3319_v23, 0.0  ;;  %v3469_v29 = vmul.f32 0.2, %v3319_v23 }
 0x38c   : > { %v6743_v40 = vpop.permute.xlu0 %2435  ;;  %v3502_v55 = vsel %vm3438_vm15, %v3324_v7, %v3470_v54  ;;  %vm7793_vm15 = vcmask 162816   ;;  %v1561_v7 = vsel %vm6536_vm14, %v6432_v45, 0.0 }
 0x38d   : > { %v6749_v12 = vpop.permute.xlu1 %2211  ;;  %v3501_v18 = vsel %vm3437_vm9, %v3319_v23, %v3469_v29  ;;  %v2986_v24 = vsel %vm7793_vm15, %v2953_v62, %v6727_v60  ;;  %vm7794_vm9 = vcmask 195584  }
 0x38e   : > { %4626 = vmatprep.mubr.msk.f32.mxu0 %vm7786_vm12, %v3501_v18  ;;  %v3019_v2 = vsel %vm7794_vm9, %v2986_v24, %v2562_v21 }
 0x38f   : > { %4627 = vmatmul.mubr.msk.f32.gmra.mrb[30].mxu0 %vm7787_vm2, %v3502_v55  ;;  %vm7797_vm2 = vmmov %vm7789_vm1 }
 0x390   : > { %v6751_v0 = vpop.permute.xlu0 %2085  ;;  %vm7799_vm1 = vmmov %vm7783_vm0 }
 0x391   : > { %v4581_v8 = vpop.f32.mrb[28].mxu1  ;;  %v2660_v34 = vpop.permute.xlu1 %2659 }
 0x392   : > { %v3334_v17 = vadd.f32 %v4581_v8, %v6687_v51  ;;  %v3328_v61 = vpop.f32.mrb[29].mxu1  ;;  %v3052_v41 = vsel %vm7795_vm5, %v3019_v2, %v2660_v34 }
 0x393   : > { %v3329_v39 = vadd.f32 %v6687_v51, %v3328_v61 }
 0x394   : > { %v3472_v63 = vmul.f32 0.2, %v3334_v17  ;;  %vm3440_vm10 = vcmp.gt.f32.partialorder %v3334_v17, 0.0  ;;  %v2564_v26 = vpop.permute.xlu0 %2563 }
 0x395   : > { %vm3439_vm13 = vcmp.gt.f32.partialorder %v3329_v39, 0.0  ;;  %v3471_v59 = vmul.f32 0.2, %v3329_v39  ;;  %v2310_v32 = vpop.permute.xlu1 %2309 }
 0x396   : > { %v3504_v1 = vsel %vm3440_vm10, %v3334_v17, %v3472_v63 }
 0x397   : > { %v3503_v53 = vsel %vm3439_vm13, %v3329_v39, %v3471_v59  ;;  %vm7796_vm13 = vmmov %vm7783_vm0 }
 0x398   : > { %4629 = vmatprep.mubr.msk.f32.mxu0 %vm7790_vm3, %v3503_v53  ;;  %v2214_v9 = vpop.permute.xlu0 %2213  ;;  %v4584_v35 = vpop.f32.mrb[30].mxu1  ;;  %v2856_v60 = vsel %vm7796_vm13, %v6392_v16, %v6674_v31  ;;  %vm7800_vm3 = vmmov %vm7792_vm11 }
 0x399   : > { %4630 = vmatmul.mubr.msk.f32.gmra.mrb[32].mxu0 %vm7783_vm0, %v3504_v1  ;;  %v3344_v47 = vadd.f32 %v4584_v35, %v6687_v51  ;;  %v3338_v44 = vpop.f32.mrb[31].mxu1  ;;  %v2788_v56 = vpop.permute.xlu1 %2787  ;;  %v2889_v15 = vsel %vm7797_vm2, %v2856_v60, %v6678_v49  ;;  %vm7802_vm0 = vmmov %vm7793_vm15 }
 0x39a   : > { %v3339_v46 = vadd.f32 %v6687_v51, %v3338_v44  ;;  %v3085_v25 = vsel %vm3056_vm8, %v3052_v41, %v2788_v56  ;;  %v2922_v13 = vsel %vm7798_vm4, %v2889_v15, %v6695_v42  ;;  %vm7803_vm11 = vmmov %vm7794_vm9 }
 0x39b   : > { %v3474_v43 = vmul.f32 0.2, %v3344_v47  ;;  %vm3442_vm12 = vcmp.gt.f32.partialorder %v3344_v47, 0.0  ;;  %4603 = vmatprep.mubr.msk.f32.mxu1 %vm3101_vm7, %v3085_v25  ;;  %v2954_v36 = vsel %vm7800_vm3, %v2922_v13, %v6715_v5  ;;  %vm7804_vm15 = vmmov %vm7795_vm5 }
 0x39c   : > { %v2662_v52 = vpop.permute.xlu0 %2661  ;;  %vm3441_vm10 = vcmp.gt.f32.partialorder %v3339_v46, 0.0  ;;  %v3473_v6 = vmul.f32 0.2, %v3339_v46  ;;  %v2987_v16 = vsel %vm7802_vm0, %v2954_v36, %v6743_v40  ;;  %vm7805_vm9 = vmmov %vm7799_vm1 }
 0x39d   : > { %v2438_v50 = vpop.permute.xlu1 %2437  ;;  %v3506_v28 = vsel %vm3442_vm12, %v3344_v47, %v3474_v43  ;;  %v3020_v31 = vsel %vm7803_vm11, %v2987_v16, %v2564_v26  ;;  %v2857_v48 = vsel %vm7805_vm9, %v1561_v7, %v6717_v58  ;;  %vm7806_vm5 = vmmov %vm7799_vm1 }
 0x39e   : > { %v3505_v19 = vsel %vm3441_vm10, %v3339_v46, %v3473_v6  ;;  %v3053_v49 = vsel %vm7804_vm15, %v3020_v31, %v2662_v52  ;;  %v2858_v40 = vsel %vm7806_vm5, %v6485_v30, %v6737_v14  ;;  %vm7807_vm12 = vmmov %vm7797_vm2 }
 0x39f   : > { %4632 = vmatprep.mubr.msk.f32.mxu0 %vm7799_vm1, %v3505_v19  ;;  %v2890_v23 = vsel %vm7807_vm12, %v2857_v48, %v6735_v20  ;;  %vm7808_vm10 = vmmov %vm7797_vm2  ;;  %vm7819_vm12 = vcmask 31744  }
 0x3a0   : > { %v2312_v4 = vpop.permute.xlu0 %2311  ;;  %4633 = vmatmul.mubr.msk.f32.gmra.mrb[34].mxu0 %vm7801_vm6, %v3506_v28  ;;  %v2891_v27 = vsel %vm7808_vm10, %v2858_v40, %v6751_v0  ;;  %vm7809_vm13 = vmmov %vm7798_vm4 }
 0x3a1   : > { %v2440_v22 = vpop.permute.xlu1 %2439  ;;  %v2923_v54 = vsel %vm7809_vm13, %v2890_v23, %v6749_v12  ;;  %vm7810_vm2 = vmmov %vm7798_vm4  ;;  %v7830_v23 = vld [vmem:[#allocation13_spill] sm:$0xff] }
 0x3a2   : > { %v2924_v45 = vsel %vm7810_vm2, %v2891_v27, %v2214_v9  ;;  %vm7811_vm14 = vmmov %vm7800_vm3 }
 0x3a3   : > { %v2955_v3 = vsel %vm7811_vm14, %v2923_v54, %v2310_v32  ;;  %vm7812_vm4 = vmmov %vm7800_vm3 }
 0x3a4   : > { %v2790_v38 = vpop.permute.xlu0 %2789  ;;  %v2956_v58 = vsel %vm7812_vm4, %v2924_v45, %v2312_v4  ;;  %vm7813_vm1 = vmmov %vm7802_vm0 }
 0x3a5   : > { %v3086_v42 = vsel %vm3056_vm8, %v3053_v49, %v2790_v38  ;;  %v2568_v5 = vpop.permute.xlu1 %2567  ;;  %v2988_v29 = vsel %vm7813_vm1, %v2955_v3, %v2438_v50  ;;  %vm7814_vm3 = vmmov %vm7802_vm0 }
 0x3a6   : > { %4604 = vmatmul.mubr.msk.f32.gmra.mrb[44].mxu1 %vm3101_vm7, %v3086_v42  ;;  %v2989_v30 = vsel %vm7814_vm3, %v2956_v58, %v2440_v22  ;;  %vm7815_vm6 = vmmov %vm7803_vm11 }
 0x3a7   : > { %v3022_v20 = vsel %vm7815_vm6, %v2989_v30, %v2568_v5  ;;  %vm7816_vm0 = vmmov %vm7815_vm6  ;;  %v6844_v5 = vld [vmem:[%s7276_s7] ss:$0 sm:$0xff] }
 0x3a8   : > { %v2566_v21 = vpop.permute.xlu0 %2565  ;;  %vm7817_vm11 = vmmov %vm7804_vm15 }
 0x3a9   : > { %v2666_v33 = vpop.permute.xlu1 %2665  ;;  %v3021_v14 = vsel %vm7816_vm0, %v2988_v29, %v2566_v21  ;;  %vm7818_vm15 = vmmov %vm7817_vm11  ;;  %v7829_v21 = vld [vmem:[#allocation15_spill] sm:$0xff]  ;;  %v7834_v29 = vld [vmem:[#allocation17_spill] sm:$0xff] }
 0x3aa   : > { %v3055_v17 = vsel %vm7817_vm11, %v3022_v20, %v2666_v33  ;;  %vm7820_vm10 = vmmov %vm7819_vm12 }
 0x3ab   : > { %vm7821_vm13 = vmmov %vm7820_vm10 }
 0x3ac   : > { %v2664_v8 = vpop.permute.xlu0 %2663  ;;  %vm7822_vm2 = vmmov %vm7820_vm10 }
 0x3ad   : > { %v3054_v12 = vsel %vm7818_vm15, %v3021_v14, %v2664_v8  ;;  %v2794_v0 = vpop.permute.xlu1 %2793  ;;  %vm7823_vm1 = vmmov %vm7822_vm2  ;;  %v7832_v8 = vld [vmem:[#allocation19_spill] sm:$0xff] }
 0x3ae   : > { %v3088_v39 = vsel %vm3056_vm8, %v3055_v17, %v2794_v0  ;;  %vm7824_vm3 = vmmov %vm7823_vm1 }
 0x3af   : > { %vm7825_vm11 = vmmov %vm7823_vm1 }
 0x3b0   : > { %v2792_v61 = vpop.permute.xlu0 %2791  ;;  %vm7826_vm15 = vmmov %vm7823_vm1 }
 0x3b1   : > { %v3087_v18 = vsel %vm3056_vm8, %v3054_v12, %v2792_v61  ;;  %v4587_v11 = vpop.f32.mrb[32].mxu1 }
 0x3b2   : > { %4606 = vmatprep.mubr.msk.f32.mxu1 %vm3101_vm7, %v3087_v18  ;;  %v3354_v63 = vadd.f32 %v4587_v11, %v6687_v51  ;;  %v3348_v55 = vpop.f32.mrb[33].mxu1  ;;  %v7836_v11 = vld [vmem:[#allocation23_spill] sm:$0xff] }
 0x3b3   : > { %4607 = vmatmul.mubr.msk.f32.gmra.mrb[46].mxu1 %vm3101_vm7, %v3088_v39  ;;  %v3349_v59 = vadd.f32 %v6687_v51, %v3348_v55 }
 0x3b4   : > { %v3476_v34 = vmul.f32 0.2, %v3354_v63  ;;  %vm3444_vm9 = vcmp.gt.f32.partialorder %v3354_v63, 0.0 }
 0x3b5   : > { %vm3443_vm5 = vcmp.gt.f32.partialorder %v3349_v59, 0.0  ;;  %v3475_v26 = vmul.f32 0.2, %v3349_v59 }
 0x3b6   : > { %v3508_v53 = vsel %vm3444_vm9, %v3354_v63, %v3476_v34  ;;  %v7838_v34 = vld [vmem:[#allocation21_spill] sm:$0xff] }
 0x3b7   : > { %v3507_v37 = vsel %vm3443_vm5, %v3349_v59, %v3475_v26 }
 0x3b8   : > { %4635 = vmatprep.mubr.msk.f32.mxu0 %vm7819_vm12, %v3507_v37  ;;  %vm7827_vm12 = vmmov %vm7823_vm1 }
 0x3b9   : > { %4636 = vmatmul.mubr.msk.f32.gmra.mrb[36].mxu0 %vm7820_vm10, %v3508_v53  ;;  %vm7828_vm10 = vmmov %vm7823_vm1 }
 0x3d1   : > { %v4590_v57 = vpop.f32.mrb[34].mxu1 }
 0x3d2   : > { %v3364_v1 = vadd.f32 %v4590_v57, %v6687_v51  ;;  %v3358_v10 = vpop.f32.mrb[35].mxu1 }
 0x3d3   : > { %v3359_v32 = vadd.f32 %v6687_v51, %v3358_v10  ;;  %v7840_v10 = vld [vmem:[#allocation27_spill] sm:$0xff] }
 0x3d4   : > { %v3478_v9 = vmul.f32 0.2, %v3364_v1  ;;  %vm3446_vm8 = vcmp.gt.f32.partialorder %v3364_v1, 0.0 }
 0x3d5   : > { %vm3445_vm7 = vcmp.gt.f32.partialorder %v3359_v32, 0.0  ;;  %v3477_v62 = vmul.f32 0.2, %v3359_v32 }
 0x3d6   : > { %v3510_v24 = vsel %vm3446_vm8, %v3364_v1, %v3478_v9  ;;  %vm7831_vm8 = vcmask 130048  }
 0x3d7   : > { %v3509_v35 = vsel %vm3445_vm7, %v3359_v32, %v3477_v62  ;;  %vm7833_vm7 = vmmov %vm7831_vm8 }
 0x3d8   : > { %4638 = vmatprep.mubr.msk.f32.mxu0 %vm7821_vm13, %v3509_v35  ;;  %vm7835_vm13 = vmmov %vm7833_vm7  ;;  %v7842_v35 = vld [vmem:[#allocation25_spill] sm:$0xff] }
 0x3d9   : > { %4639 = vmatmul.mubr.msk.f32.gmra.mrb[38].mxu0 %vm7822_vm2, %v3510_v24  ;;  %vm7837_vm2 = vmmov %vm7833_vm7 }
 0x3f1   : > { %v4593_v47 = vpop.f32.mrb[36].mxu1 }
 0x3f2   : > { %v3374_v44 = vadd.f32 %v4593_v47, %v6687_v51  ;;  %v3368_v2 = vpop.f32.mrb[37].mxu1 }
 0x3f3   : > { %v3369_v46 = vadd.f32 %v6687_v51, %v3368_v2 }
 0x3f4   : > { %v3480_v41 = vmul.f32 0.2, %v3374_v44  ;;  %vm3448_vm14 = vcmp.gt.f32.partialorder %v3374_v44, 0.0 }
 0x3f5   : > { %vm3447_vm4 = vcmp.gt.f32.partialorder %v3369_v46, 0.0  ;;  %v3479_v43 = vmul.f32 0.2, %v3369_v46 }
 0x3f6   : > { %v3512_v52 = vsel %vm3448_vm14, %v3374_v44, %v3480_v41 }
 0x3f7   : > { %v3511_v56 = vsel %vm3447_vm4, %v3369_v46, %v3479_v43  ;;  %v7845_v46 = vld [vmem:[#allocation31_spill] sm:$0xff] }
 0x3f8   : > { %4641 = vmatprep.mubr.msk.f32.mxu0 %vm7823_vm1, %v3511_v56  ;;  %vm7839_vm1 = vmmov %vm7837_vm2  ;;  %v7847_v56 = vld [vmem:[#allocation29_spill] sm:$0xff] }
 0x3f9   : > { %4642 = vmatmul.mubr.msk.f32.gmra.mrb[40].mxu0 %vm7824_vm3, %v3512_v52 }
 0x416   : > { %v4596_v6 = vpop.f32.mrb[38].mxu1 }
 0x417   : > { %v3384_v25 = vadd.f32 %v4596_v6, %v6687_v51  ;;  %v3378_v60 = vpop.f32.mrb[39].mxu1 }
 0x418   : > { %v3379_v15 = vadd.f32 %v6687_v51, %v3378_v60 }
 0x419   : > { %v3482_v19 = vmul.f32 0.2, %v3384_v25  ;;  %vm3450_vm6 = vcmp.gt.f32.partialorder %v3384_v25, 0.0 }
 0x41a   : > { %vm3449_vm0 = vcmp.gt.f32.partialorder %v3379_v15, 0.0  ;;  %v3481_v13 = vmul.f32 0.2, %v3379_v15 }
 0x41b   : > { %v3514_v4 = vsel %vm3450_vm6, %v3384_v25, %v3482_v19  ;;  %vm7841_vm6 = vmmov %vm7839_vm1 }
 0x41c   : > { %v3513_v50 = vsel %vm3449_vm0, %v3379_v15, %v3481_v13  ;;  %vm7843_vm0 = vmmov %vm7824_vm3  ;;  %v7849_v15 = vld [vmem:[#allocation35_spill] sm:$0xff] }
 0x41d   : > { %4644 = vmatprep.mubr.msk.f32.mxu0 %vm7825_vm11, %v3513_v50  ;;  %vm7844_vm11 = vmmov %vm7839_vm1  ;;  %v7851_v50 = vld [vmem:[#allocation33_spill] sm:$0xff] }
 0x41e   : > { %4645 = vmatmul.mubr.msk.f32.gmra.mrb[42].mxu0 %vm7826_vm15, %v3514_v4  ;;  %vm7846_vm15 = vmmov %vm7839_vm1 }
 0x436   : > { %v4599_v28 = vpop.f32.mrb[40].mxu1 }
 0x437   : > { %v3394_v36 = vadd.f32 %v4599_v28, %v6687_v51  ;;  %v3388_v16 = vpop.f32.mrb[41].mxu1 }
 0x438   : > { %v3389_v31 = vadd.f32 %v6687_v51, %v3388_v16 }
 0x439   : > { %v3484_v49 = vmul.f32 0.2, %v3394_v36  ;;  %vm3452_vm9 = vcmp.gt.f32.partialorder %v3394_v36, 0.0 }
 0x43a   : > { %vm3451_vm5 = vcmp.gt.f32.partialorder %v3389_v31, 0.0  ;;  %v3483_v22 = vmul.f32 0.2, %v3389_v31 }
 0x43b   : > { %v3516_v42 = vsel %vm3452_vm9, %v3394_v36, %v3484_v49  ;;  %vm7848_vm9 = vmmov %vm7839_vm1 }
 0x43c   : > { %v3515_v38 = vsel %vm3451_vm5, %v3389_v31, %v3483_v22  ;;  %vm7850_vm5 = vmmov %vm7839_vm1  ;;  %v7853_v31 = vld [vmem:[#allocation38_spill] sm:$0xff] }
 0x43d   : > { %4647 = vmatprep.mubr.msk.f32.mxu0 %vm7827_vm12, %v3515_v38  ;;  %v4613_v7 = vpop.f32.mrb[20].mxu0  ;;  %vm7852_vm12 = vmmov %vm7839_vm1  ;;  %v7855_v38 = vld [vmem:[#allocation37_spill] sm:$0xff] }
 0x43e   : > { %4648 = vmatmul.mubr.msk.f32.gmra.mrb[44].mxu0 %vm7828_vm10, %v3516_v42  ;;  %v3849_v48 = vadd.f32 %v4613_v7, %v7829_v21  ;;  %v3689_v40 = vpop.f32.mrb[21].mxu0  ;;  %vm7854_vm10 = vmmov %vm7839_vm1 }
 0x43f   : > { %v3848_v27 = vadd.f32 %v3689_v40, %v7830_v23  ;;  %v7858_v40 = vld [vmem:[#allocation40_spill] sm:$0xff] }
 0x440   : > { %v6849_v54 = vadd.f32 %v6844_v5, %v3849_v48 }
 0x441   : > { %v6852_v45 = vadd.f32 %v6844_v5, %v3848_v27  ;;  %v4616_v33 = vpop.f32.mrb[22].mxu0 }
 0x442   : > { %3920 = vst.msk [vmem:[%s4849_s21 + $0x8] sm:$0xff] %vm7831_vm8, %v6849_v54  ;;  %v3851_v3 = vadd.f32 %v4616_v33, %v7832_v8  ;;  %v3699_v58 = vpop.f32.mrb[23].mxu0  ;;  %vm7856_vm8 = vmmov %vm7839_vm1  ;;  %v7859_v33 = vld [vmem:[#allocation39_spill] sm:$0xff] }
 0x443   : > { %3919 = vst.msk [vmem:[%s4849_s21] sm:$0xff] %vm7833_vm7, %v6852_v45  ;;  %v3850_v30 = vadd.f32 %v3699_v58, %v7834_v29  ;;  %vm7857_vm7 = vmmov %vm7839_vm1 }
 0x444   : > { %v6863_v14 = vadd.f32 %v6844_v5, %v3851_v3 }
 0x445   : > { %v6867_v0 = vadd.f32 %v6844_v5, %v3850_v30 }
 0x446   : > { %3922 = vst.msk [vmem:[%s4849_s21 + $0x18] sm:$0xff] %vm7835_vm13, %v6863_v14  ;;  %vm7860_vm13 = vmmov %vm7839_vm1 }
 0x447   : > { %v4619_v39 = vpop.f32.mrb[24].mxu0  ;;  %3921 = vst.msk [vmem:[%s4849_s21 + $0x10] sm:$0xff] %vm7837_vm2, %v6867_v0  ;;  %vm7861_vm2 = vmmov %vm7839_vm1 }
 0x448   : > { %v3853_v63 = vadd.f32 %v4619_v39, %v7836_v11  ;;  %v3709_v55 = vpop.f32.mrb[25].mxu0 }
 0x449   : > { %v3852_v26 = vadd.f32 %v3709_v55, %v7838_v34 }
 0x44a   : > { %v6879_v37 = vadd.f32 %v6844_v5, %v3853_v63 }
 0x44b   : > { %v6882_v53 = vadd.f32 %v6844_v5, %v3852_v26 }
 0x44c   : > { %3924 = vst.msk [vmem:[%s4849_s21 + $0x28] sm:$0xff] %vm7839_vm1, %v6879_v37  ;;  %vm7862_vm1 = vmmov %vm7843_vm0 }
 0x44d   : > { %3923 = vst.msk [vmem:[%s4849_s21 + $0x20] sm:$0xff] %vm7841_vm6, %v6882_v53 }
 0x451   : > { %v4622_v57 = vpop.f32.mrb[26].mxu0 }
 0x452   : > { %v3855_v32 = vadd.f32 %v4622_v57, %v7840_v10  ;;  %v3719_v9 = vpop.f32.mrb[27].mxu0 }
 0x453   : > { %v3854_v24 = vadd.f32 %v3719_v9, %v7842_v35  ;;  %v7867_v35 = vld [vmem:[#allocation41_spill] sm:$0xff] }
 0x454   : > { %v6895_v47 = vadd.f32 %v6844_v5, %v3855_v32  ;;  %v7866_v32 = vld [vmem:[#allocation42_spill] sm:$0xff] }
 0x455   : > { %v6898_v44 = vadd.f32 %v6844_v5, %v3854_v24  ;;  %v4625_v2 = vpop.f32.mrb[28].mxu0 }
 0x456   : > { %v4602_v20 = vpop.f32.mrb[42].mxu1  ;;  %3926 = vst.msk [vmem:[%s4849_s21 + $0x38] sm:$0xff] %vm7844_vm11, %v6895_v47  ;;  %v3857_v41 = vadd.f32 %v4625_v2, %v7845_v46  ;;  %v3729_v43 = vpop.f32.mrb[29].mxu0  ;;  %vm7864_vm11 = vmmov %vm7862_vm1 }
 0x457   : > { %v3404_v17 = vadd.f32 %v4602_v20, %v6687_v51  ;;  %v3398_v12 = vpop.f32.mrb[43].mxu1  ;;  %3925 = vst.msk [vmem:[%s4849_s21 + $0x30] sm:$0xff] %vm7846_vm15, %v6898_v44  ;;  %v3856_v52 = vadd.f32 %v3729_v43, %v7847_v56  ;;  %vm7865_vm15 = vmmov %vm7862_vm1 }
 0x458   : > { %v3399_v61 = vadd.f32 %v6687_v51, %v3398_v12  ;;  %v6909_v6 = vadd.f32 %v6844_v5, %v3857_v41  ;;  %v7870_v41 = vld [vmem:[#allocation44_spill] sm:$0xff] }
 0x459   : > { %v3486_v18 = vmul.f32 0.2, %v3404_v17  ;;  %vm3454_vm14 = vcmp.gt.f32.partialorder %v3404_v17, 0.0  ;;  %v6912_v25 = vadd.f32 %v6844_v5, %v3856_v52  ;;  %v7871_v52 = vld [vmem:[#allocation43_spill] sm:$0xff] }
 0x45a   : > { %vm3453_vm4 = vcmp.gt.f32.partialorder %v3399_v61, 0.0  ;;  %v3485_v59 = vmul.f32 0.2, %v3399_v61  ;;  %3928 = vst.msk [vmem:[%s4849_s21 + $0x48] sm:$0xff] %vm7848_vm9, %v6909_v6  ;;  %vm7868_vm9 = vmmov %vm7861_vm2 }
 0x45b   : > { %v3518_v62 = vsel %vm3454_vm14, %v3404_v17, %v3486_v18  ;;  %3927 = vst.msk [vmem:[%s4849_s21 + $0x40] sm:$0xff] %vm7850_vm5, %v6912_v25  ;;  %vm7869_vm5 = vmmov %vm7861_vm2 }
 0x45c   : > { %v3517_v1 = vsel %vm3453_vm4, %v3399_v61, %v3485_v59 }
 0x45d   : > { %4650 = vmatprep.mubr.msk.f32.mxu0 %vm7824_vm3, %v3517_v1  ;;  %vm7863_vm3 = vmmov %vm7843_vm0 }
 0x45e   : > { %4651 = vmatmul.mubr.msk.f32.gmra.mrb[46].mxu0 %vm7843_vm0, %v3518_v62 }
 0x462   : > { %v4628_v60 = vpop.f32.mrb[30].mxu0 }
 0x463   : > { %v3859_v19 = vadd.f32 %v4628_v60, %v7849_v15  ;;  %v3739_v13 = vpop.f32.mrb[31].mxu0 }
 0x464   : > { %v3858_v4 = vadd.f32 %v3739_v13, %v7851_v50  ;;  %v7874_v50 = vld [vmem:[#allocation16_spill] sm:$0xff] }
 0x465   : > { %v6923_v28 = vadd.f32 %v6844_v5, %v3859_v19 }
 0x466   : > { %v6926_v36 = vadd.f32 %v6844_v5, %v3858_v4 }
 0x467   : > { %3930 = vst.msk [vmem:[%s4849_s21 + $0x58] sm:$0xff] %vm7852_vm12, %v6923_v28  ;;  %vm7872_vm12 = vmmov %vm7861_vm2 }
 0x468   : > { %3929 = vst.msk [vmem:[%s4849_s21 + $0x50] sm:$0xff] %vm7854_vm10, %v6926_v36  ;;  %vm7873_vm10 = vmmov %vm7861_vm2 }
 0x46c   : > { %v4631_v16 = vpop.f32.mrb[32].mxu0 }
 0x46d   : > { %v3861_v49 = vadd.f32 %v4631_v16, %v7853_v31  ;;  %v3749_v22 = vpop.f32.mrb[33].mxu0  ;;  %v7875_v31 = vld [vmem:[#allocation14_spill] sm:$0xff] }
 0x46e   : > { %v3860_v42 = vadd.f32 %v3749_v22, %v7855_v38 }
 0x46f   : > { %v6937_v7 = vadd.f32 %v6844_v5, %v3861_v49 }
 0x470   : > { %v6940_v21 = vadd.f32 %v6844_v5, %v3860_v42 }
 0x471   : > { %3932 = vst.msk [vmem:[%s4849_s21 + $0x68] sm:$0xff] %vm7856_vm8, %v6937_v7  ;;  %vm7876_vm8 = vmmov %vm7861_vm2 }
 0x472   : > { %3931 = vst.msk [vmem:[%s4849_s21 + $0x60] sm:$0xff] %vm7857_vm7, %v6940_v21  ;;  %vm7877_vm7 = vmmov %vm7861_vm2 }
 0x473   : > { %v4634_v48 = vpop.f32.mrb[34].mxu0 }
 0x474   : > { %v3863_v23 = vadd.f32 %v4634_v48, %v7858_v40  ;;  %v3759_v27 = vpop.f32.mrb[35].mxu0  ;;  %v7878_v48 = vld [vmem:[#allocation20_spill] sm:$0xff] }
 0x475   : > { %v3862_v8 = vadd.f32 %v3759_v27, %v7859_v33  ;;  %v7879_v27 = vld [vmem:[#allocation18_spill] sm:$0xff] }
 0x476   : > { %v6951_v3 = vadd.f32 %v6844_v5, %v3863_v23 }
 0x477   : > { %v6954_v58 = vadd.f32 %v6844_v5, %v3862_v8 }
 0x478   : > { %3934 = vst.msk [vmem:[%s4849_s21 + $0x78] sm:$0xff] %vm7860_vm13, %v6951_v3  ;;  %vm7880_vm13 = vmmov %vm7861_vm2 }
 0x479   : > { %v4605_v29 = vpop.f32.mrb[44].mxu1  ;;  %3933 = vst.msk [vmem:[%s4849_s21 + $0x70] sm:$0xff] %vm7861_vm2, %v6954_v58 }
 0x47a   : > { %v3414_v30 = vadd.f32 %v4605_v29, %v6687_v51  ;;  %v3408_v20 = vpop.f32.mrb[45].mxu1 }
 0x47b   : > { %v3409_v17 = vadd.f32 %v6687_v51, %v3408_v20  ;;  %v7881_v20 = vld [vmem:[#allocation24_spill] sm:$0xff] }
 0x47c   : > { %v3488_v12 = vmul.f32 0.2, %v3414_v30  ;;  %vm3456_vm14 = vcmp.gt.f32.partialorder %v3414_v30, 0.0 }
 0x47d   : > { %vm3455_vm4 = vcmp.gt.f32.partialorder %v3409_v17, 0.0  ;;  %v3487_v61 = vmul.f32 0.2, %v3409_v17 }
 0x47e   : > { %v3520_v18 = vsel %vm3456_vm14, %v3414_v30, %v3488_v12  ;;  %vm7883_vm14 = vmmov %vm7861_vm2 }
 0x47f   : > { %v3519_v39 = vsel %vm3455_vm4, %v3409_v17, %v3487_v61  ;;  %v7882_v61 = vld [vmem:[#allocation22_spill] sm:$0xff]  ;;  %vm7884_vm4 = vmmov %vm7861_vm2 }
 0x480   : > { %4653 = vmatprep.mubr.msk.f32.mxu0 %vm7862_vm1, %v3519_v39  ;;  %vm7887_vm1 = vmmov %vm7861_vm2 }
 0x481   : > { %4654 = vmatmul.mubr.msk.f32.gmra.mrb[48].mxu0 %vm7863_vm3, %v3520_v18  ;;  %vm7888_vm3 = vmmov %vm7887_vm1 }
 0x486   : > { %v4608_v11 = vpop.f32.mrb[46].mxu1 }
 0x487   : > { %v3424_v63 = vadd.f32 %v4608_v11, %v6687_v51  ;;  %v3418_v55 = vpop.f32.mrb[47].mxu1 }
 0x488   : > { %v3419_v59 = vadd.f32 %v6687_v51, %v3418_v55  ;;  %v7885_v55 = vld [vmem:[#allocation28_spill] sm:$0xff] }
 0x489   : > { %v3490_v34 = vmul.f32 0.2, %v3424_v63  ;;  %vm3458_vm6 = vcmp.gt.f32.partialorder %v3424_v63, 0.0 }
 0x48a   : > { %vm3457_vm0 = vcmp.gt.f32.partialorder %v3419_v59, 0.0  ;;  %v3489_v26 = vmul.f32 0.2, %v3419_v59 }
 0x48b   : > { %v3522_v1 = vsel %vm3458_vm6, %v3424_v63, %v3490_v34  ;;  %vm7891_vm6 = vmmov %vm7887_vm1 }
 0x48c   : > { %v3521_v57 = vsel %vm3457_vm0, %v3419_v59, %v3489_v26  ;;  %v4637_v10 = vpop.f32.mrb[36].mxu0  ;;  %v7886_v26 = vld [vmem:[#allocation26_spill] sm:$0xff]  ;;  %vm7892_vm0 = vmmov %vm7887_vm1 }
 0x48d   : > { %4656 = vmatprep.mubr.msk.f32.mxu0 %vm7864_vm11, %v3521_v57  ;;  %v3865_v9 = vadd.f32 %v4637_v10, %v7866_v32  ;;  %v3769_v62 = vpop.f32.mrb[37].mxu0  ;;  %vm7895_vm11 = vmmov %vm7892_vm0 }
 0x48e   : > { %4657 = vmatmul.mubr.msk.f32.gmra.mrb[50].mxu0 %vm7865_vm15, %v3522_v1  ;;  %v3864_v24 = vadd.f32 %v3769_v62, %v7867_v35  ;;  %vm7896_vm15 = vmmov %vm7892_vm0 }
 0x48f   : > { %v6973_v51 = vadd.f32 %v6844_v5, %v3865_v9  ;;  %v7889_v9 = vld [vmem:[#allocation32_spill] sm:$0xff] }
 0x490   : > { %v6976_v2 = vadd.f32 %v6844_v5, %v3864_v24  ;;  %v7890_v24 = vld [vmem:[#allocation30_spill] sm:$0xff] }
 0x491   : > { %3936 = vst.msk [vmem:[%s4849_s21 + $0x88] sm:$0xff] %vm7868_vm9, %v6973_v51  ;;  %vm3955_vm9 = vcmask (!%p4366_p10), 123904  }
 0x492   : > { %3935 = vst.msk [vmem:[%s4849_s21 + $0x80] sm:$0xff] %vm7869_vm5, %v6976_v2 }
 0x4ac   : > { %v4640_v46 = vpop.f32.mrb[38].mxu0 }
 0x4ad   : > { %v3867_v43 = vadd.f32 %v4640_v46, %v7870_v41  ;;  %v3779_v56 = vpop.f32.mrb[39].mxu0 }
 0x4ae   : > { %v3866_v60 = vadd.f32 %v3779_v56, %v7871_v52  ;;  %v7893_v52 = vld [vmem:[#allocation36_spill] sm:$0xff] }
 0x4af   : > { %v6987_v15 = vadd.f32 %v6844_v5, %v3867_v43 }
 0x4b0   : > { %v6990_v19 = vadd.f32 %v6844_v5, %v3866_v60 }
 0x4b1   : > { %3938 = vst.msk [vmem:[%s4849_s21 + $0x98] sm:$0xff] %vm7872_vm12, %v6987_v15 }
 0x4b2   : > { %3937 = vst.msk [vmem:[%s4849_s21 + $0x90] sm:$0xff] %vm7873_vm10, %v6990_v19 }
 0x4cc   : > { %v4643_v13 = vpop.f32.mrb[40].mxu0 }
 0x4cd   : > { %v3869_v4 = vadd.f32 %v4643_v13, %v7874_v50  ;;  %v3789_v16 = vpop.f32.mrb[41].mxu0  ;;  %v7894_v50 = vld [vmem:[#allocation34_spill] sm:$0xff] }
 0x4ce   : > { %v3868_v49 = vadd.f32 %v3789_v16, %v7875_v31 }
 0x4cf   : > { %v7001_v22 = vadd.f32 %v6844_v5, %v3869_v4 }
 0x4d0   : > { %v7004_v38 = vadd.f32 %v6844_v5, %v3868_v49  ;;  %v4770_v49 = vmov (!%p4366_p10), 0.0  }
 0x4d1   : > { %3940 = vst.msk [vmem:[%s4849_s21 + $0xa8] sm:$0xff] %vm7876_vm8, %v7001_v22 }
 0x4d2   : > { %3939 = vst.msk [vmem:[%s4849_s21 + $0xa0] sm:$0xff] %vm7877_vm7, %v7004_v38 }
 0x4d3   : > { %3956 = vst.msk [vmem:[#allocation6] sm:$0x3] (!%p4366_p10), %vm3955_vm9, %v4770_v49 }
 0x4f1   : > { %v4646_v42 = vpop.f32.mrb[42].mxu0 }
 0x4f2   : > { %v3871_v40 = vadd.f32 %v4646_v42, %v7878_v48  ;;  %v3799_v23 = vpop.f32.mrb[43].mxu0 }
 0x4f3   : > { %v3870_v33 = vadd.f32 %v3799_v23, %v7879_v27 }
 0x4f4   : > { %v7015_v8 = vadd.f32 %v6844_v5, %v3871_v40 }
 0x4f5   : > { %v7018_v29 = vadd.f32 %v6844_v5, %v3870_v33 }
 0x4f6   : > { %3942 = vst.msk [vmem:[%s4849_s21 + $0xb8] sm:$0xff] %vm7880_vm13, %v7015_v8 }
 0x4f7   : > { %3941 = vst.msk [vmem:[%s4849_s21 + $0xb0] sm:$0xff] %vm7861_vm2, %v7018_v29 }
 0x511   : > { %v4649_v30 = vpop.f32.mrb[44].mxu0 }
 0x512   : > { %v3873_v17 = vadd.f32 %v4649_v30, %v7881_v20  ;;  %v3809_v12 = vpop.f32.mrb[45].mxu0 }
 0x513   : > { %v3872_v39 = vadd.f32 %v3809_v12, %v7882_v61 }
 0x514   : > { %v7029_v18 = vadd.f32 %v6844_v5, %v3873_v17 }
 0x515   : > { %v7032_v11 = vadd.f32 %v6844_v5, %v3872_v39 }
 0x516   : > { %3944 = vst.msk [vmem:[%s4849_s21 + $0xc8] sm:$0xff] %vm7883_vm14, %v7029_v18 }
 0x517   : > { %3943 = vst.msk [vmem:[%s4849_s21 + $0xc0] sm:$0xff] %vm7884_vm4, %v7032_v11 }
 0x531   : > { %v4652_v63 = vpop.f32.mrb[46].mxu0 }
 0x532   : > { %v3875_v59 = vadd.f32 %v4652_v63, %v7885_v55  ;;  %v3819_v34 = vpop.f32.mrb[47].mxu0 }
 0x533   : > { %v3874_v57 = vadd.f32 %v3819_v34, %v7886_v26 }
 0x534   : > { %v7043_v1 = vadd.f32 %v6844_v5, %v3875_v59 }
 0x535   : > { %v7046_v10 = vadd.f32 %v6844_v5, %v3874_v57 }
 0x536   : > { %3946 = vst.msk [vmem:[%s4849_s21 + $0xd8] sm:$0xff] %vm7887_vm1, %v7043_v1 }
 0x537   : > { %3945 = vst.msk [vmem:[%s4849_s21 + $0xd0] sm:$0xff] %vm7888_vm3, %v7046_v10 }
 0x554   : > { %v4655_v32 = vpop.f32.mrb[48].mxu0 }
 0x555   : > { %v3877_v62 = vadd.f32 %v4655_v32, %v7889_v9  ;;  %v3829_v35 = vpop.f32.mrb[49].mxu0 }
 0x556   : > { %v3876_v46 = vadd.f32 %v3829_v35, %v7890_v24 }
 0x557   : > { %v7057_v41 = vadd.f32 %v6844_v5, %v3877_v62 }
 0x558   : > { %v7060_v43 = vadd.f32 %v6844_v5, %v3876_v46 }
 0x559   : > { %3948 = vst.msk [vmem:[%s4849_s21 + $0xe8] sm:$0xff] %vm7891_vm6, %v7057_v41 }
 0x55a   : > { %3947 = vst.msk [vmem:[%s4849_s21 + $0xe0] sm:$0xff] %vm7892_vm0, %v7060_v43 }
 0x561   : > { %v4658_v56 = vpop.f32.mrb[50].mxu0  ;;  %3954 = sbr.rel (%p4366_p10) target bundleno = 1384 (0x568), region = 120 }
 0x562   : > { %v3879_v60 = vadd.f32 %v4658_v56, %v7893_v52  ;;  %v3839_v13 = vpop.f32.mrb[51].mxu0 }
 0x563   : > { %v3878_v4 = vadd.f32 %v3839_v13, %v7894_v50 }
 0x564   : > { %v7071_v16 = vadd.f32 %v6844_v5, %v3879_v60 }
 0x565   : > { %v7074_v31 = vadd.f32 %v6844_v5, %v3878_v4 }
 0x566   : > { %3950 = vst.msk [vmem:[%s4849_s21 + $0xf8] sm:$0xff] %vm7895_vm11, %v7071_v16 }
 0x567   : > { %3949 = vst.msk [vmem:[%s4849_s21 + $0xf0] sm:$0xff] %vm7896_vm15, %v7074_v31 }
 0x568 PF: > { %vm7897_vm5 = vcmask 130048   ;;  %v4026_v26 = vmul.f32 %v6852_v45, %v6852_v45  ;;  %v4027_v57 = vmul.f32 %v6849_v54, %v6849_v54  ;;  %v4028_v32 = vmul.f32 %v6867_v0, %v6867_v0  ;;  %s4771_s21 = smov [#allocation6]   ;;  %p4685_p11 = scmp.eq.s32.totalorder %s4828_s10, 1 }
 0x569   : > { %v3957_v42 = vsel %vm7897_vm5, %v6852_v45, 0.0  ;;  %vm7898_vm12 = vmmov %vm7897_vm5  ;;  %v4029_v35 = vmul.f32 %v6863_v14, %v6863_v14  ;;  %v4030_v45 = vmul.f32 %v6882_v53, %v6882_v53  ;;  %s4149_s25 = sshll.u32 %s4771_s21, 4  ;;  %s4150_s25 = int_to_ptr.vmem [resolvable:$true] %s4149_s25 }
 0x56a   : > { %v3958_v5 = vsel %vm7898_vm12, %v6849_v54, 0.0  ;;  %vm7899_vm10 = vmmov %vm7897_vm5  ;;  %s4719_s26 = scalar_lea.vmem %s4150_s25, 32  ;;  %p4726_p1 = scmp.lt.s32.totalorder %s4150_s25, %s4150_s25 }
 0x56b   : > { %v3960_v48 = vsel %vm7899_vm10, %v6867_v0, 0.0  ;;  %v3959_v40 = vadd.f32 %v3958_v5, %v3957_v42  ;;  %vm7900_vm8 = vmmov %vm7897_vm5  ;;  %v4032_v42 = vmul.f32 %v6898_v44, %v6898_v44  ;;  %p4720_p12 = scmp.ne.s32.totalorder %s4150_s25, %s4719_s26  ;;  %p4727_p2 = scmp.lt.s32.totalorder %s4719_s26, %s4719_s26 }
 0x56c   : > { %v3962_v23 = vsel %vm7900_vm8, %v6863_v14, 0.0  ;;  %vm7901_vm7 = vmmov %vm7897_vm5  ;;  %v4031_v14 = vmul.f32 %v6879_v37, %v6879_v37 }
 0x56d   : > { %v3961_v27 = vadd.f32 %v3960_v48, %v3959_v40  ;;  %v3964_v33 = vsel %vm7901_vm7, %v6882_v53, 0.0  ;;  %vm7902_vm13 = vmmov %vm7897_vm5  ;;  %p4721_p13 = pnand %p4720_p12, %p4685_p11  ;;  %p4728_p3 = por %p4727_p2, %p4726_p1 }
 0x56e   : > { %v3966_v20 = vsel %vm7902_vm13, %v6879_v37, 0.0  ;;  %vm7903_vm2 = vmmov %vm7897_vm5  ;;  %v4033_v37 = vmul.f32 %v6895_v47, %v6895_v47 }
 0x56f   : > { %v3963_v30 = vadd.f32 %v3962_v23, %v3961_v27  ;;  %v3968_v12 = vsel %vm7903_vm2, %v6898_v44, 0.0  ;;  %vm7904_vm14 = vmmov %vm7903_vm2  ;;  %v4034_v44 = vmul.f32 %v6912_v25, %v6912_v25  ;;  %p4722_p0 = pneg %p4721_p13 }
 0x570   : > { %v3970_v39 = vsel %vm7904_vm14, %v6895_v47, 0.0  ;;  %vm7905_vm4 = vmmov %vm7903_vm2  ;;  %v4035_v47 = vmul.f32 %v6909_v6, %v6909_v6 }
 0x571   : > { %v3965_v17 = vadd.f32 %v3964_v33, %v3963_v30  ;;  %v3972_v55 = vsel %vm7905_vm4, %v6912_v25, 0.0  ;;  %vm7906_vm1 = vmmov %vm7903_vm2  ;;  %v4036_v25 = vmul.f32 %v6926_v36, %v6926_v36  ;;  %p4729_p4 = pnand %p4728_p3, %p4722_p0 }
 0x572   : > { %v3974_v34 = vsel %vm7906_vm1, %v6909_v6, 0.0  ;;  %vm7907_vm3 = vmmov %vm7906_vm1  ;;  %v4037_v6 = vmul.f32 %v6923_v28, %v6923_v28 }
 0x573   : > { %v3967_v61 = vadd.f32 %v3966_v20, %v3965_v17  ;;  %v3976_v62 = vsel %vm7907_vm3, %v6926_v36, 0.0  ;;  %vm7908_vm6 = vmmov %vm7906_vm1  ;;  %v4038_v36 = vmul.f32 %v6940_v21, %v6940_v21 }
 0x574   : > { %v3978_v46 = vsel %vm7908_vm6, %v6923_v28, 0.0  ;;  %vm7909_vm0 = vmmov %vm7906_vm1  ;;  %v4039_v28 = vmul.f32 %v6937_v7, %v6937_v7 }
 0x575   : > { %v3969_v63 = vadd.f32 %v3968_v12, %v3967_v61  ;;  %v4058_v56 = vsel %vm7909_vm0, %v4026_v26, 0.0  ;;  %vm7910_vm11 = vmmov %vm7909_vm0 }
 0x576   : > { %v4059_v54 = vsel %vm7910_vm11, %v4027_v57, 0.0  ;;  %vm7911_vm15 = vmmov %vm7909_vm0 }
 0x577   : > { %v3971_v59 = vadd.f32 %v3970_v39, %v3969_v63  ;;  %v4061_v0 = vsel %vm7911_vm15, %v4028_v32, 0.0  ;;  %v4060_v60 = vadd.f32 %v4059_v54, %v4058_v56  ;;  %vm7912_vm9 = vmmov %vm7909_vm0 }
 0x578   : > { %v3980_v13 = vsel %vm7912_vm9, %v6940_v21, 0.0  ;;  %vm7913_vm5 = vmmov %vm7909_vm0  ;;  %v4040_v21 = vmul.f32 %v6954_v58, %v6954_v58 }
 0x579   : > { %v3973_v9 = vadd.f32 %v3972_v55, %v3971_v59  ;;  %v4063_v50 = vsel %vm7913_vm5, %v4029_v35, 0.0  ;;  %v4062_v49 = vadd.f32 %v4061_v0, %v4060_v60  ;;  %vm7914_vm12 = vmmov %vm7909_vm0 }
 0x57a   : > { %v3982_v53 = vsel %vm7914_vm12, %v6937_v7, 0.0  ;;  %vm7915_vm10 = vmmov %vm7909_vm0  ;;  %v4041_v7 = vmul.f32 %v6951_v3, %v6951_v3 }
 0x57b   : > { %v3975_v24 = vadd.f32 %v3974_v34, %v3973_v9  ;;  %v4065_v5 = vsel %vm7915_vm10, %v4030_v45, 0.0  ;;  %v4064_v40 = vadd.f32 %v4063_v50, %v4062_v49  ;;  %vm7916_vm8 = vmmov %vm7909_vm0 }
 0x57c   : > { %v3984_v23 = vsel %vm7916_vm8, %v6954_v58, 0.0  ;;  %vm7917_vm7 = vmmov %vm7909_vm0  ;;  %v4042_v58 = vmul.f32 %v6976_v2, %v6976_v2 }
 0x57d   : > { %v3977_v52 = vadd.f32 %v3976_v62, %v3975_v24  ;;  %v4067_v27 = vsel %vm7917_vm7, %v4031_v14, 0.0  ;;  %v4066_v30 = vadd.f32 %v4065_v5, %v4064_v40  ;;  %vm7918_vm13 = vmmov %vm7909_vm0  ;;  %v4075_v62 = vsel %vm7909_vm0, %v4035_v47, 0.0 }
 0x57e   : > { %v3986_v20 = vsel %vm7918_vm13, %v6951_v3, 0.0  ;;  %vm7919_vm2 = vmmov %vm7909_vm0  ;;  %v4043_v3 = vmul.f32 %v6973_v51, %v6973_v51 }
 0x57f   : > { %v3979_v4 = vadd.f32 %v3978_v46, %v3977_v52  ;;  %v4069_v17 = vsel %vm7919_vm2, %v4032_v42, 0.0  ;;  %v4068_v61 = vadd.f32 %v4067_v27, %v4066_v30  ;;  %vm7920_vm14 = vmmov %vm7909_vm0 }
 0x580   : > { %v3988_v39 = vsel %vm7920_vm14, %v6976_v2, 0.0  ;;  %vm7921_vm4 = vmmov %vm7909_vm0  ;;  %v4044_v2 = vmul.f32 %v6990_v19, %v6990_v19 }
 0x581   : > { %v3981_v48 = vadd.f32 %v3980_v13, %v3979_v4  ;;  %v4071_v63 = vsel %vm7921_vm4, %v4033_v37, 0.0  ;;  %v4070_v59 = vadd.f32 %v4069_v17, %v4068_v61  ;;  %vm7922_vm1 = vmmov %vm7909_vm0 }
 0x582   : > { %v3990_v34 = vsel %vm7922_vm1, %v6973_v51, 0.0  ;;  %vm7923_vm3 = vmmov %vm7909_vm0  ;;  %v4045_v51 = vmul.f32 %v6987_v15, %v6987_v15 }
 0x583   : > { %v3983_v33 = vadd.f32 %v3982_v53, %v3981_v48  ;;  %v4073_v26 = vsel %vm7923_vm3, %v4034_v44, 0.0  ;;  %v4072_v32 = vadd.f32 %v4071_v63, %v4070_v59  ;;  %vm7924_vm6 = vmmov %vm7909_vm0  ;;  %v4091_v63 = vsel %vm7909_vm0, %v4043_v3, 0.0 }
 0x584   : > { %v3992_v9 = vsel %vm7924_vm6, %v6990_v19, 0.0  ;;  %vm7925_vm11 = vmmov %vm7909_vm0  ;;  %v4046_v19 = vmul.f32 %v7004_v38, %v7004_v38 }
 0x585   : > { %v3985_v12 = vadd.f32 %v3984_v23, %v3983_v33  ;;  %v4074_v24 = vadd.f32 %v4073_v26, %v4072_v32  ;;  %v3994_v46 = vsel %vm7925_vm11, %v6987_v15, 0.0  ;;  %vm7926_vm15 = vmmov %vm7909_vm0  ;;  %v4047_v15 = vmul.f32 %v7001_v22, %v7001_v22 }
 0x586   : > { %v4077_v45 = vsel %vm7926_vm15, %v4036_v25, 0.0  ;;  %vm7927_vm9 = vmmov %vm7909_vm0 }
 0x587   : > { %v3987_v55 = vadd.f32 %v3986_v20, %v3985_v12  ;;  %v4076_v54 = vadd.f32 %v4075_v62, %v4074_v24  ;;  %v3996_v0 = vsel %vm7927_vm9, %v7004_v38, 0.0  ;;  %vm7928_vm5 = vmmov %vm7909_vm0  ;;  %v4048_v38 = vmul.f32 %v7018_v29, %v7018_v29 }
 0x588   : > { %v4079_v52 = vsel %vm7928_vm5, %v4037_v6, 0.0  ;;  %vm7929_vm12 = vmmov %vm7909_vm0 }
 0x589   : > { %v3989_v57 = vadd.f32 %v3988_v39, %v3987_v55  ;;  %v4078_v13 = vadd.f32 %v4077_v45, %v4076_v54  ;;  %v3998_v14 = vsel %vm7929_vm12, %v7001_v22, 0.0  ;;  %vm7930_vm10 = vmmov %vm7909_vm0  ;;  %v4049_v45 = vmul.f32 %v7015_v8, %v7015_v8 }
 0x58a   : > { %v4081_v50 = vsel %vm7930_vm10, %v4038_v36, 0.0  ;;  %vm7931_vm8 = vmmov %vm7909_vm0 }
 0x58b   : > { %v3991_v35 = vadd.f32 %v3990_v34, %v3989_v57  ;;  %v4080_v49 = vadd.f32 %v4079_v52, %v4078_v13  ;;  %v4000_v53 = vsel %vm7931_vm8, %v7018_v29, 0.0  ;;  %vm7932_vm7 = vmmov %vm7909_vm0 }
 0x58c   : > { %v4083_v42 = vsel %vm7932_vm7, %v4039_v28, 0.0  ;;  %vm7933_vm13 = vmmov %vm7909_vm0  ;;  %v4050_v28 = vmul.f32 %v7032_v11, %v7032_v11 }
 0x58d   : > { %v3993_v56 = vadd.f32 %v3992_v9, %v3991_v35  ;;  %v4082_v48 = vadd.f32 %v4081_v50, %v4080_v49  ;;  %v4002_v40 = vsel %vm7933_vm13, %v7015_v8, 0.0  ;;  %vm7934_vm2 = vmmov %vm7909_vm0  ;;  %v4052_v50 = vmul.f32 %v7046_v10, %v7046_v10 }
 0x58e   : > { %v4085_v23 = vsel %vm7934_vm2, %v4040_v21, 0.0  ;;  %vm7935_vm14 = vmmov %vm7909_vm0 }
 0x58f   : > { %v3995_v60 = vadd.f32 %v3994_v46, %v3993_v56  ;;  %v4084_v27 = vadd.f32 %v4083_v42, %v4082_v48  ;;  %v4004_v33 = vsel %vm7935_vm14, %v7032_v11, 0.0  ;;  %vm7936_vm4 = vmmov %vm7909_vm0  ;;  %v4053_v11 = vmul.f32 %v7043_v1, %v7043_v1 }
 0x590   : > { %v4087_v30 = vsel %vm7936_vm4, %v4041_v7, 0.0  ;;  %vm7937_vm1 = vmmov %vm7909_vm0  ;;  %v4054_v42 = vmul.f32 %v7060_v43, %v7060_v43 }
 0x591   : > { %v3997_v4 = vadd.f32 %v3996_v0, %v3995_v60  ;;  %v4086_v44 = vadd.f32 %v4085_v23, %v4084_v27  ;;  %v4006_v17 = vsel %vm7937_vm1, %v7029_v18, 0.0  ;;  %vm7938_vm3 = vmmov %vm7909_vm0  ;;  %v4051_v60 = vmul.f32 %v7029_v18, %v7029_v18 }
 0x592   : > { %v4089_v12 = vsel %vm7938_vm3, %v4042_v58, 0.0  ;;  %vm7939_vm6 = vmmov %vm7909_vm0 }
 0x593   : > { %v3999_v5 = vadd.f32 %v3998_v14, %v3997_v4  ;;  %v4088_v39 = vadd.f32 %v4087_v30, %v4086_v44  ;;  %v4008_v47 = vsel %vm7939_vm6, %v7046_v10, 0.0  ;;  %vm7940_vm11 = vmmov %vm7909_vm0 }
 0x594   : > { %v4010_v34 = vsel %vm7940_vm11, %v7043_v1, 0.0  ;;  %vm7941_vm15 = vmmov %vm7909_vm0  ;;  %v4056_v1 = vmul.f32 %v7074_v31, %v7074_v31 }
 0x595   : > { %v4001_v37 = vadd.f32 %v4000_v53, %v3999_v5  ;;  %v4090_v59 = vadd.f32 %v4089_v12, %v4088_v39  ;;  %v4093_v25 = vsel %vm7941_vm15, %v4044_v2, 0.0  ;;  %vm7942_vm9 = vmmov %vm7909_vm0 }
 0x596   : > { %v4012_v32 = vsel %vm7942_vm9, %v7060_v43, 0.0  ;;  %vm7943_vm5 = vmmov %vm7909_vm0 }
 0x597   : > { %v4003_v20 = vadd.f32 %v4002_v40, %v4001_v37  ;;  %v4092_v57 = vadd.f32 %v4091_v63, %v4090_v59  ;;  %v4095_v9 = vsel %vm7943_vm5, %v4045_v51, 0.0  ;;  %vm7944_vm12 = vmmov %vm7909_vm0  ;;  %v4055_v40 = vmul.f32 %v7057_v41, %v7057_v41 }
 0x598   : > { %v4014_v35 = vsel %vm7944_vm12, %v7057_v41, 0.0  ;;  %vm7945_vm10 = vmmov %vm7909_vm0  ;;  %v4113_v37 = vsel %vm7909_vm0, %v4054_v42, 0.0  ;;  %vm4127_vm5 = vcmask 1040384   ;;  %vm4131_vm12 = vcmask 123904  }
 0x599   : > { %v4005_v61 = vadd.f32 %v4004_v33, %v4003_v20  ;;  %v4094_v62 = vadd.f32 %v4093_v25, %v4092_v57  ;;  %v4097_v24 = vsel %vm7945_vm10, %v4046_v19, 0.0  ;;  %vm7946_vm8 = vmmov %vm7909_vm0  ;;  %v4057_v33 = vmul.f32 %v7071_v16, %v7071_v16 }
 0x59a   : > { %v4099_v56 = vsel %vm7946_vm8, %v4047_v15, 0.0  ;;  %vm7947_vm7 = vmmov %vm7909_vm0 }
 0x59b   : > { %v4007_v55 = vadd.f32 %v4006_v17, %v4005_v61  ;;  %v4096_v36 = vadd.f32 %v4095_v9, %v4094_v62  ;;  %v4016_v0 = vsel %vm7947_vm7, %v7074_v31, 0.0  ;;  %vm7948_vm13 = vmmov %vm7909_vm0 }
 0x59c   : > { %v4101_v52 = vsel %vm7948_vm13, %v4048_v38, 0.0  ;;  %vm7949_vm2 = vmmov %vm7909_vm0 }
 0x59d   : > { %v4009_v26 = vadd.f32 %v4008_v47, %v4007_v55  ;;  %v4098_v54 = vadd.f32 %v4097_v24, %v4096_v36  ;;  %v4103_v13 = vsel %vm7949_vm2, %v4049_v45, 0.0  ;;  %vm7950_vm14 = vmmov %vm7909_vm0 }
 0x59e   : > { %v4018_v21 = vsel %vm7950_vm14, %v7071_v16, 0.0  ;;  %vm7951_vm4 = vmmov %vm7909_vm0 }
 0x59f   : > { %v4011_v6 = vadd.f32 %v4010_v34, %v4009_v26  ;;  %v4100_v29 = vadd.f32 %v4099_v56, %v4098_v54  ;;  %v4105_v4 = vsel %vm7951_vm4, %v4050_v28, 0.0  ;;  %vm7952_vm1 = vmmov %vm7909_vm0  ;;  %v4129_v34 = vld [vmem:[#allocation6] sm:$0x3] }
 0x5a0   : > { %v4107_v53 = vsel %vm7952_vm1, %v4051_v60, 0.0  ;;  %vm7953_vm3 = vmmov %vm7909_vm0 }
 0x5a1   : > { %v4013_v46 = vadd.f32 %v4012_v32, %v4011_v6  ;;  %v4102_v8 = vadd.f32 %v4101_v52, %v4100_v29  ;;  %v4109_v5 = vsel %vm7953_vm3, %v4052_v50, 0.0  ;;  %vm7954_vm6 = vmmov %vm7909_vm0 }
 0x5a2   : > { %v4111_v10 = vsel %vm7954_vm6, %v4053_v11, 0.0  ;;  %vm7955_vm11 = vmmov %vm7909_vm0 }
 0x5a3   : > { %v4015_v22 = vadd.f32 %v4014_v35, %v4013_v46  ;;  %v4104_v49 = vadd.f32 %v4103_v13, %v4102_v8  ;;  %v4115_v43 = vsel %vm7955_vm11, %v4055_v40, 0.0  ;;  %vm7956_vm15 = vmmov %vm7909_vm0 }
 0x5a4   : > { %v4117_v20 = vsel %vm7956_vm15, %v4056_v1, 0.0  ;;  %vm7957_vm9 = vmmov %vm7909_vm0 }
 0x5a5   : > { %v4017_v14 = vadd.f32 %v4016_v0, %v4015_v22  ;;  %v4106_v18 = vadd.f32 %v4105_v4, %v4104_v49  ;;  %v4119_v44 = vsel %vm7957_vm9, %v4057_v33, 0.0 }
 0x5a7   : > { %v4019_v7 = vadd.f32 %v4018_v21, %v4017_v14  ;;  %v4108_v48 = vadd.f32 %v4107_v53, %v4106_v18 }
 0x5a9   : > { %v4020_v58 = vrot.slane %v4019_v7, 4  ;;  %v4110_v23 = vadd.f32 %v4109_v5, %v4108_v48 }
 0x5ab   : > { %v4112_v27 = vadd.f32 %v4111_v10, %v4110_v23  ;;  %v4021_v3 = vadd.f32 %v4020_v58, %v4019_v7 }
 0x5ad   : > { %v4114_v30 = vadd.f32 %v4113_v37, %v4112_v27  ;;  %v4022_v17 = vrot.slane %v4021_v3, 2 }
 0x5af   : > { %v4116_v41 = vadd.f32 %v4115_v43, %v4114_v30  ;;  %v4023_v31 = vadd.f32 %v4022_v17, %v4021_v3 }
 0x5b1   : > { %v4118_v2 = vadd.f32 %v4117_v20, %v4116_v41  ;;  %v4024_v47 = vrot.slane %v4023_v31, 1 }
 0x5b3   : > { %v4120_v12 = vadd.f32 %v4119_v44, %v4118_v2  ;;  %v4025_v16 = vadd.f32 %v4024_v47, %v4023_v31 }
 0x5b5   : > { %v4121_v61 = vrot.slane %v4120_v12, 4 }
 0x5b7   : > { %v4122_v39 = vadd.f32 %v4121_v61, %v4120_v12 }
 0x5b9   : > { %v4123_v51 = vrot.slane %v4122_v39, 2 }
 0x5bb   : > { %v4124_v63 = vadd.f32 %v4123_v51, %v4122_v39 }
 0x5bd   : > { %v4125_v55 = vrot.slane %v4124_v63, 1 }
 0x5bf   : > { %v4126_v59 = vadd.f32 %v4125_v55, %v4124_v63 }
 0x5c1   : > { %v4128_v19 = vsel %vm4127_vm5, %v4025_v16, %v4126_v59 }
 0x5c2   : > { %v4130_v25 = vadd.f32 %v4129_v34, %v4128_v19 }
 0x5c4   : > { %4132 = vst.msk [vmem:[#allocation6] sm:$0x3] %vm4131_vm12, %v4130_v25 }
 0x5c5   : > { %4732 = shalt.err (!%p4729_p4)
}
 0x5c6   : > { %s4733_s16 = scalar_lea.hbm %s7278_s9, 32 }
 0x5c7   : > { %p4734_p5 = scmp.ne.s32.totalorder %s7278_s9, %s4733_s16  ;;  %p4739_p8 = scmp.lt.u32.totalorder %s4733_s16, %s7278_s9 }
 0x5c9   : > { %p4735_p6 = pnand %p4734_p5, %p4685_p11 }
 0x5cb   : > { %p4736_p7 = pneg %p4735_p6 }
 0x5cd   : > { %p4741_p9 = pnand %p4739_p8, %p4736_p7 }
 0x5cf   : > { %4744 = shalt.err (!%p4741_p9)
}
 0x5d0   : > { %4682 = dma.vmem_to_hbm [thread:$0]  (%p4685_p11), %s4150_s25, 32, %s7278_s9, [#allocation7]  }
 0x5d1   : > { %4754 = dma.done.wait (%p4685_p11), [#allocation7], 32  }
 0x5d2   : > { %4756 = vsyncadd (%p4685_p11), [#allocation7], 4294967264 }
 0x5d3 PF: > { %s21_s30 = sadd.s32 1, %s4759_s30  }
 0x5d4   : > { %p18_p10 = scmp.ge.s32.totalorder %s21_s30, 4  }
 0x5d6   :  { %20 = sbr.rel (!%p18_p10) target bundleno = 1 (0x1), region = 179 }
 0x5dd   :  { %4170 = vsyncpa [#allocation7], 1 }
 0x5de   :  { %4172 = vsyncpa [#allocation7 + $0x1], 1 }
 0x5df   :  { %4173 = vsyncmov [#allocation5] }
 0x5e2   :  { %s4174_s13 = vpop.sfrf %4173 }
 0x5e3   :  { %p4371_p12 = scmp.ne.s32.totalorder %s4174_s13, 0 }
 0x5e5   :  { %4178 = shalt.err (%p4371_p12)  }
 0x5e6   :  { %4180 = vsyncmov [#allocation5 + $0x1] }
 0x5e9   :  { %s4181_s15 = vpop.sfrf %4180 }
 0x5ea   :  { %p4372_p13 = scmp.ne.s32.totalorder %s4181_s15, 0 }
 0x5ec   :  { %4185 = shalt.err (%p4372_p13)  }

</bundles_post_ra>
